<compile_context>
chip_gen: v7x
topology: tpu7x:2x2x1
jax: 0.10.0
libtpu: 0.0.40
codegen_flags: <defaults>
</compile_context>

<pallas_src>
import jax
import jax.numpy as jnp
from jax.experimental import pallas as pl
from jax.experimental.pallas import tpu as pltpu

LAYER_DIMS = [(784, 512), (512, 256), (256, 128), (128, 64), (64, 32), (32, 10)]
IN_FEATURES = LAYER_DIMS[0][0]   # 784 (kept unpadded: the MXU K-tail costs less than an
                                 # extra host-side pad pass over x)
NUM_LOGITS = LAYER_DIMS[-1][1]   # 10
OUT_PAD = 128                    # logits padded to a lane-dense 128-wide block
BN_EPS = 1e-5
TILE_GRAN = 16                   # bf16 sublane packing for intermediate activations


def _round_up(x, m):
    return (x + m - 1) // m * m


# --------------------------------------------------------------------------------------
# Kernel
# --------------------------------------------------------------------------------------
def deep_nn_kernel(x_ref,
                   w1, b1, w2, b2, w3, b3, w4, b4, w5, b5, w6, b6,
                   o_ref):
    """Whole 6-layer MLP for one (batch_tile, 784) tile.

    BatchNorm1d (eval) is pre-folded into (W, b) host-side and Dropout is identity in
    eval, so each hidden block is a bf16 MXU matmul (f32 accumulation) + f32 bias + ReLU
    on the VMEM-resident tile."""

    def hidden_block(h_bf16, w_ref, b_ref):
        y = jnp.dot(h_bf16, w_ref[...], preferred_element_type=jnp.float32) + b_ref[...]
        return jnp.maximum(y, 0.0).astype(jnp.bfloat16)   # ReLU, recast for next MXU pass

    h = x_ref[...].astype(jnp.bfloat16)   # f32 in HBM; on-chip cast hides under MXU work
    h = hidden_block(h, w1, b1)
    h = hidden_block(h, w2, b2)
    h = hidden_block(h, w3, b3)
    h = hidden_block(h, w4, b4)
    h = hidden_block(h, w5, b5)
    logits = jnp.dot(h, w6[...], preferred_element_type=jnp.float32) + b6[...]
    o_ref[...] = logits.astype(jnp.bfloat16)   # bf16 store halves the logits writeback


# --------------------------------------------------------------------------------------
# Parameter construction / host-side prep
# --------------------------------------------------------------------------------------
def init_params(key):
    """Fresh nn.Linear / nn.BatchNorm1d init, with eval-mode BN folded into (W, b)."""
    params = []
    n_layers = len(LAYER_DIMS)
    for li, (fan_in, fan_out) in enumerate(LAYER_DIMS):
        key, kw, kb = jax.random.split(key, 3)
        bound = 1.0 / jnp.sqrt(jnp.float32(fan_in))
        w = jax.random.uniform(kw, (fan_in, fan_out), jnp.float32, -bound, bound)
        b = jax.random.uniform(kb, (1, fan_out), jnp.float32, -bound, bound)
        if li < n_layers - 1:
            # BatchNorm1d fresh init: gamma=1, beta=0, running_mean=0, running_var=1.
            gamma = jnp.ones((1, fan_out), jnp.float32)
            beta = jnp.zeros((1, fan_out), jnp.float32)
            running_mean = jnp.zeros((1, fan_out), jnp.float32)
            running_var = jnp.ones((1, fan_out), jnp.float32)
            scale = gamma / jnp.sqrt(running_var + BN_EPS)
            shift = beta - running_mean * scale
            w = w * scale                  # (h@W + b)*scale + shift == h@(W*scale) + (b*scale+shift)
            b = b * scale + shift
        params.append((w, b))
    return params


def prepare_kernel_params(params):
    """bf16 weights for the MXU, f32 biases, narrow layers zero-padded to 128 lanes.

    Every output width < 128 (the 64-, 32- and 10-wide layers) is zero-padded to 128, and
    the matching input rows of the next layer are zero-padded too.  The padded bias is 0,
    so ReLU keeps the padded activation lanes exactly 0 and the zero weight rows of the
    next layer contribute nothing: the maths is unchanged, but every activation vreg, MXU
    tile and the final store are lane-dense.  x keeps K=784 (the MXU K-tail is cheaper
    than an extra host-side pad pass over x)."""
    prepped = []
    prev_out = IN_FEATURES
    for (w, b) in params:
        fan_in, fan_out = w.shape
        padded_out = _round_up(fan_out, 128)
        w = jnp.pad(w, ((0, prev_out - fan_in), (0, padded_out - fan_out)))
        b = jnp.pad(b, ((0, 0), (0, padded_out - fan_out)))
        prepped.append((w.astype(jnp.bfloat16), b.astype(jnp.float32)))
        prev_out = padded_out
    return prepped


def _num_tensorcores():
    """Best-effort TensorCores-per-chip (2 on v7x, 1 on v5e/v6e); defaults to 1."""
    try:
        info = pltpu.get_tpu_info()
        for attr in ("num_cores", "num_tensorcores", "tensorcore_count", "cores_per_chip"):
            v = getattr(info, attr, None)
            if isinstance(v, int) and v > 0:
                return v
    except Exception:
        pass
    return 1


# --------------------------------------------------------------------------------------
# pallas_call builder + wrapper
# --------------------------------------------------------------------------------------
def _build_pallas_call(tile, B_pad, kernel_params, *, single_buffer_weights,
                       vmem_limit_bytes, cost):
    in_specs = [pl.BlockSpec((tile, IN_FEATURES), lambda i: (i, 0))]
    # Constant index_map: every parameter stays VMEM-resident across grid steps; they are
    # fetched once, so single-buffering them frees ~1.2 MiB of VMEM for bigger batch tiles.
    weight_kwargs = {"pipeline_mode": pl.Buffered(1)} if single_buffer_weights else {}
    for (w, b) in kernel_params:
        in_specs.append(pl.BlockSpec(w.shape, lambda i: (0, 0), **weight_kwargs))
        in_specs.append(pl.BlockSpec(b.shape, lambda i: (0, 0), **weight_kwargs))
    return pl.pallas_call(
        deep_nn_kernel,
        out_shape=jax.ShapeDtypeStruct((B_pad, OUT_PAD), jnp.bfloat16),
        grid_spec=pltpu.PrefetchScalarGridSpec(
            num_scalar_prefetch=0,
            grid=(B_pad // tile,),
            in_specs=in_specs,
            out_specs=pl.BlockSpec((tile, OUT_PAD), lambda i: (i, 0)),
        ),
        compiler_params=pltpu.CompilerParams(
            dimension_semantics=("parallel",),
            vmem_limit_bytes=vmem_limit_bytes,
        ),
        cost_estimate=cost,
    )


def deep_nn_forward(x, kernel_params, *, batch_tile=512):
    B = x.shape[0]
    x_flat = x.reshape(B, -1).astype(jnp.float32)   # x.view(B, -1); stays f32 (cast on-chip)
    assert x_flat.shape[1] == IN_FEATURES

    # Tile selection: one big tile per step on single-TC chips (v5e/v6e — the grid is a
    # sequential loop, splitting is pure per-step overhead).  Only when >1 TensorCore is
    # detected (v7x) do we split the "parallel" batch axis, targeting >=2 steps per core
    # so the x-tile DMA still pipelines on each core.
    tile = min(batch_tile, _round_up(B, TILE_GRAN))
    n_cores = _num_tensorcores()
    if n_cores > 1:
        target_steps = 2 * n_cores
        while _round_up(B, tile) // tile < target_steps and tile // 2 >= 256:
            tile = _round_up(tile // 2, TILE_GRAN)
    B_pad = _round_up(B, tile)
    if B_pad != B:
        x_flat = jnp.pad(x_flat, ((0, B_pad - B), (0, 0)))

    # v5e's scoped-VMEM default is 16 MiB; raise it for big tiles (still well under the
    # 64 MiB physical VMEM per TensorCore on v7x).
    vmem_limit_bytes = 48 * 1024 * 1024 if tile >= 512 else None

    flops = 2 * B_pad * sum(int(w.shape[0]) * int(w.shape[1]) for w, _ in kernel_params)
    bytes_accessed = (
        int(x_flat.size) * x_flat.dtype.itemsize
        + sum(int(w.size) * w.dtype.itemsize + int(b.size) * b.dtype.itemsize
              for w, b in kernel_params)
        + B_pad * OUT_PAD * 2
    )
    cost = pl.CostEstimate(flops=flops, transcendentals=0, bytes_accessed=bytes_accessed)

    operands = [x_flat]
    for (w, b) in kernel_params:
        operands += [w, b]

    try:
        out_pad = _build_pallas_call(
            tile, B_pad, kernel_params, single_buffer_weights=True,
            vmem_limit_bytes=vmem_limit_bytes, cost=cost)(*operands)
    except Exception:
        # TODO(synk): pl.Buffered(1) single-buffering of resident weights rejected on this
        # jax version; fall back to default double-buffering (~1.2 MiB extra VMEM).
        out_pad = _build_pallas_call(
            tile, B_pad, kernel_params, single_buffer_weights=False,
            vmem_limit_bytes=vmem_limit_bytes, cost=cost)(*operands)

    return out_pad[:B, :NUM_LOGITS].astype(jnp.float32)


# --------------------------------------------------------------------------------------
# References
# --------------------------------------------------------------------------------------
def deep_nn_reference(x, kernel_params):
    """Plain-JAX reference with the same dtype flow as the kernel (bf16 operands,
    f32 accumulation, bf16 output store)."""
    h = x.reshape(x.shape[0], -1).astype(jnp.bfloat16)
    n = len(kernel_params)
    for li, (w, b) in enumerate(kernel_params):
        y = jnp.dot(h, w, preferred_element_type=jnp.float32) + b
        if li < n - 1:
            h = jnp.maximum(y, 0.0).astype(jnp.bfloat16)
        else:
            return y[:, :NUM_LOGITS].astype(jnp.bfloat16).astype(jnp.float32)


def deep_nn_reference_f32(x, params):
    """Full-f32 reference on the unpadded BN-folded params (true eval-mode maths)."""
    h = x.reshape(x.shape[0], -1).astype(jnp.float32)
    n = len(params)
    for li, (w, b) in enumerate(params):
        y = h @ w + b
        if li < n - 1:
            h = jnp.maximum(y, 0.0)
        else:
            return y


# --------------------------------------------------------------------------------------
# Main
# --------------------------------------------------------------------------------------
if __name__ == "__main__":
    key = jax.random.PRNGKey(0)
    k_params, k_x = jax.random.split(key)
    params = init_params(k_params)
    kparams = prepare_kernel_params(params)

    # Small MNIST-like batch: (B, 1, 28, 28) -> flattened to (B, 784) inside the wrapper.
    B = 8
    x = jax.random.normal(k_x, (B, 1, 28, 28), jnp.float32)

    out = deep_nn_forward(x, kparams)
    out = jax.block_until_ready(out)
    assert out.shape == (B, NUM_LOGITS)

    # Same-dtype-flow reference (tight check of the kernel itself).
    ref = deep_nn_reference(x, kparams)
    assert jnp.allclose(out, ref, atol=2e-2, rtol=2e-2), "mismatch vs bf16-flow reference"

    # Full-f32 reference (validates that the bf16 activation flow does not drift).
    ref32 = deep_nn_reference_f32(x, params)
    assert jnp.allclose(out, ref32, atol=3e-2, rtol=3e-2), "mismatch vs f32 reference"

    print("KERNEL_OK")
</pallas_src>

<mosaic_0001>
module attributes {stable_mosaic.version = 11 : i64} {
  func.func @deep_nn_kernel(%arg0: i32, %arg1: memref<16x784xf32, #tpu.memory_space<vmem>>, %arg2: memref<784x512xbf16, #tpu.memory_space<vmem>>, %arg3: memref<1x512xf32, #tpu.memory_space<vmem>>, %arg4: memref<512x256xbf16, #tpu.memory_space<vmem>>, %arg5: memref<1x256xf32, #tpu.memory_space<vmem>>, %arg6: memref<256x128xbf16, #tpu.memory_space<vmem>>, %arg7: memref<1x128xf32, #tpu.memory_space<vmem>>, %arg8: memref<128x128xbf16, #tpu.memory_space<vmem>>, %arg9: memref<1x128xf32, #tpu.memory_space<vmem>>, %arg10: memref<128x128xbf16, #tpu.memory_space<vmem>>, %arg11: memref<1x128xf32, #tpu.memory_space<vmem>>, %arg12: memref<128x128xbf16, #tpu.memory_space<vmem>>, %arg13: memref<1x128xf32, #tpu.memory_space<vmem>>, %arg14: memref<16x128xbf16, #tpu.memory_space<vmem>>) attributes {dimension_semantics = [#tpu.dimension_semantics<parallel>], iteration_bounds = array<i64: 1>, scalar_prefetch = 0 : i64, scratch_operands = 0 : i64, tpu.core_type = #tpu.core_type<tc>, window_params = [{transform_indices = @transform_0, window_bounds = array<i64: 16, 784>}, {pipeline_mode = #tpu.pipeline_mode<synchronous>, transform_indices = @transform_1, window_bounds = array<i64: 784, 512>}, {pipeline_mode = #tpu.pipeline_mode<synchronous>, transform_indices = @transform_2, window_bounds = array<i64: 1, 512>}, {pipeline_mode = #tpu.pipeline_mode<synchronous>, transform_indices = @transform_3, window_bounds = array<i64: 512, 256>}, {pipeline_mode = #tpu.pipeline_mode<synchronous>, transform_indices = @transform_4, window_bounds = array<i64: 1, 256>}, {pipeline_mode = #tpu.pipeline_mode<synchronous>, transform_indices = @transform_5, window_bounds = array<i64: 256, 128>}, {pipeline_mode = #tpu.pipeline_mode<synchronous>, transform_indices = @transform_6, window_bounds = array<i64: 1, 128>}, {pipeline_mode = #tpu.pipeline_mode<synchronous>, transform_indices = @transform_7, window_bounds = array<i64: 128, 128>}, {pipeline_mode = #tpu.pipeline_mode<synchronous>, transform_indices = @transform_8, window_bounds = array<i64: 1, 128>}, {pipeline_mode = #tpu.pipeline_mode<synchronous>, transform_indices = @transform_9, window_bounds = array<i64: 128, 128>}, {pipeline_mode = #tpu.pipeline_mode<synchronous>, transform_indices = @transform_10, window_bounds = array<i64: 1, 128>}, {pipeline_mode = #tpu.pipeline_mode<synchronous>, transform_indices = @transform_11, window_bounds = array<i64: 128, 128>}, {pipeline_mode = #tpu.pipeline_mode<synchronous>, transform_indices = @transform_12, window_bounds = array<i64: 1, 128>}, {transform_indices = @transform_13, window_bounds = array<i64: 16, 128>}]} {
    %c0 = arith.constant 0 : index
    %c0_0 = arith.constant 0 : index
    %0 = vector.load %arg1[%c0, %c0_0] : memref<16x784xf32, #tpu.memory_space<vmem>>, vector<16x784xf32>
    %1 = arith.truncf %0 : vector<16x784xf32> to vector<16x784xbf16>
    %c0_1 = arith.constant 0 : index
    %c0_2 = arith.constant 0 : index
    %2 = vector.load %arg2[%c0_1, %c0_2] : memref<784x512xbf16, #tpu.memory_space<vmem>>, vector<784x512xbf16>
    %cst = arith.constant dense<0.000000e+00> : vector<16x512xf32>
    %3 = tpu.matmul %1, %2, %cst {dimension_numbers = #tpu.dot_dimension_numbers<[1], [0], [0], [1], [0, 0, 1, 1], [], []>} : vector<16x784xbf16>, vector<784x512xbf16>, vector<16x512xf32> -> vector<16x512xf32>
    %c0_3 = arith.constant 0 : index
    %c0_4 = arith.constant 0 : index
    %4 = vector.load %arg3[%c0_3, %c0_4] : memref<1x512xf32, #tpu.memory_space<vmem>>, vector<1x512xf32>
    %5 = vector.broadcast %4 : vector<1x512xf32> to vector<16x512xf32>
    %6 = arith.addf %3, %5 : vector<16x512xf32>
    %cst_5 = arith.constant 0.000000e+00 : f32
    %7 = vector.broadcast %cst_5 : f32 to vector<16x512xf32>
    %8 = arith.maximumf %6, %7 : vector<16x512xf32>
    %9 = arith.truncf %8 : vector<16x512xf32> to vector<16x512xbf16>
    %c0_6 = arith.constant 0 : index
    %c0_7 = arith.constant 0 : index
    %10 = vector.load %arg4[%c0_6, %c0_7] : memref<512x256xbf16, #tpu.memory_space<vmem>>, vector<512x256xbf16>
    %cst_8 = arith.constant dense<0.000000e+00> : vector<16x256xf32>
    %11 = tpu.matmul %9, %10, %cst_8 {dimension_numbers = #tpu.dot_dimension_numbers<[1], [0], [0], [1], [0, 0, 1, 1], [], []>} : vector<16x512xbf16>, vector<512x256xbf16>, vector<16x256xf32> -> vector<16x256xf32>
    %c0_9 = arith.constant 0 : index
    %c0_10 = arith.constant 0 : index
    %12 = vector.load %arg5[%c0_9, %c0_10] : memref<1x256xf32, #tpu.memory_space<vmem>>, vector<1x256xf32>
    %13 = vector.broadcast %12 : vector<1x256xf32> to vector<16x256xf32>
    %14 = arith.addf %11, %13 : vector<16x256xf32>
    %cst_11 = arith.constant 0.000000e+00 : f32
    %15 = vector.broadcast %cst_11 : f32 to vector<16x256xf32>
    %16 = arith.maximumf %14, %15 : vector<16x256xf32>
    %17 = arith.truncf %16 : vector<16x256xf32> to vector<16x256xbf16>
    %c0_12 = arith.constant 0 : index
    %c0_13 = arith.constant 0 : index
    %18 = vector.load %arg6[%c0_12, %c0_13] : memref<256x128xbf16, #tpu.memory_space<vmem>>, vector<256x128xbf16>
    %cst_14 = arith.constant dense<0.000000e+00> : vector<16x128xf32>
    %19 = tpu.matmul %17, %18, %cst_14 {dimension_numbers = #tpu.dot_dimension_numbers<[1], [0], [0], [1], [0, 0, 1, 1], [], []>} : vector<16x256xbf16>, vector<256x128xbf16>, vector<16x128xf32> -> vector<16x128xf32>
    %c0_15 = arith.constant 0 : index
    %c0_16 = arith.constant 0 : index
    %20 = vector.load %arg7[%c0_15, %c0_16] : memref<1x128xf32, #tpu.memory_space<vmem>>, vector<1x128xf32>
    %21 = vector.broadcast %20 : vector<1x128xf32> to vector<16x128xf32>
    %22 = arith.addf %19, %21 : vector<16x128xf32>
    %cst_17 = arith.constant 0.000000e+00 : f32
    %23 = vector.broadcast %cst_17 : f32 to vector<16x128xf32>
    %24 = arith.maximumf %22, %23 : vector<16x128xf32>
    %25 = arith.truncf %24 : vector<16x128xf32> to vector<16x128xbf16>
    %c0_18 = arith.constant 0 : index
    %c0_19 = arith.constant 0 : index
    %26 = vector.load %arg8[%c0_18, %c0_19] : memref<128x128xbf16, #tpu.memory_space<vmem>>, vector<128x128xbf16>
    %cst_20 = arith.constant dense<0.000000e+00> : vector<16x128xf32>
    %27 = tpu.matmul %25, %26, %cst_20 {dimension_numbers = #tpu.dot_dimension_numbers<[1], [0], [0], [1], [0, 0, 1, 1], [], []>} : vector<16x128xbf16>, vector<128x128xbf16>, vector<16x128xf32> -> vector<16x128xf32>
    %c0_21 = arith.constant 0 : index
    %c0_22 = arith.constant 0 : index
    %28 = vector.load %arg9[%c0_21, %c0_22] : memref<1x128xf32, #tpu.memory_space<vmem>>, vector<1x128xf32>
    %29 = vector.broadcast %28 : vector<1x128xf32> to vector<16x128xf32>
    %30 = arith.addf %27, %29 : vector<16x128xf32>
    %cst_23 = arith.constant 0.000000e+00 : f32
    %31 = vector.broadcast %cst_23 : f32 to vector<16x128xf32>
    %32 = arith.maximumf %30, %31 : vector<16x128xf32>
    %33 = arith.truncf %32 : vector<16x128xf32> to vector<16x128xbf16>
    %c0_24 = arith.constant 0 : index
    %c0_25 = arith.constant 0 : index
    %34 = vector.load %arg10[%c0_24, %c0_25] : memref<128x128xbf16, #tpu.memory_space<vmem>>, vector<128x128xbf16>
    %cst_26 = arith.constant dense<0.000000e+00> : vector<16x128xf32>
    %35 = tpu.matmul %33, %34, %cst_26 {dimension_numbers = #tpu.dot_dimension_numbers<[1], [0], [0], [1], [0, 0, 1, 1], [], []>} : vector<16x128xbf16>, vector<128x128xbf16>, vector<16x128xf32> -> vector<16x128xf32>
    %c0_27 = arith.constant 0 : index
    %c0_28 = arith.constant 0 : index
    %36 = vector.load %arg11[%c0_27, %c0_28] : memref<1x128xf32, #tpu.memory_space<vmem>>, vector<1x128xf32>
    %37 = vector.broadcast %36 : vector<1x128xf32> to vector<16x128xf32>
    %38 = arith.addf %35, %37 : vector<16x128xf32>
    %cst_29 = arith.constant 0.000000e+00 : f32
    %39 = vector.broadcast %cst_29 : f32 to vector<16x128xf32>
    %40 = arith.maximumf %38, %39 : vector<16x128xf32>
    %41 = arith.truncf %40 : vector<16x128xf32> to vector<16x128xbf16>
    %c0_30 = arith.constant 0 : index
    %c0_31 = arith.constant 0 : index
    %42 = vector.load %arg12[%c0_30, %c0_31] : memref<128x128xbf16, #tpu.memory_space<vmem>>, vector<128x128xbf16>
    %cst_32 = arith.constant dense<0.000000e+00> : vector<16x128xf32>
    %43 = tpu.matmul %41, %42, %cst_32 {dimension_numbers = #tpu.dot_dimension_numbers<[1], [0], [0], [1], [0, 0, 1, 1], [], []>} : vector<16x128xbf16>, vector<128x128xbf16>, vector<16x128xf32> -> vector<16x128xf32>
    %c0_33 = arith.constant 0 : index
    %c0_34 = arith.constant 0 : index
    %44 = vector.load %arg13[%c0_33, %c0_34] : memref<1x128xf32, #tpu.memory_space<vmem>>, vector<1x128xf32>
    %45 = vector.broadcast %44 : vector<1x128xf32> to vector<16x128xf32>
    %46 = arith.addf %43, %45 : vector<16x128xf32>
    %47 = arith.truncf %46 : vector<16x128xf32> to vector<16x128xbf16>
    %c0_35 = arith.constant 0 : index
    %c0_36 = arith.constant 0 : index
    %48 = vector.load %arg14[%c0_35, %c0_36] : memref<16x128xbf16, #tpu.memory_space<vmem>>, vector<16x128xbf16>
    tpu.vector_store %arg14[%c0_35, %c0_36], %47 {strides = array<i32>} : memref<16x128xbf16, #tpu.memory_space<vmem>>, vector<16x128xbf16>,
    return
  }
  func.func @transform_0(%arg0: i32) -> (i32, i32) {
    %c0_i32 = arith.constant 0 : i32
    %c0_i32_0 = arith.constant 0 : i32
    return %arg0, %c0_i32 : i32, i32
  }
  func.func @transform_1(%arg0: i32) -> (i32, i32) {
    %c0_i32 = arith.constant 0 : i32
    %c0_i32_0 = arith.constant 0 : i32
    %c0_i32_1 = arith.constant 0 : i32
    return %c0_i32, %c0_i32_0 : i32, i32
  }
  func.func @transform_2(%arg0: i32) -> (i32, i32) {
    %c0_i32 = arith.constant 0 : i32
    %c0_i32_0 = arith.constant 0 : i32
    %c0_i32_1 = arith.constant 0 : i32
    return %c0_i32, %c0_i32_0 : i32, i32
  }
  func.func @transform_3(%arg0: i32) -> (i32, i32) {
    %c0_i32 = arith.constant 0 : i32
    %c0_i32_0 = arith.constant 0 : i32
    %c0_i32_1 = arith.constant 0 : i32
    return %c0_i32, %c0_i32_0 : i32, i32
  }
  func.func @transform_4(%arg0: i32) -> (i32, i32) {
    %c0_i32 = arith.constant 0 : i32
    %c0_i32_0 = arith.constant 0 : i32
    %c0_i32_1 = arith.constant 0 : i32
    return %c0_i32, %c0_i32_0 : i32, i32
  }
  func.func @transform_5(%arg0: i32) -> (i32, i32) {
    %c0_i32 = arith.constant 0 : i32
    %c0_i32_0 = arith.constant 0 : i32
    %c0_i32_1 = arith.constant 0 : i32
    return %c0_i32, %c0_i32_0 : i32, i32
  }
  func.func @transform_6(%arg0: i32) -> (i32, i32) {
    %c0_i32 = arith.constant 0 : i32
    %c0_i32_0 = arith.constant 0 : i32
    %c0_i32_1 = arith.constant 0 : i32
    return %c0_i32, %c0_i32_0 : i32, i32
  }
  func.func @transform_7(%arg0: i32) -> (i32, i32) {
    %c0_i32 = arith.constant 0 : i32
    %c0_i32_0 = arith.constant 0 : i32
    %c0_i32_1 = arith.constant 0 : i32
    return %c0_i32, %c0_i32_0 : i32, i32
  }
  func.func @transform_8(%arg0: i32) -> (i32, i32) {
    %c0_i32 = arith.constant 0 : i32
    %c0_i32_0 = arith.constant 0 : i32
    %c0_i32_1 = arith.constant 0 : i32
    return %c0_i32, %c0_i32_0 : i32, i32
  }
  func.func @transform_9(%arg0: i32) -> (i32, i32) {
    %c0_i32 = arith.constant 0 : i32
    %c0_i32_0 = arith.constant 0 : i32
    %c0_i32_1 = arith.constant 0 : i32
    return %c0_i32, %c0_i32_0 : i32, i32
  }
  func.func @transform_10(%arg0: i32) -> (i32, i32) {
    %c0_i32 = arith.constant 0 : i32
    %c0_i32_0 = arith.constant 0 : i32
    %c0_i32_1 = arith.constant 0 : i32
    return %c0_i32, %c0_i32_0 : i32, i32
  }
  func.func @transform_11(%arg0: i32) -> (i32, i32) {
    %c0_i32 = arith.constant 0 : i32
    %c0_i32_0 = arith.constant 0 : i32
    %c0_i32_1 = arith.constant 0 : i32
    return %c0_i32, %c0_i32_0 : i32, i32
  }
  func.func @transform_12(%arg0: i32) -> (i32, i32) {
    %c0_i32 = arith.constant 0 : i32
    %c0_i32_0 = arith.constant 0 : i32
    %c0_i32_1 = arith.constant 0 : i32
    return %c0_i32, %c0_i32_0 : i32, i32
  }
  func.func @transform_13(%arg0: i32) -> (i32, i32) {
    %c0_i32 = arith.constant 0 : i32
    %c0_i32_0 = arith.constant 0 : i32
    return %arg0, %c0_i32 : i32, i32
  }
}

module attributes {stable_mosaic.version = 11 : i64} {
  func.func @deep_nn_kernel(%arg0: i32, %arg1: memref<16x784xf32, #tpu.memory_space<vmem>>, %arg2: memref<784x512xbf16, #tpu.memory_space<vmem>>, %arg3: memref<1x512xf32, #tpu.memory_space<vmem>>, %arg4: memref<512x256xbf16, #tpu.memory_space<vmem>>, %arg5: memref<1x256xf32, #tpu.memory_space<vmem>>, %arg6: memref<256x128xbf16, #tpu.memory_space<vmem>>, %arg7: memref<1x128xf32, #tpu.memory_space<vmem>>, %arg8: memref<128x128xbf16, #tpu.memory_space<vmem>>, %arg9: memref<1x128xf32, #tpu.memory_space<vmem>>, %arg10: memref<128x128xbf16, #tpu.memory_space<vmem>>, %arg11: memref<1x128xf32, #tpu.memory_space<vmem>>, %arg12: memref<128x128xbf16, #tpu.memory_space<vmem>>, %arg13: memref<1x128xf32, #tpu.memory_space<vmem>>, %arg14: memref<16x128xbf16, #tpu.memory_space<vmem>>) attributes {dimension_semantics = [#tpu.dimension_semantics<parallel>], iteration_bounds = array<i64: 1>, scalar_prefetch = 0 : i64, scratch_operands = 0 : i64, tpu.core_type = #tpu.core_type<tc>, window_params = [{transform_indices = @transform_0, window_bounds = array<i64: 16, 784>}, {pipeline_mode = #tpu.pipeline_mode<synchronous>, transform_indices = @transform_1, window_bounds = array<i64: 784, 512>}, {pipeline_mode = #tpu.pipeline_mode<synchronous>, transform_indices = @transform_2, window_bounds = array<i64: 1, 512>}, {pipeline_mode = #tpu.pipeline_mode<synchronous>, transform_indices = @transform_3, window_bounds = array<i64: 512, 256>}, {pipeline_mode = #tpu.pipeline_mode<synchronous>, transform_indices = @transform_4, window_bounds = array<i64: 1, 256>}, {pipeline_mode = #tpu.pipeline_mode<synchronous>, transform_indices = @transform_5, window_bounds = array<i64: 256, 128>}, {pipeline_mode = #tpu.pipeline_mode<synchronous>, transform_indices = @transform_6, window_bounds = array<i64: 1, 128>}, {pipeline_mode = #tpu.pipeline_mode<synchronous>, transform_indices = @transform_7, window_bounds = array<i64: 128, 128>}, {pipeline_mode = #tpu.pipeline_mode<synchronous>, transform_indices = @transform_8, window_bounds = array<i64: 1, 128>}, {pipeline_mode = #tpu.pipeline_mode<synchronous>, transform_indices = @transform_9, window_bounds = array<i64: 128, 128>}, {pipeline_mode = #tpu.pipeline_mode<synchronous>, transform_indices = @transform_10, window_bounds = array<i64: 1, 128>}, {pipeline_mode = #tpu.pipeline_mode<synchronous>, transform_indices = @transform_11, window_bounds = array<i64: 128, 128>}, {pipeline_mode = #tpu.pipeline_mode<synchronous>, transform_indices = @transform_12, window_bounds = array<i64: 1, 128>}, {transform_indices = @transform_13, window_bounds = array<i64: 16, 128>}]} {
    %c0 = arith.constant 0 : index
    %c0_0 = arith.constant 0 : index
    %0 = vector.load %arg1[%c0, %c0_0] : memref<16x784xf32, #tpu.memory_space<vmem>>, vector<16x784xf32>
    %1 = arith.truncf %0 : vector<16x784xf32> to vector<16x784xbf16>
    %c0_1 = arith.constant 0 : index
    %c0_2 = arith.constant 0 : index
    %2 = vector.load %arg2[%c0_1, %c0_2] : memref<784x512xbf16, #tpu.memory_space<vmem>>, vector<784x512xbf16>
    %cst = arith.constant dense<0.000000e+00> : vector<16x512xf32>
    %3 = tpu.matmul %1, %2, %cst {dimension_numbers = #tpu.dot_dimension_numbers<[1], [0], [0], [1], [0, 0, 1, 1], [], []>} : vector<16x784xbf16>, vector<784x512xbf16>, vector<16x512xf32> -> vector<16x512xf32>
    %c0_3 = arith.constant 0 : index
    %c0_4 = arith.constant 0 : index
    %4 = vector.load %arg3[%c0_3, %c0_4] : memref<1x512xf32, #tpu.memory_space<vmem>>, vector<1x512xf32>
    %5 = vector.broadcast %4 : vector<1x512xf32> to vector<16x512xf32>
    %6 = arith.addf %3, %5 : vector<16x512xf32>
    %cst_5 = arith.constant 0.000000e+00 : f32
    %7 = vector.broadcast %cst_5 : f32 to vector<16x512xf32>
    %8 = arith.maximumf %6, %7 : vector<16x512xf32>
    %9 = arith.truncf %8 : vector<16x512xf32> to vector<16x512xbf16>
    %c0_6 = arith.constant 0 : index
    %c0_7 = arith.constant 0 : index
    %10 = vector.load %arg4[%c0_6, %c0_7] : memref<512x256xbf16, #tpu.memory_space<vmem>>, vector<512x256xbf16>
    %cst_8 = arith.constant dense<0.000000e+00> : vector<16x256xf32>
    %11 = tpu.matmul %9, %10, %cst_8 {dimension_numbers = #tpu.dot_dimension_numbers<[1], [0], [0], [1], [0, 0, 1, 1], [], []>} : vector<16x512xbf16>, vector<512x256xbf16>, vector<16x256xf32> -> vector<16x256xf32>
    %c0_9 = arith.constant 0 : index
    %c0_10 = arith.constant 0 : index
    %12 = vector.load %arg5[%c0_9, %c0_10] : memref<1x256xf32, #tpu.memory_space<vmem>>, vector<1x256xf32>
    %13 = vector.broadcast %12 : vector<1x256xf32> to vector<16x256xf32>
    %14 = arith.addf %11, %13 : vector<16x256xf32>
    %cst_11 = arith.constant 0.000000e+00 : f32
    %15 = vector.broadcast %cst_11 : f32 to vector<16x256xf32>
    %16 = arith.maximumf %14, %15 : vector<16x256xf32>
    %17 = arith.truncf %16 : vector<16x256xf32> to vector<16x256xbf16>
    %c0_12 = arith.constant 0 : index
    %c0_13 = arith.constant 0 : index
    %18 = vector.load %arg6[%c0_12, %c0_13] : memref<256x128xbf16, #tpu.memory_space<vmem>>, vector<256x128xbf16>
    %cst_14 = arith.constant dense<0.000000e+00> : vector<16x128xf32>
    %19 = tpu.matmul %17, %18, %cst_14 {dimension_numbers = #tpu.dot_dimension_numbers<[1], [0], [0], [1], [0, 0, 1, 1], [], []>} : vector<16x256xbf16>, vector<256x128xbf16>, vector<16x128xf32> -> vector<16x128xf32>
    %c0_15 = arith.constant 0 : index
    %c0_16 = arith.constant 0 : index
    %20 = vector.load %arg7[%c0_15, %c0_16] : memref<1x128xf32, #tpu.memory_space<vmem>>, vector<1x128xf32>
    %21 = vector.broadcast %20 : vector<1x128xf32> to vector<16x128xf32>
    %22 = arith.addf %19, %21 : vector<16x128xf32>
    %cst_17 = arith.constant 0.000000e+00 : f32
    %23 = vector.broadcast %cst_17 : f32 to vector<16x128xf32>
    %24 = arith.maximumf %22, %23 : vector<16x128xf32>
    %25 = arith.truncf %24 : vector<16x128xf32> to vector<16x128xbf16>
    %c0_18 = arith.constant 0 : index
    %c0_19 = arith.constant 0 : index
    %26 = vector.load %arg8[%c0_18, %c0_19] : memref<128x128xbf16, #tpu.memory_space<vmem>>, vector<128x128xbf16>
    %cst_20 = arith.constant dense<0.000000e+00> : vector<16x128xf32>
    %27 = tpu.matmul %25, %26, %cst_20 {dimension_numbers = #tpu.dot_dimension_numbers<[1], [0], [0], [1], [0, 0, 1, 1], [], []>} : vector<16x128xbf16>, vector<128x128xbf16>, vector<16x128xf32> -> vector<16x128xf32>
    %c0_21 = arith.constant 0 : index
    %c0_22 = arith.constant 0 : index
    %28 = vector.load %arg9[%c0_21, %c0_22] : memref<1x128xf32, #tpu.memory_space<vmem>>, vector<1x128xf32>
    %29 = vector.broadcast %28 : vector<1x128xf32> to vector<16x128xf32>
    %30 = arith.addf %27, %29 : vector<16x128xf32>
    %cst_23 = arith.constant 0.000000e+00 : f32
    %31 = vector.broadcast %cst_23 : f32 to vector<16x128xf32>
    %32 = arith.maximumf %30, %31 : vector<16x128xf32>
    %33 = arith.truncf %32 : vector<16x128xf32> to vector<16x128xbf16>
    %c0_24 = arith.constant 0 : index
    %c0_25 = arith.constant 0 : index
    %34 = vector.load %arg10[%c0_24, %c0_25] : memref<128x128xbf16, #tpu.memory_space<vmem>>, vector<128x128xbf16>
    %cst_26 = arith.constant dense<0.000000e+00> : vector<16x128xf32>
    %35 = tpu.matmul %33, %34, %cst_26 {dimension_numbers = #tpu.dot_dimension_numbers<[1], [0], [0], [1], [0, 0, 1, 1], [], []>} : vector<16x128xbf16>, vector<128x128xbf16>, vector<16x128xf32> -> vector<16x128xf32>
    %c0_27 = arith.constant 0 : index
    %c0_28 = arith.constant 0 : index
    %36 = vector.load %arg11[%c0_27, %c0_28] : memref<1x128xf32, #tpu.memory_space<vmem>>, vector<1x128xf32>
    %37 = vector.broadcast %36 : vector<1x128xf32> to vector<16x128xf32>
    %38 = arith.addf %35, %37 : vector<16x128xf32>
    %cst_29 = arith.constant 0.000000e+00 : f32
    %39 = vector.broadcast %cst_29 : f32 to vector<16x128xf32>
    %40 = arith.maximumf %38, %39 : vector<16x128xf32>
    %41 = arith.truncf %40 : vector<16x128xf32> to vector<16x128xbf16>
    %c0_30 = arith.constant 0 : index
    %c0_31 = arith.constant 0 : index
    %42 = vector.load %arg12[%c0_30, %c0_31] : memref<128x128xbf16, #tpu.memory_space<vmem>>, vector<128x128xbf16>
    %cst_32 = arith.constant dense<0.000000e+00> : vector<16x128xf32>
    %43 = tpu.matmul %41, %42, %cst_32 {dimension_numbers = #tpu.dot_dimension_numbers<[1], [0], [0], [1], [0, 0, 1, 1], [], []>} : vector<16x128xbf16>, vector<128x128xbf16>, vector<16x128xf32> -> vector<16x128xf32>
    %c0_33 = arith.constant 0 : index
    %c0_34 = arith.constant 0 : index
    %44 = vector.load %arg13[%c0_33, %c0_34] : memref<1x128xf32, #tpu.memory_space<vmem>>, vector<1x128xf32>
    %45 = vector.broadcast %44 : vector<1x128xf32> to vector<16x128xf32>
    %46 = arith.addf %43, %45 : vector<16x128xf32>
    %47 = arith.truncf %46 : vector<16x128xf32> to vector<16x128xbf16>
    %c0_35 = arith.constant 0 : index
    %c0_36 = arith.constant 0 : index
    %48 = vector.load %arg14[%c0_35, %c0_36] : memref<16x128xbf16, #tpu.memory_space<vmem>>, vector<16x128xbf16>
    tpu.vector_store %arg14[%c0_35, %c0_36], %47 {strides = array<i32>} : memref<16x128xbf16, #tpu.memory_space<vmem>>, vector<16x128xbf16>,
    return
  }
  func.func @transform_0(%arg0: i32) -> (i32, i32) {
    %c0_i32 = arith.constant 0 : i32
    %c0_i32_0 = arith.constant 0 : i32
    return %arg0, %c0_i32 : i32, i32
  }
  func.func @transform_1(%arg0: i32) -> (i32, i32) {
    %c0_i32 = arith.constant 0 : i32
    %c0_i32_0 = arith.constant 0 : i32
    %c0_i32_1 = arith.constant 0 : i32
    return %c0_i32, %c0_i32_0 : i32, i32
  }
  func.func @transform_2(%arg0: i32) -> (i32, i32) {
    %c0_i32 = arith.constant 0 : i32
    %c0_i32_0 = arith.constant 0 : i32
    %c0_i32_1 = arith.constant 0 : i32
    return %c0_i32, %c0_i32_0 : i32, i32
  }
  func.func @transform_3(%arg0: i32) -> (i32, i32) {
    %c0_i32 = arith.constant 0 : i32
    %c0_i32_0 = arith.constant 0 : i32
    %c0_i32_1 = arith.constant 0 : i32
    return %c0_i32, %c0_i32_0 : i32, i32
  }
  func.func @transform_4(%arg0: i32) -> (i32, i32) {
    %c0_i32 = arith.constant 0 : i32
    %c0_i32_0 = arith.constant 0 : i32
    %c0_i32_1 = arith.constant 0 : i32
    return %c0_i32, %c0_i32_0 : i32, i32
  }
  func.func @transform_5(%arg0: i32) -> (i32, i32) {
    %c0_i32 = arith.constant 0 : i32
    %c0_i32_0 = arith.constant 0 : i32
    %c0_i32_1 = arith.constant 0 : i32
    return %c0_i32, %c0_i32_0 : i32, i32
  }
  func.func @transform_6(%arg0: i32) -> (i32, i32) {
    %c0_i32 = arith.constant 0 : i32
    %c0_i32_0 = arith.constant 0 : i32
    %c0_i32_1 = arith.constant 0 : i32
    return %c0_i32, %c0_i32_0 : i32, i32
  }
  func.func @transform_7(%arg0: i32) -> (i32, i32) {
    %c0_i32 = arith.constant 0 : i32
    %c0_i32_0 = arith.constant 0 : i32
    %c0_i32_1 = arith.constant 0 : i32
    return %c0_i32, %c0_i32_0 : i32, i32
  }
  func.func @transform_8(%arg0: i32) -> (i32, i32) {
    %c0_i32 = arith.constant 0 : i32
    %c0_i32_0 = arith.constant 0 : i32
    %c0_i32_1 = arith.constant 0 : i32
    return %c0_i32, %c0_i32_0 : i32, i32
  }
  func.func @transform_9(%arg0: i32) -> (i32, i32) {
    %c0_i32 = arith.constant 0 : i32
    %c0_i32_0 = arith.constant 0 : i32
    %c0_i32_1 = arith.constant 0 : i32
    return %c0_i32, %c0_i32_0 : i32, i32
  }
  func.func @transform_10(%arg0: i32) -> (i32, i32) {
    %c0_i32 = arith.constant 0 : i32
    %c0_i32_0 = arith.constant 0 : i32
    %c0_i32_1 = arith.constant 0 : i32
    return %c0_i32, %c0_i32_0 : i32, i32
  }
  func.func @transform_11(%arg0: i32) -> (i32, i32) {
    %c0_i32 = arith.constant 0 : i32
    %c0_i32_0 = arith.constant 0 : i32
    %c0_i32_1 = arith.constant 0 : i32
    return %c0_i32, %c0_i32_0 : i32, i32
  }
  func.func @transform_12(%arg0: i32) -> (i32, i32) {
    %c0_i32 = arith.constant 0 : i32
    %c0_i32_0 = arith.constant 0 : i32
    %c0_i32_1 = arith.constant 0 : i32
    return %c0_i32, %c0_i32_0 : i32, i32
  }
  func.func @transform_13(%arg0: i32) -> (i32, i32) {
    %c0_i32 = arith.constant 0 : i32
    %c0_i32_0 = arith.constant 0 : i32
    return %arg0, %c0_i32 : i32, i32
  }
}

</mosaic_0001>

<bundles_post_ra>
// kernel: tpu_custom_call.1
= control target key start
LH: loop header
LB: loop body
LE: loop exit
PB: predicated region body
PF: predicated region fallthrough
CT: control target
= control target key end

     0   :  { %18 = vsyncpa [#allocation3], 0  ;;  %s4130_s0 = inlined_call_operand.hbm [shape: f32[16,784], index: 0, kind: input, shape index: {}]   ;;  %s4131_s1 = inlined_call_operand.hbm [shape: bf16[784,512], index: 1, kind: input, shape index: {}]   ;;  %s4132_s2 = inlined_call_operand.vmem [shape: f32[1,512], index: 2, kind: input, shape index: {}]   ;;  %s4133_s3 = inlined_call_operand.hbm [shape: bf16[512,256], index: 3, kind: input, shape index: {}]   ;;  %s4134_s4 = inlined_call_operand.vmem [shape: f32[1,256], index: 4, kind: input, shape index: {}]   ;;  %s4135_s5 = inlined_call_operand.hbm [shape: bf16[256,128], index: 5, kind: input, shape index: {}]   ;;  %s4136_s6 = inlined_call_operand.vmem [shape: f32[1,128], index: 6, kind: input, shape index: {}]   ;;  %s4137_s7 = inlined_call_operand.hbm [shape: bf16[128,128], index: 7, kind: input, shape index: {}]   ;;  %s4138_s8 = inlined_call_operand.vmem [shape: f32[1,128], index: 8, kind: input, shape index: {}]   ;;  %s4139_s9 = inlined_call_operand.hbm [shape: bf16[128,128], index: 9, kind: input, shape index: {}]   ;;  %s4140_s10 = inlined_call_operand.vmem [shape: f32[1,128], index: 10, kind: input, shape index: {}]   ;;  %s4141_s11 = inlined_call_operand.hbm [shape: bf16[128,128], index: 11, kind: input, shape index: {}]   ;;  %s4142_s12 = inlined_call_operand.vmem [shape: f32[1,128], index: 12, kind: input, shape index: {}]   ;;  %s4143_s13 = inlined_call_operand.hbm [shape: bf16[16,128], index: 13, kind: output, shape index: {}]  }
   0x1   :  { %19 = vsyncpa [#allocation6], 0 }
   0x2   :  { %20 = vsyncpa [#allocation9], 0 }
   0x3   :  { %21 = vsyncpa [#allocation12], 0 }
   0x4   :  { %22 = vsyncpa [#allocation4], 0  ;;  %s3858_s25 = smov [#allocation5]   ;;  %s3672_s29 = scalar_lea.hbm %s4131_s1, 25088 }
   0x5   :  { %s40_s26 = sshll.u32 %s3858_s25, 4  ;;  %p3673_p0 = scmp.ne.s32.totalorder %s4131_s1, %s3672_s29  ;;  %s41_s26 = int_to_ptr.vmem [resolvable:$true] %s40_s26 }
   0x6   :  { %p3676_p1 = scmp.lt.u32.totalorder %s3672_s29, %s4131_s1 }
   0x8   :  { %p3678_p2 = pnand %p3676_p1, %p3673_p0 }
   0xa   :  { %3681 = shalt.err (!%p3678_p2)
}
   0xb   :  { %s3682_s17 = scalar_lea.vmem %s41_s26, 25088  ;;  %p3687_p4 = scmp.lt.s32.totalorder %s41_s26, %s41_s26 }
   0xc   :  { %p3683_p3 = scmp.ne.s32.totalorder %s41_s26, %s3682_s17  ;;  %p3688_p5 = scmp.lt.s32.totalorder %s3682_s17, %s3682_s17 }
   0xe   :  { %p3689_p6 = por %p3688_p5, %p3687_p4 }
  0x10   :  { %p3690_p7 = pnand %p3689_p6, %p3683_p3 }
  0x12   :  { %3693 = shalt.err (!%p3690_p7)
}
  0x13   :  { %s3859_s18 = smov 256   ;;  %s3860_s19 = smov 16  }
  0x14   :  { %46 = dma.hbm_to_vmem [thread:$0]  %s4131_s1, 25088, %s41_s26, [#allocation6], %s3859_s18, %s3859_s18, %s3860_s19  }
  0x15   :  { %s3861_s22 = smov [#allocation8]   ;;  %s3694_s27 = scalar_lea.hbm %s4135_s5, 2048 }
  0x16   :  { %s68_s23 = sshll.u32 %s3861_s22, 4  ;;  %p3695_p8 = scmp.ne.s32.totalorder %s4135_s5, %s3694_s27  ;;  %s69_s23 = int_to_ptr.vmem [resolvable:$true] %s68_s23 }
  0x17   :  { %p3698_p9 = scmp.lt.u32.totalorder %s3694_s27, %s4135_s5 }
  0x19   :  { %p3700_p10 = pnand %p3698_p9, %p3695_p8 }
  0x1b   :  { %3703 = shalt.err (!%p3700_p10)
}
  0x1c   :  { %s3704_s15 = scalar_lea.vmem %s69_s23, 2048  ;;  %p3709_p12 = scmp.lt.s32.totalorder %s69_s23, %s69_s23 }
  0x1d   :  { %p3705_p11 = scmp.ne.s32.totalorder %s69_s23, %s3704_s15  ;;  %p3710_p13 = scmp.lt.s32.totalorder %s3704_s15, %s3704_s15 }
  0x1f   :  { %p3711_p0 = por %p3710_p13, %p3709_p12 }
  0x21   :  { %p3712_p1 = pnand %p3711_p0, %p3705_p11 }
  0x23   :  { %3715 = shalt.err (!%p3712_p1)
}
  0x24   :  { %s3862_s1 = smov 64   ;;  %s3863_s26 = smov 4  }
  0x25   :  { %74 = dma.hbm_to_vmem [thread:$0]  %s4135_s5, 2048, %s69_s23, [#allocation9], %s3862_s1, %s3862_s1, %s3863_s26  }
  0x26   :  { %s3864_s18 = smov [#allocation11]   ;;  %s3865_s20 = smov [#allocation2]  }
  0x27   :  { %s96_s19 = sshll.u32 %s3864_s18, 4  ;;  %s28_s21 = sshll.u32 %s3865_s20, 4  ;;  %s97_s19 = int_to_ptr.vmem [resolvable:$true] %s96_s19  ;;  %s3974_s21 = int_to_ptr.vmem [resolvable:$true] %s28_s21 }
  0x28   :  { %s3716_s25 = scalar_lea.hbm %s4139_s9, 1024 }
  0x29   :  { %p3717_p2 = scmp.ne.s32.totalorder %s4139_s9, %s3716_s25  ;;  %p3720_p3 = scmp.lt.u32.totalorder %s3716_s25, %s4139_s9 }
  0x2b   :  { %p3722_p4 = pnand %p3720_p3, %p3717_p2 }
  0x2d   :  { %3725 = shalt.err (!%p3722_p4)
}
  0x2e   :  { %s3726_s5 = scalar_lea.vmem %s97_s19, 1024  ;;  %p3731_p6 = scmp.lt.s32.totalorder %s97_s19, %s97_s19 }
  0x2f   :  { %p3727_p5 = scmp.ne.s32.totalorder %s97_s19, %s3726_s5  ;;  %p3732_p7 = scmp.lt.s32.totalorder %s3726_s5, %s3726_s5 }
  0x31   :  { %p3733_p8 = por %p3732_p7, %p3731_p6 }
  0x33   :  { %p3734_p9 = pnand %p3733_p8, %p3727_p5 }
  0x35   :  { %3737 = shalt.err (!%p3734_p9)
}
  0x36   :  { %102 = dma.hbm_to_vmem [thread:$0]  %s4139_s9, 1024, %s97_s19, [#allocation12], %s3862_s1, %s3862_s1, %s3863_s26  }
  0x37   :  { %s3738_s17 = scalar_lea.hbm %s4130_s0, 1792 }
  0x38   :  { %p3739_p10 = scmp.ne.s32.totalorder %s4130_s0, %s3738_s17  ;;  %p3742_p11 = scmp.lt.u32.totalorder %s3738_s17, %s4130_s0 }
  0x3a   :  { %p3744_p12 = pnand %p3742_p11, %p3739_p10 }
  0x3c   :  { %3747 = shalt.err (!%p3744_p12)
}
  0x3d   :  { %s3748_s25 = scalar_lea.vmem %s3974_s21, 1792  ;;  %p3753_p0 = scmp.lt.s32.totalorder %s3974_s21, %s3974_s21 }
  0x3e   :  { %p3749_p13 = scmp.ne.s32.totalorder %s3974_s21, %s3748_s25  ;;  %p3754_p1 = scmp.lt.s32.totalorder %s3748_s25, %s3748_s25 }
  0x40   :  { %p3755_p2 = por %p3754_p1, %p3753_p0 }
  0x42   :  { %p3756_p3 = pnand %p3755_p2, %p3749_p13 }
  0x44   :  { %3759 = shalt.err (!%p3756_p3)
}
  0x45   :  { %s3866_s9 = smov 896   ;;  %s3867_s19 = smov 56  }
  0x46   :  { %34 = dma.hbm_to_vmem [thread:$0]  %s4130_s0, 1792, %s3974_s21, [#allocation3], %s3866_s9, %s3866_s9, %s3867_s19  }
  0x47   :  { %s3868_s29 = smov [#allocation7]   ;;  %s3760_s14 = scalar_lea.hbm %s4133_s3, 8192 }
  0x48   :  { %s54_s30 = sshll.u32 %s3868_s29, 4  ;;  %p3761_p4 = scmp.ne.s32.totalorder %s4133_s3, %s3760_s14  ;;  %s55_s30 = int_to_ptr.vmem [resolvable:$true] %s54_s30 }
  0x49   :  { %p3764_p5 = scmp.lt.u32.totalorder %s3760_s14, %s4133_s3 }
  0x4b   :  { %p3766_p6 = pnand %p3764_p5, %p3761_p4 }
  0x4d   :  { %3769 = shalt.err (!%p3766_p6)
}
  0x4e   :  { %s3770_s20 = scalar_lea.vmem %s55_s30, 8192  ;;  %p3775_p8 = scmp.lt.s32.totalorder %s55_s30, %s55_s30 }
  0x4f   :  { %p3771_p7 = scmp.ne.s32.totalorder %s55_s30, %s3770_s20  ;;  %p3776_p9 = scmp.lt.s32.totalorder %s3770_s20, %s3770_s20 }
  0x51   :  { %p3777_p10 = por %p3776_p9, %p3775_p8 }
  0x53   :  { %p3778_p11 = pnand %p3777_p10, %p3771_p7 }
  0x55   :  { %3781 = shalt.err (!%p3778_p11)
}
  0x56   :  { %s3869_s0 = smov 128   ;;  %s3870_s21 = smov 8  }
  0x57   :  { %60 = dma.hbm_to_vmem [thread:$0]  %s4133_s3, 8192, %s55_s30, [#allocation6], %s3869_s0, %s3869_s0, %s3870_s21  }
  0x58   :  { %s3871_s25 = smov [#allocation10]   ;;  %s3872_s19 = smov [#allocation13]  }
  0x59   :  { %s82_s9 = sshll.u32 %s3871_s25, 4  ;;  %s110_s27 = sshll.u32 %s3872_s19, 4  ;;  %s83_s9 = int_to_ptr.vmem [resolvable:$true] %s82_s9  ;;  %s111_s27 = int_to_ptr.vmem [resolvable:$true] %s110_s27 }
  0x5a   :  { %s3782_s5 = scalar_lea.hbm %s4137_s7, 1024 }
  0x5b   :  { %p3783_p12 = scmp.ne.s32.totalorder %s4137_s7, %s3782_s5  ;;  %p3786_p13 = scmp.lt.u32.totalorder %s3782_s5, %s4137_s7 }
  0x5d   :  { %p3788_p0 = pnand %p3786_p13, %p3783_p12 }
  0x5f   :  { %3791 = shalt.err (!%p3788_p0)
}
  0x60   :  { %s3792_s3 = scalar_lea.vmem %s83_s9, 1024  ;;  %p3797_p2 = scmp.lt.s32.totalorder %s83_s9, %s83_s9 }
  0x61   :  { %p3793_p1 = scmp.ne.s32.totalorder %s83_s9, %s3792_s3  ;;  %p3798_p3 = scmp.lt.s32.totalorder %s3792_s3, %s3792_s3 }
  0x63   :  { %p3799_p4 = por %p3798_p3, %p3797_p2 }
  0x65   :  { %p3800_p5 = pnand %p3799_p4, %p3793_p1 }
  0x67   :  { %3803 = shalt.err (!%p3800_p5)
}
  0x68   :  { %88 = dma.hbm_to_vmem [thread:$0]  %s4137_s7, 1024, %s83_s9, [#allocation9], %s3862_s1, %s3862_s1, %s3863_s26  }
  0x69   :  { %s3804_s0 = scalar_lea.hbm %s4141_s11, 1024 }
  0x6a   :  { %p3805_p6 = scmp.ne.s32.totalorder %s4141_s11, %s3804_s0  ;;  %p3808_p7 = scmp.lt.u32.totalorder %s3804_s0, %s4141_s11 }
  0x6c   :  { %p3810_p8 = pnand %p3808_p7, %p3805_p6 }
  0x6e   :  { %3813 = shalt.err (!%p3810_p8)
}
  0x6f   :  { %s3814_s19 = scalar_lea.vmem %s111_s27, 1024  ;;  %p3819_p10 = scmp.lt.s32.totalorder %s111_s27, %s111_s27 }
  0x70   :  { %p3815_p9 = scmp.ne.s32.totalorder %s111_s27, %s3814_s19  ;;  %p3820_p11 = scmp.lt.s32.totalorder %s3814_s19, %s3814_s19 }
  0x72   :  { %p3821_p12 = por %p3820_p11, %p3819_p10 }
  0x74   :  { %p3822_p13 = pnand %p3821_p12, %p3815_p9 }
  0x76   :  { %3825 = shalt.err (!%p3822_p13)
}
  0x77   :  { %116 = dma.hbm_to_vmem [thread:$0]  %s4141_s11, 1024, %s111_s27, [#allocation12], %s3862_s1, %s3862_s1, %s3863_s26  }
  0x78   :  { %3848 = dma.done.wait [#allocation3], 1792  }
  0x79   :  { %3849 = vsyncadd [#allocation3], 4294965504 }
  0x7a   :  { %3850 = dma.done.wait [#allocation6], 33280  }
  0x7b   :  { %3851 = vsyncadd [#allocation6], 4294934016 }
  0x7c   :  { %3852 = dma.done.wait [#allocation9], 3072  }
  0x7d   :  { %3853 = vsyncadd [#allocation9], 4294964224 }
  0x7e   :  { %3854 = dma.done.wait [#allocation12], 2048  }
  0x7f   :  { %3855 = vsyncadd [#allocation12], 4294965248  ;;  %v3242_v0 = vld [vmem:[#allocation5 + $0x4] ss:$16 sps:$4 sm:$0xff]   ;;  %v3244_v1 = vld [vmem:[#allocation5 + $0xc] ss:$16 sps:$4 sm:$0xff]  }
  0x80   :  { %1364 = vmatprep.subr.bf16.mxu0 %v3242_v0  ;;  %v3246_v2 = vld [vmem:[#allocation5] ss:$16 sps:$4 sm:$0xff]   ;;  %v3247_v3 = vld [vmem:[#allocation5 + $0x8] ss:$16 sps:$4 sm:$0xff]   ;;  %1536 = vmatprep.subr.bf16.mxu1 %v3244_v1  ;;  %v3248_v4 = vld [vmem:[#allocation5 + $0x24] ss:$16 sps:$4 sm:$0xff]  }
  0x81   :  { %1365 = vmatpush1.bf16.msra.mxu0 %v3246_v2  ;;  %1537 = vmatpush1.bf16.msra.mxu1 %v3247_v3  ;;  %v3250_v5 = vld [vmem:[#allocation5 + $0x2c] ss:$16 sps:$4 sm:$0xff]   ;;  %v3252_v6 = vld [vmem:[#allocation5 + $0x20] ss:$16 sps:$4 sm:$0xff]   ;;  %v3253_v7 = vld [vmem:[#allocation5 + $0x28] ss:$16 sps:$4 sm:$0xff]  }
  0x82   :  { %1366 = vmatprep.subr.bf16.mxu0 %v3248_v4  ;;  %1538 = vmatprep.subr.bf16.mxu1 %v3250_v5  ;;  %v3254_v8 = vld [vmem:[#allocation5 + $0x44] ss:$16 sps:$4 sm:$0xff]   ;;  %v3256_v9 = vld [vmem:[#allocation5 + $0x4c] ss:$16 sps:$4 sm:$0xff]   ;;  %v3258_v10 = vld [vmem:[#allocation5 + $0x40] ss:$16 sps:$4 sm:$0xff]  }
  0x83   :  { %v3259_v11 = vld [vmem:[#allocation5 + $0x48] ss:$16 sps:$4 sm:$0xff]   ;;  %v3260_v12 = vld [vmem:[#allocation5 + $0x64] ss:$16 sps:$4 sm:$0xff]   ;;  %v3262_v13 = vld [vmem:[#allocation5 + $0x6c] ss:$16 sps:$4 sm:$0xff]  }
  0x84   :  { %v3264_v14 = vld [vmem:[#allocation5 + $0x60] ss:$16 sps:$4 sm:$0xff]   ;;  %v3265_v15 = vld [vmem:[#allocation5 + $0x68] ss:$16 sps:$4 sm:$0xff]   ;;  %v3266_v16 = vld [vmem:[#allocation5 + $0x84] ss:$16 sps:$4 sm:$0xff]  }
  0x85   :  { %1367 = vmatpush1.bf16.msra.mxu0 %v3252_v6  ;;  %1539 = vmatpush1.bf16.msra.mxu1 %v3253_v7  ;;  %v3268_v17 = vld [vmem:[#allocation5 + $0x8c] ss:$16 sps:$4 sm:$0xff]   ;;  %v3270_v18 = vld [vmem:[#allocation5 + $0x80] ss:$16 sps:$4 sm:$0xff]   ;;  %v3271_v19 = vld [vmem:[#allocation5 + $0x88] ss:$16 sps:$4 sm:$0xff]  }
  0x86   :  { %1368 = vmatprep.subr.bf16.mxu0 %v3254_v8  ;;  %1540 = vmatprep.subr.bf16.mxu1 %v3256_v9  ;;  %v3272_v20 = vld [vmem:[#allocation5 + $0xa4] ss:$16 sps:$4 sm:$0xff]   ;;  %v3274_v21 = vld [vmem:[#allocation5 + $0xac] ss:$16 sps:$4 sm:$0xff]   ;;  %v3276_v22 = vld [vmem:[#allocation5 + $0xa0] ss:$16 sps:$4 sm:$0xff]  }
  0x87   :  { %v3277_v23 = vld [vmem:[#allocation5 + $0xa8] ss:$16 sps:$4 sm:$0xff]   ;;  %v3278_v24 = vld [vmem:[#allocation5 + $0xc4] ss:$16 sps:$4 sm:$0xff]   ;;  %v3280_v25 = vld [vmem:[#allocation5 + $0xcc] ss:$16 sps:$4 sm:$0xff]  }
  0x88   :  { %v3282_v26 = vld [vmem:[#allocation5 + $0xc0] ss:$16 sps:$4 sm:$0xff]   ;;  %v3283_v27 = vld [vmem:[#allocation5 + $0xc8] ss:$16 sps:$4 sm:$0xff]   ;;  %v3284_v28 = vld [vmem:[#allocation5 + $0xe4] ss:$16 sps:$4 sm:$0xff]  }
  0x89   :  { %1369 = vmatpush1.bf16.msra.mxu0 %v3258_v10  ;;  %1541 = vmatpush1.bf16.msra.mxu1 %v3259_v11  ;;  %v3286_v29 = vld [vmem:[#allocation5 + $0xec] ss:$16 sps:$4 sm:$0xff]   ;;  %v3288_v30 = vld [vmem:[#allocation5 + $0xe0] ss:$16 sps:$4 sm:$0xff]   ;;  %v3289_v31 = vld [vmem:[#allocation5 + $0xe8] ss:$16 sps:$4 sm:$0xff]  }
  0x8a   :  { %1370 = vmatprep.subr.bf16.mxu0 %v3260_v12  ;;  %1542 = vmatprep.subr.bf16.mxu1 %v3262_v13  ;;  %v3290_v32 = vld [vmem:[#allocation5 + $0x104] ss:$16 sps:$4 sm:$0xff]   ;;  %v3292_v33 = vld [vmem:[#allocation5 + $0x10c] ss:$16 sps:$4 sm:$0xff]   ;;  %v3294_v34 = vld [vmem:[#allocation5 + $0x100] ss:$16 sps:$4 sm:$0xff]  }
  0x8b   :  { %v3295_v35 = vld [vmem:[#allocation5 + $0x108] ss:$16 sps:$4 sm:$0xff]   ;;  %v3296_v36 = vld [vmem:[#allocation5 + $0x124] ss:$16 sps:$4 sm:$0xff]   ;;  %v3298_v37 = vld [vmem:[#allocation5 + $0x12c] ss:$16 sps:$4 sm:$0xff]  }
  0x8c   :  { %v3300_v38 = vld [vmem:[#allocation5 + $0x120] ss:$16 sps:$4 sm:$0xff]   ;;  %v3301_v39 = vld [vmem:[#allocation5 + $0x128] ss:$16 sps:$4 sm:$0xff]   ;;  %v3302_v40 = vld [vmem:[#allocation5 + $0x144] ss:$16 sps:$4 sm:$0xff]  }
  0x8d   :  { %1371 = vmatpush1.bf16.msra.mxu0 %v3264_v14  ;;  %1543 = vmatpush1.bf16.msra.mxu1 %v3265_v15  ;;  %v3304_v41 = vld [vmem:[#allocation5 + $0x14c] ss:$16 sps:$4 sm:$0xff]   ;;  %v3306_v42 = vld [vmem:[#allocation5 + $0x140] ss:$16 sps:$4 sm:$0xff]   ;;  %v3307_v43 = vld [vmem:[#allocation5 + $0x148] ss:$16 sps:$4 sm:$0xff]  }
  0x8e   :  { %1372 = vmatprep.subr.bf16.mxu0 %v3266_v16  ;;  %1544 = vmatprep.subr.bf16.mxu1 %v3268_v17  ;;  %v3308_v44 = vld [vmem:[#allocation5 + $0x164] ss:$16 sps:$4 sm:$0xff]   ;;  %v3310_v45 = vld [vmem:[#allocation5 + $0x16c] ss:$16 sps:$4 sm:$0xff]   ;;  %v3312_v48 = vld [vmem:[#allocation5 + $0x160] ss:$16 sps:$4 sm:$0xff]  }
  0x8f   :  { %v142_v46 = vld [vmem:[#allocation2 + $0x8] sm:$0xff]  ;;  %v149_v47 = vld [vmem:[#allocation2 + $0x40] sm:$0xff]  ;;  %v148_v5 = vld [vmem:[#allocation2 + $0x38] sm:$0xff]  ;;  %vm1360_vm0 = vcmask 130048   ;;  %vm3875_vm1 = vmmov 0   ;;  %s3876_s16 = smov [#allocation14]  }
  0x90   :  { %v3313_v49 = vld [vmem:[#allocation5 + $0x168] ss:$16 sps:$4 sm:$0xff]   ;;  %v156_v50 = vpack.c.bf16 %v149_v47, %v142_v46  ;;  %v3314_v51 = vld [vmem:[#allocation5 + $0x184] ss:$16 sps:$4 sm:$0xff]   ;;  %v3316_v52 = vld [vmem:[#allocation5 + $0x18c] ss:$16 sps:$4 sm:$0xff]  }
  0x91   :  { %1373 = vmatpush1.bf16.msra.mxu0 %v3270_v18  ;;  %1545 = vmatpush1.bf16.msra.mxu1 %v3271_v19  ;;  %v3318_v53 = vld [vmem:[#allocation5 + $0x180] ss:$16 sps:$4 sm:$0xff]   ;;  %v3319_v54 = vld [vmem:[#allocation5 + $0x188] ss:$16 sps:$4 sm:$0xff]   ;;  %v3320_v55 = vld [vmem:[#allocation5 + $0x1a4] ss:$16 sps:$4 sm:$0xff]  }
  0x92   :  { %1374 = vmatprep.subr.bf16.mxu0 %v3272_v20  ;;  %1546 = vmatprep.subr.bf16.mxu1 %v3274_v21  ;;  %v3322_v56 = vld [vmem:[#allocation5 + $0x1ac] ss:$16 sps:$4 sm:$0xff]   ;;  %v3324_v57 = vld [vmem:[#allocation5 + $0x1a0] ss:$16 sps:$4 sm:$0xff]   ;;  %v3325_v58 = vld [vmem:[#allocation5 + $0x1a8] ss:$16 sps:$4 sm:$0xff]  }
  0x93   :  { %1396 = vmatprep.mubr.bf16.mxu0 %v156_v50  ;;  %1568 = vmatprep.mubr.bf16.mxu1 %v156_v50  ;;  %v3326_v59 = vld [vmem:[#allocation5 + $0x1c4] ss:$16 sps:$4 sm:$0xff]   ;;  %v3328_v60 = vld [vmem:[#allocation5 + $0x1cc] ss:$16 sps:$4 sm:$0xff]   ;;  %v3330_v61 = vld [vmem:[#allocation5 + $0x1c0] ss:$16 sps:$4 sm:$0xff]  }
  0x94   :  { %v3331_v62 = vld [vmem:[#allocation5 + $0x1c8] ss:$16 sps:$4 sm:$0xff]   ;;  %v3332_v63 = vld [vmem:[#allocation5 + $0x1e4] ss:$16 sps:$4 sm:$0xff]   ;;  %v3334_v0 = vld [vmem:[#allocation5 + $0x1ec] ss:$16 sps:$4 sm:$0xff]  }
  0x95   :  { %1375 = vmatpush1.bf16.msra.mxu0 %v3276_v22  ;;  %1547 = vmatpush1.bf16.msra.mxu1 %v3277_v23  ;;  %v3336_v1 = vld [vmem:[#allocation5 + $0x1e0] ss:$16 sps:$4 sm:$0xff]   ;;  %v3337_v2 = vld [vmem:[#allocation5 + $0x1e8] ss:$16 sps:$4 sm:$0xff]   ;;  %v3340_v3 = vld [vmem:[#allocation5 + $0x204] ss:$16 sps:$4 sm:$0xff]  }
  0x96   :  { %1376 = vmatprep.subr.bf16.mxu0 %v3278_v24  ;;  %1548 = vmatprep.subr.bf16.mxu1 %v3280_v25  ;;  %v141_v4 = vld [vmem:[#allocation2] sm:$0xff]  ;;  %v3343_v6 = vld [vmem:[#allocation5 + $0x20c] ss:$16 sps:$4 sm:$0xff]   ;;  %v3341_v8 = vld [vmem:[#allocation5 + $0x208] ss:$16 sps:$4 sm:$0xff]   ;;  %s2744_s3 = sshll.u32 %s3876_s16, 4  ;;  %s2745_s3 = int_to_ptr.vmem [resolvable:$true] %s2744_s3 }
  0x97   :  { %v3338_v7 = vld [vmem:[#allocation5 + $0x200] ss:$16 sps:$4 sm:$0xff]   ;;  %v155_v9 = vpack.c.bf16 %v148_v5, %v141_v4  ;;  %v3346_v10 = vld [vmem:[#allocation5 + $0x224] ss:$16 sps:$4 sm:$0xff]   ;;  %v3349_v11 = vld [vmem:[#allocation5 + $0x22c] ss:$16 sps:$4 sm:$0xff]   ;;  %p3831_p1 = scmp.lt.s32.totalorder %s2745_s3, %s2745_s3 }
  0x98   :  { %v3344_v12 = vld [vmem:[#allocation5 + $0x220] ss:$16 sps:$4 sm:$0xff]   ;;  %v3347_v13 = vld [vmem:[#allocation5 + $0x228] ss:$16 sps:$4 sm:$0xff]   ;;  %v3352_v14 = vld [vmem:[#allocation5 + $0x244] ss:$16 sps:$4 sm:$0xff]  }
  0x99   :  { %1377 = vmatpush1.bf16.msra.mxu0 %v3282_v26  ;;  %1549 = vmatpush1.bf16.msra.mxu1 %v3283_v27  ;;  %v3355_v15 = vld [vmem:[#allocation5 + $0x24c] ss:$16 sps:$4 sm:$0xff]   ;;  %v3350_v16 = vld [vmem:[#allocation5 + $0x240] ss:$16 sps:$4 sm:$0xff]   ;;  %v3353_v17 = vld [vmem:[#allocation5 + $0x248] ss:$16 sps:$4 sm:$0xff]  }
  0x9a   :  { %1378 = vmatprep.subr.bf16.mxu0 %v3284_v28  ;;  %1550 = vmatprep.subr.bf16.mxu1 %v3286_v29  ;;  %v3358_v18 = vld [vmem:[#allocation5 + $0x264] ss:$16 sps:$4 sm:$0xff]   ;;  %v3361_v19 = vld [vmem:[#allocation5 + $0x26c] ss:$16 sps:$4 sm:$0xff]   ;;  %v3356_v20 = vld [vmem:[#allocation5 + $0x260] ss:$16 sps:$4 sm:$0xff]  }
  0x9b   :  { %v3359_v21 = vld [vmem:[#allocation5 + $0x268] ss:$16 sps:$4 sm:$0xff]   ;;  %v3364_v22 = vld [vmem:[#allocation5 + $0x284] ss:$16 sps:$4 sm:$0xff]   ;;  %v3367_v23 = vld [vmem:[#allocation5 + $0x28c] ss:$16 sps:$4 sm:$0xff]  }
  0x9c   :  { %v3362_v24 = vld [vmem:[#allocation5 + $0x280] ss:$16 sps:$4 sm:$0xff]   ;;  %v3365_v25 = vld [vmem:[#allocation5 + $0x288] ss:$16 sps:$4 sm:$0xff]   ;;  %v3370_v26 = vld [vmem:[#allocation5 + $0x2a4] ss:$16 sps:$4 sm:$0xff]  }
  0x9d   :  { %1379 = vmatpush1.bf16.msra.mxu0 %v3288_v30  ;;  %1551 = vmatpush1.bf16.msra.mxu1 %v3289_v31  ;;  %v3373_v27 = vld [vmem:[#allocation5 + $0x2ac] ss:$16 sps:$4 sm:$0xff]   ;;  %v3368_v28 = vld [vmem:[#allocation5 + $0x2a0] ss:$16 sps:$4 sm:$0xff]   ;;  %v3371_v29 = vld [vmem:[#allocation5 + $0x2a8] ss:$16 sps:$4 sm:$0xff]  }
  0x9e   :  { %1380 = vmatprep.subr.bf16.mxu0 %v3290_v32  ;;  %1552 = vmatprep.subr.bf16.mxu1 %v3292_v33  ;;  %v3376_v30 = vld [vmem:[#allocation5 + $0x2c4] ss:$16 sps:$4 sm:$0xff]   ;;  %v3379_v31 = vld [vmem:[#allocation5 + $0x2cc] ss:$16 sps:$4 sm:$0xff]   ;;  %v3392_v47 = vld [vmem:[#allocation5 + $0x320] ss:$16 sps:$4 sm:$0xff]  }
  0x9f   :  { %v144_v32 = vld [vmem:[#allocation2 + $0x18] sm:$0xff]  ;;  %v151_v33 = vld [vmem:[#allocation2 + $0x50] sm:$0xff] }
  0xa0   :  { %v3397_v46 = vld [vmem:[#allocation5 + $0x32c] ss:$16 sps:$4 sm:$0xff]   ;;  %v3425_v4 = vld [vmem:[#allocation5 + $0x3c8] ss:$16 sps:$4 sm:$0xff]   ;;  %v3430_v5 = vld [vmem:[#allocation5 + $0x3e4] ss:$16 sps:$4 sm:$0xff]  }
  0xa1   :  { %1381 = vmatpush1.bf16.msra.mxu0 %v3294_v34  ;;  %1553 = vmatpush1.bf16.msra.mxu1 %v3295_v35  ;;  %v3374_v34 = vld [vmem:[#allocation5 + $0x2c0] ss:$16 sps:$4 sm:$0xff]   ;;  %v3377_v35 = vld [vmem:[#allocation5 + $0x2c8] ss:$16 sps:$4 sm:$0xff]   ;;  %v3403_v50 = vld [vmem:[#allocation5 + $0x34c] ss:$16 sps:$4 sm:$0xff]  }
  0xa2   :  { %1382 = vmatprep.subr.bf16.mxu0 %v3296_v36  ;;  %1554 = vmatprep.subr.bf16.mxu1 %v3298_v37  ;;  %v158_v36 = vpack.c.bf16 %v151_v33, %v144_v32  ;;  %v3382_v37 = vld [vmem:[#allocation5 + $0x2e4] ss:$16 sps:$4 sm:$0xff]   ;;  %v3463_v32 = vld [vmem:[#allocation5 + $0x48c] ss:$16 sps:$4 sm:$0xff]   ;;  %v3458_v33 = vld [vmem:[#allocation5 + $0x480] ss:$16 sps:$4 sm:$0xff]  }
  0xa5   :  { %1383 = vmatpush1.bf16.msra.mxu0 %v3300_v38  ;;  %1555 = vmatpush1.bf16.msra.mxu1 %v3301_v39  ;;  %v3385_v38 = vld [vmem:[#allocation5 + $0x2ec] ss:$16 sps:$4 sm:$0xff]   ;;  %v3380_v39 = vld [vmem:[#allocation5 + $0x2e0] ss:$16 sps:$4 sm:$0xff]  }
  0xa6   :  { %1384 = vmatprep.subr.bf16.mxu0 %v3302_v40  ;;  %1556 = vmatprep.subr.bf16.mxu1 %v3304_v41  ;;  %v3383_v40 = vld [vmem:[#allocation5 + $0x2e8] ss:$16 sps:$4 sm:$0xff]   ;;  %v3388_v41 = vld [vmem:[#allocation5 + $0x304] ss:$16 sps:$4 sm:$0xff]  }
  0xa9   :  { %1385 = vmatpush1.bf16.msra.mxu0 %v3306_v42  ;;  %1557 = vmatpush1.bf16.msra.mxu1 %v3307_v43  ;;  %v3391_v42 = vld [vmem:[#allocation5 + $0x30c] ss:$16 sps:$4 sm:$0xff]   ;;  %v3386_v43 = vld [vmem:[#allocation5 + $0x300] ss:$16 sps:$4 sm:$0xff]  }
  0xaa   :  { %1386 = vmatprep.subr.bf16.mxu0 %v3308_v44  ;;  %1558 = vmatprep.subr.bf16.mxu1 %v3310_v45  ;;  %v3389_v44 = vld [vmem:[#allocation5 + $0x308] ss:$16 sps:$4 sm:$0xff]   ;;  %v3394_v45 = vld [vmem:[#allocation5 + $0x324] ss:$16 sps:$4 sm:$0xff]  }
  0xad   :  { %1387 = vmatpush1.bf16.msra.mxu0 %v3312_v48  ;;  %1559 = vmatpush1.bf16.msra.mxu1 %v3313_v49  ;;  %v3395_v48 = vld [vmem:[#allocation5 + $0x328] ss:$16 sps:$4 sm:$0xff]   ;;  %v3400_v49 = vld [vmem:[#allocation5 + $0x344] ss:$16 sps:$4 sm:$0xff]  }
  0xae   :  { %1388 = vmatprep.subr.bf16.mxu0 %v3314_v51  ;;  %1560 = vmatprep.subr.bf16.mxu1 %v3316_v52  ;;  %v3398_v51 = vld [vmem:[#allocation5 + $0x340] ss:$16 sps:$4 sm:$0xff]   ;;  %v3401_v52 = vld [vmem:[#allocation5 + $0x348] ss:$16 sps:$4 sm:$0xff]  }
  0xb1   :  { %1389 = vmatpush1.bf16.msra.mxu0 %v3318_v53  ;;  %1561 = vmatpush1.bf16.msra.mxu1 %v3319_v54  ;;  %v3406_v53 = vld [vmem:[#allocation5 + $0x364] ss:$16 sps:$4 sm:$0xff]   ;;  %v3409_v54 = vld [vmem:[#allocation5 + $0x36c] ss:$16 sps:$4 sm:$0xff]  }
  0xb2   :  { %1390 = vmatprep.subr.bf16.mxu0 %v3320_v55  ;;  %1562 = vmatprep.subr.bf16.mxu1 %v3322_v56  ;;  %v3404_v55 = vld [vmem:[#allocation5 + $0x360] ss:$16 sps:$4 sm:$0xff]   ;;  %v3407_v56 = vld [vmem:[#allocation5 + $0x368] ss:$16 sps:$4 sm:$0xff]  }
  0xb5   :  { %1391 = vmatpush1.bf16.msra.mxu0 %v3324_v57  ;;  %1563 = vmatpush1.bf16.msra.mxu1 %v3325_v58  ;;  %v3412_v57 = vld [vmem:[#allocation5 + $0x384] ss:$16 sps:$4 sm:$0xff]   ;;  %v3415_v58 = vld [vmem:[#allocation5 + $0x38c] ss:$16 sps:$4 sm:$0xff]  }
  0xb6   :  { %1392 = vmatprep.subr.bf16.mxu0 %v3326_v59  ;;  %1564 = vmatprep.subr.bf16.mxu1 %v3328_v60  ;;  %v3410_v59 = vld [vmem:[#allocation5 + $0x380] ss:$16 sps:$4 sm:$0xff]   ;;  %v3413_v60 = vld [vmem:[#allocation5 + $0x388] ss:$16 sps:$4 sm:$0xff]  }
  0xb9   :  { %1393 = vmatpush1.bf16.msra.mxu0 %v3330_v61  ;;  %1565 = vmatpush1.bf16.msra.mxu1 %v3331_v62  ;;  %v3418_v61 = vld [vmem:[#allocation5 + $0x3a4] ss:$16 sps:$4 sm:$0xff]   ;;  %v3421_v62 = vld [vmem:[#allocation5 + $0x3ac] ss:$16 sps:$4 sm:$0xff]  }
  0xba   :  { %1394 = vmatprep.subr.bf16.mxu0 %v3332_v63  ;;  %1566 = vmatprep.subr.bf16.mxu1 %v3334_v0  ;;  %v3416_v63 = vld [vmem:[#allocation5 + $0x3a0] ss:$16 sps:$4 sm:$0xff]   ;;  %v3419_v0 = vld [vmem:[#allocation5 + $0x3a8] ss:$16 sps:$4 sm:$0xff]  }
  0xbd   :  { %1395 = vmatpush1.bf16.msra.mxu0 %v3336_v1  ;;  %1567 = vmatpush1.bf16.msra.mxu1 %v3337_v2  ;;  %v3424_v1 = vld [vmem:[#allocation5 + $0x3c4] ss:$16 sps:$4 sm:$0xff]   ;;  %v3427_v2 = vld [vmem:[#allocation5 + $0x3cc] ss:$16 sps:$4 sm:$0xff]  }
  0xbe   :  { %1407 = vmatprep.subr.bf16.mxu0 %v3340_v3  ;;  %1579 = vmatprep.subr.bf16.mxu1 %v3343_v6  ;;  %v3422_v3 = vld [vmem:[#allocation5 + $0x3c0] ss:$16 sps:$4 sm:$0xff]   ;;  %v3433_v6 = vld [vmem:[#allocation5 + $0x3ec] ss:$16 sps:$4 sm:$0xff]  }
  0xc0   :  { %1397 = vmatmul.mubr.bf16.vlgmr.msra.gmra.mrb[0].mxu0 %v155_v9  ;;  %1569 = vmatmul.mubr.bf16.vlgmr.msra.gmra.mrb[0].mxu1 %v155_v9  ;;  %v3436_v9 = vld [vmem:[#allocation5 + $0x404] ss:$16 sps:$4 sm:$0xff]  }
  0xc1   :  { %1408 = vmatpush1.bf16.msra.mxu0 %v3338_v7  ;;  %1580 = vmatpush1.bf16.msra.mxu1 %v3341_v8  ;;  %v3428_v7 = vld [vmem:[#allocation5 + $0x3e0] ss:$16 sps:$4 sm:$0xff]   ;;  %v3431_v8 = vld [vmem:[#allocation5 + $0x3e8] ss:$16 sps:$4 sm:$0xff]  }
  0xc2   :  { %1409 = vmatprep.subr.bf16.mxu0 %v3346_v10  ;;  %1581 = vmatprep.subr.bf16.mxu1 %v3349_v11  ;;  %v143_v10 = vld [vmem:[#allocation2 + $0x10] sm:$0xff]  ;;  %v150_v11 = vld [vmem:[#allocation2 + $0x48] sm:$0xff] }
  0xc3   :  { %1439 = vmatprep.mubr.bf16.mxu0 %v158_v36  ;;  %1611 = vmatprep.mubr.bf16.mxu1 %v158_v36  ;;  %v3469_v36 = vld [vmem:[#allocation5 + $0x4ac] ss:$16 sps:$4 sm:$0xff]  }
  0xc5   :  { %1410 = vmatpush1.bf16.msra.mxu0 %v3344_v12  ;;  %1582 = vmatpush1.bf16.msra.mxu1 %v3347_v13  ;;  %v3439_v12 = vld [vmem:[#allocation5 + $0x40c] ss:$16 sps:$4 sm:$0xff]   ;;  %v3434_v13 = vld [vmem:[#allocation5 + $0x400] ss:$16 sps:$4 sm:$0xff]  }
  0xc6   :  { %1411 = vmatprep.subr.bf16.mxu0 %v3352_v14  ;;  %1583 = vmatprep.subr.bf16.mxu1 %v3355_v15  ;;  %v3437_v14 = vld [vmem:[#allocation5 + $0x408] ss:$16 sps:$4 sm:$0xff]   ;;  %v157_v15 = vpack.c.bf16 %v150_v11, %v143_v10  ;;  %v3526_v11 = vld [vmem:[#allocation5 + $0x5e4] ss:$16 sps:$4 sm:$0xff]  }
  0xc7   :  { %v3521_v10 = vld [vmem:[#allocation5 + $0x5c8] ss:$16 sps:$4 sm:$0xff]  }
  0xc9   :  { %1412 = vmatpush1.bf16.msra.mxu0 %v3350_v16  ;;  %1584 = vmatpush1.bf16.msra.mxu1 %v3353_v17  ;;  %v3442_v16 = vld [vmem:[#allocation5 + $0x424] ss:$16 sps:$4 sm:$0xff]   ;;  %v3445_v17 = vld [vmem:[#allocation5 + $0x42c] ss:$16 sps:$4 sm:$0xff]  }
  0xca   :  { %1413 = vmatprep.subr.bf16.mxu0 %v3358_v18  ;;  %1585 = vmatprep.subr.bf16.mxu1 %v3361_v19  ;;  %v146_v18 = vld [vmem:[#allocation2 + $0x28] sm:$0xff]  ;;  %v3440_v19 = vld [vmem:[#allocation5 + $0x420] ss:$16 sps:$4 sm:$0xff]  }
  0xcd   :  { %1414 = vmatpush1.bf16.msra.mxu0 %v3356_v20  ;;  %1586 = vmatpush1.bf16.msra.mxu1 %v3359_v21  ;;  %v3443_v20 = vld [vmem:[#allocation5 + $0x428] ss:$16 sps:$4 sm:$0xff]   ;;  %v153_v21 = vld [vmem:[#allocation2 + $0x60] sm:$0xff] }
  0xce   :  { %1415 = vmatprep.subr.bf16.mxu0 %v3364_v22  ;;  %1587 = vmatprep.subr.bf16.mxu1 %v3367_v23  ;;  %v3448_v22 = vld [vmem:[#allocation5 + $0x444] ss:$16 sps:$4 sm:$0xff]   ;;  %v160_v23 = vpack.c.bf16 %v153_v21, %v146_v18  ;;  %v3535_v18 = vld [vmem:[#allocation5 + $0x60c] ss:$16 sps:$4 sm:$0xff]  }
  0xd1   :  { %1416 = vmatpush1.bf16.msra.mxu0 %v3362_v24  ;;  %1588 = vmatpush1.bf16.msra.mxu1 %v3365_v25  ;;  %v3451_v24 = vld [vmem:[#allocation5 + $0x44c] ss:$16 sps:$4 sm:$0xff]   ;;  %v3446_v25 = vld [vmem:[#allocation5 + $0x440] ss:$16 sps:$4 sm:$0xff]  }
  0xd2   :  { %1417 = vmatprep.subr.bf16.mxu0 %v3370_v26  ;;  %1589 = vmatprep.subr.bf16.mxu1 %v3373_v27  ;;  %v3449_v26 = vld [vmem:[#allocation5 + $0x448] ss:$16 sps:$4 sm:$0xff]   ;;  %v3454_v27 = vld [vmem:[#allocation5 + $0x464] ss:$16 sps:$4 sm:$0xff]  }
  0xd5   :  { %1418 = vmatpush1.bf16.msra.mxu0 %v3368_v28  ;;  %1590 = vmatpush1.bf16.msra.mxu1 %v3371_v29  ;;  %v3457_v28 = vld [vmem:[#allocation5 + $0x46c] ss:$16 sps:$4 sm:$0xff]   ;;  %v3452_v29 = vld [vmem:[#allocation5 + $0x460] ss:$16 sps:$4 sm:$0xff]  }
  0xd6   :  { %1419 = vmatprep.subr.bf16.mxu0 %v3376_v30  ;;  %1591 = vmatprep.subr.bf16.mxu1 %v3379_v31  ;;  %v3455_v30 = vld [vmem:[#allocation5 + $0x468] ss:$16 sps:$4 sm:$0xff]   ;;  %v3460_v31 = vld [vmem:[#allocation5 + $0x484] ss:$16 sps:$4 sm:$0xff]  }
  0xd9   :  { %1420 = vmatpush1.bf16.msra.mxu0 %v3374_v34  ;;  %1592 = vmatpush1.bf16.msra.mxu1 %v3377_v35  ;;  %v3461_v34 = vld [vmem:[#allocation5 + $0x488] ss:$16 sps:$4 sm:$0xff]   ;;  %v3466_v35 = vld [vmem:[#allocation5 + $0x4a4] ss:$16 sps:$4 sm:$0xff]  }
  0xda   :  { %1421 = vmatprep.subr.bf16.mxu0 %v3382_v37  ;;  %1593 = vmatprep.subr.bf16.mxu1 %v3385_v38  ;;  %v3464_v37 = vld [vmem:[#allocation5 + $0x4a0] ss:$16 sps:$4 sm:$0xff]   ;;  %v3467_v38 = vld [vmem:[#allocation5 + $0x4a8] ss:$16 sps:$4 sm:$0xff]  }
  0xdd   :  { %1422 = vmatpush1.bf16.msra.mxu0 %v3380_v39  ;;  %1594 = vmatpush1.bf16.msra.mxu1 %v3383_v40  ;;  %v3472_v39 = vld [vmem:[#allocation5 + $0x4c4] ss:$16 sps:$4 sm:$0xff]   ;;  %v3475_v40 = vld [vmem:[#allocation5 + $0x4cc] ss:$16 sps:$4 sm:$0xff]  }
  0xde   :  { %1423 = vmatprep.subr.bf16.mxu0 %v3388_v41  ;;  %1595 = vmatprep.subr.bf16.mxu1 %v3391_v42  ;;  %v3470_v41 = vld [vmem:[#allocation5 + $0x4c0] ss:$16 sps:$4 sm:$0xff]   ;;  %v3473_v42 = vld [vmem:[#allocation5 + $0x4c8] ss:$16 sps:$4 sm:$0xff]  }
  0xe1   :  { %1424 = vmatpush1.bf16.msra.mxu0 %v3386_v43  ;;  %1596 = vmatpush1.bf16.msra.mxu1 %v3389_v44  ;;  %v3478_v43 = vld [vmem:[#allocation5 + $0x4e4] ss:$16 sps:$4 sm:$0xff]   ;;  %v3481_v44 = vld [vmem:[#allocation5 + $0x4ec] ss:$16 sps:$4 sm:$0xff]  }
  0xe2   :  { %1425 = vmatprep.subr.bf16.mxu0 %v3394_v45  ;;  %1597 = vmatprep.subr.bf16.mxu1 %v3397_v46  ;;  %v3476_v45 = vld [vmem:[#allocation5 + $0x4e0] ss:$16 sps:$4 sm:$0xff]   ;;  %v3479_v46 = vld [vmem:[#allocation5 + $0x4e8] ss:$16 sps:$4 sm:$0xff]  }
  0xe5   :  { %1426 = vmatpush1.bf16.msra.mxu0 %v3392_v47  ;;  %1598 = vmatpush1.bf16.msra.mxu1 %v3395_v48  ;;  %v3484_v47 = vld [vmem:[#allocation5 + $0x504] ss:$16 sps:$4 sm:$0xff]   ;;  %v3487_v48 = vld [vmem:[#allocation5 + $0x50c] ss:$16 sps:$4 sm:$0xff]  }
  0xe6   :  { %1427 = vmatprep.subr.bf16.mxu0 %v3400_v49  ;;  %1599 = vmatprep.subr.bf16.mxu1 %v3403_v50  ;;  %v3482_v49 = vld [vmem:[#allocation5 + $0x500] ss:$16 sps:$4 sm:$0xff]   ;;  %v3485_v50 = vld [vmem:[#allocation5 + $0x508] ss:$16 sps:$4 sm:$0xff]  }
  0xe9   :  { %1428 = vmatpush1.bf16.msra.mxu0 %v3398_v51  ;;  %1600 = vmatpush1.bf16.msra.mxu1 %v3401_v52  ;;  %v3490_v51 = vld [vmem:[#allocation5 + $0x524] ss:$16 sps:$4 sm:$0xff]   ;;  %v3493_v52 = vld [vmem:[#allocation5 + $0x52c] ss:$16 sps:$4 sm:$0xff]  }
  0xea   :  { %1429 = vmatprep.subr.bf16.mxu0 %v3406_v53  ;;  %1601 = vmatprep.subr.bf16.mxu1 %v3409_v54  ;;  %v3488_v53 = vld [vmem:[#allocation5 + $0x520] ss:$16 sps:$4 sm:$0xff]   ;;  %v3491_v54 = vld [vmem:[#allocation5 + $0x528] ss:$16 sps:$4 sm:$0xff]  }
  0xed   :  { %1430 = vmatpush1.bf16.msra.mxu0 %v3404_v55  ;;  %1602 = vmatpush1.bf16.msra.mxu1 %v3407_v56  ;;  %v3496_v55 = vld [vmem:[#allocation5 + $0x544] ss:$16 sps:$4 sm:$0xff]   ;;  %v3499_v56 = vld [vmem:[#allocation5 + $0x54c] ss:$16 sps:$4 sm:$0xff]  }
  0xee   :  { %1431 = vmatprep.subr.bf16.mxu0 %v3412_v57  ;;  %1603 = vmatprep.subr.bf16.mxu1 %v3415_v58  ;;  %v3494_v57 = vld [vmem:[#allocation5 + $0x540] ss:$16 sps:$4 sm:$0xff]   ;;  %v3497_v58 = vld [vmem:[#allocation5 + $0x548] ss:$16 sps:$4 sm:$0xff]  }
  0xf1   :  { %1432 = vmatpush1.bf16.msra.mxu0 %v3410_v59  ;;  %1604 = vmatpush1.bf16.msra.mxu1 %v3413_v60  ;;  %v3502_v59 = vld [vmem:[#allocation5 + $0x564] ss:$16 sps:$4 sm:$0xff]   ;;  %v3505_v60 = vld [vmem:[#allocation5 + $0x56c] ss:$16 sps:$4 sm:$0xff]  }
  0xf2   :  { %1433 = vmatprep.subr.bf16.mxu0 %v3418_v61  ;;  %1605 = vmatprep.subr.bf16.mxu1 %v3421_v62  ;;  %v3500_v61 = vld [vmem:[#allocation5 + $0x560] ss:$16 sps:$4 sm:$0xff]   ;;  %v3503_v62 = vld [vmem:[#allocation5 + $0x568] ss:$16 sps:$4 sm:$0xff]  }
  0xf5   :  { %1434 = vmatpush1.bf16.msra.mxu0 %v3416_v63  ;;  %1606 = vmatpush1.bf16.msra.mxu1 %v3419_v0  ;;  %v3508_v63 = vld [vmem:[#allocation5 + $0x584] ss:$16 sps:$4 sm:$0xff]   ;;  %v3511_v0 = vld [vmem:[#allocation5 + $0x58c] ss:$16 sps:$4 sm:$0xff]  }
  0xf6   :  { %1435 = vmatprep.subr.bf16.mxu0 %v3424_v1  ;;  %1607 = vmatprep.subr.bf16.mxu1 %v3427_v2  ;;  %v3506_v1 = vld [vmem:[#allocation5 + $0x580] ss:$16 sps:$4 sm:$0xff]   ;;  %v3509_v2 = vld [vmem:[#allocation5 + $0x588] ss:$16 sps:$4 sm:$0xff]  }
  0xf9   :  { %1436 = vmatpush1.bf16.msra.mxu0 %v3422_v3  ;;  %1608 = vmatpush1.bf16.msra.mxu1 %v3425_v4  ;;  %v3514_v3 = vld [vmem:[#allocation5 + $0x5a4] ss:$16 sps:$4 sm:$0xff]   ;;  %v3517_v4 = vld [vmem:[#allocation5 + $0x5ac] ss:$16 sps:$4 sm:$0xff]  }
  0xfa   :  { %1437 = vmatprep.subr.bf16.mxu0 %v3430_v5  ;;  %1609 = vmatprep.subr.bf16.mxu1 %v3433_v6  ;;  %v3512_v5 = vld [vmem:[#allocation5 + $0x5a0] ss:$16 sps:$4 sm:$0xff]   ;;  %v3515_v6 = vld [vmem:[#allocation5 + $0x5a8] ss:$16 sps:$4 sm:$0xff]  }
  0xfd   :  { %1438 = vmatpush1.bf16.msra.mxu0 %v3428_v7  ;;  %1610 = vmatpush1.bf16.msra.mxu1 %v3431_v8  ;;  %v3520_v7 = vld [vmem:[#allocation5 + $0x5c4] ss:$16 sps:$4 sm:$0xff]   ;;  %v3523_v8 = vld [vmem:[#allocation5 + $0x5cc] ss:$16 sps:$4 sm:$0xff]  }
  0xfe   :  { %1450 = vmatprep.subr.bf16.mxu0 %v3436_v9  ;;  %1622 = vmatprep.subr.bf16.mxu1 %v3439_v12  ;;  %v3518_v9 = vld [vmem:[#allocation5 + $0x5c0] ss:$16 sps:$4 sm:$0xff]   ;;  %v3529_v12 = vld [vmem:[#allocation5 + $0x5ec] ss:$16 sps:$4 sm:$0xff]  }
 0x100   :  { %1440 = vmatmul.mubr.bf16.vlgmr.msra.gmra.mrb[0].mxu0 %v157_v15  ;;  %1612 = vmatmul.mubr.bf16.vlgmr.msra.gmra.mrb[0].mxu1 %v157_v15  ;;  %v145_v15 = vld [vmem:[#allocation2 + $0x20] sm:$0xff] }
 0x101   :  { %1451 = vmatpush1.bf16.msra.mxu0 %v3434_v13  ;;  %1623 = vmatpush1.bf16.msra.mxu1 %v3437_v14  ;;  %v3524_v13 = vld [vmem:[#allocation5 + $0x5e0] ss:$16 sps:$4 sm:$0xff]   ;;  %v3527_v14 = vld [vmem:[#allocation5 + $0x5e8] ss:$16 sps:$4 sm:$0xff]  }
 0x102   :  { %1452 = vmatprep.subr.bf16.mxu0 %v3442_v16  ;;  %1624 = vmatprep.subr.bf16.mxu1 %v3445_v17  ;;  %v152_v16 = vld [vmem:[#allocation2 + $0x58] sm:$0xff]  ;;  %v3532_v17 = vld [vmem:[#allocation5 + $0x604] ss:$16 sps:$4 sm:$0xff]  }
 0x103   :  { %1482 = vmatprep.mubr.bf16.mxu0 %v160_v23  ;;  %1654 = vmatprep.mubr.bf16.mxu1 %v160_v23  ;;  %v159_v21 = vpack.c.bf16 %v152_v16, %v145_v15  ;;  %v3873_v23 = vmov 0  }
 0x105   :  { %1453 = vmatpush1.bf16.msra.mxu0 %v3440_v19  ;;  %1625 = vmatpush1.bf16.msra.mxu1 %v3443_v20  ;;  %v3530_v19 = vld [vmem:[#allocation5 + $0x600] ss:$16 sps:$4 sm:$0xff]   ;;  %v3533_v20 = vld [vmem:[#allocation5 + $0x608] ss:$16 sps:$4 sm:$0xff]  }
 0x106   :  { %1454 = vmatprep.subr.bf16.mxu0 %v3448_v22  ;;  %1626 = vmatprep.subr.bf16.mxu1 %v3451_v24  ;;  %v3538_v22 = vld [vmem:[#allocation7 + $0x4] ss:$8 sps:$4 sm:$0xff]  }
 0x107   :  { %v147_v24 = vld [vmem:[#allocation2 + $0x30] sm:$0xff] }
 0x109   :  { %1455 = vmatpush1.bf16.msra.mxu0 %v3446_v25  ;;  %1627 = vmatpush1.bf16.msra.mxu1 %v3449_v26  ;;  %v154_v25 = vld [vmem:[#allocation2 + $0x68] sm:$0xff] }
 0x10a   :  { %1456 = vmatprep.subr.bf16.mxu0 %v3454_v27  ;;  %1628 = vmatprep.subr.bf16.mxu1 %v3457_v28  ;;  %v161_v26 = vpack.c.bf16 %v154_v25, %v147_v24  ;;  %v3536_v27 = vld [vmem:[#allocation7] ss:$8 sps:$4 sm:$0xff]   ;;  %v3541_v28 = vld [vmem:[#allocation7 + $0x14] ss:$8 sps:$4 sm:$0xff]  }
 0x10d   :  { %1457 = vmatpush1.bf16.msra.mxu0 %v3452_v29  ;;  %1629 = vmatpush1.bf16.msra.mxu1 %v3455_v30  ;;  %v3539_v29 = vld [vmem:[#allocation7 + $0x10] ss:$8 sps:$4 sm:$0xff]   ;;  %v3544_v30 = vld [vmem:[#allocation7 + $0x24] ss:$8 sps:$4 sm:$0xff]  }
 0x10e   :  { %1458 = vmatprep.subr.bf16.mxu0 %v3460_v31  ;;  %1630 = vmatprep.subr.bf16.mxu1 %v3463_v32  ;;  %v3542_v31 = vld [vmem:[#allocation7 + $0x20] ss:$8 sps:$4 sm:$0xff]   ;;  %v3547_v32 = vld [vmem:[#allocation7 + $0x34] ss:$8 sps:$4 sm:$0xff]  }
 0x111   :  { %1459 = vmatpush1.bf16.msra.mxu0 %v3458_v33  ;;  %1631 = vmatpush1.bf16.msra.mxu1 %v3461_v34  ;;  %v3545_v33 = vld [vmem:[#allocation7 + $0x30] ss:$8 sps:$4 sm:$0xff]   ;;  %v3550_v34 = vld [vmem:[#allocation7 + $0x44] ss:$8 sps:$4 sm:$0xff]  }
 0x112   :  { %1460 = vmatprep.subr.bf16.mxu0 %v3466_v35  ;;  %1632 = vmatprep.subr.bf16.mxu1 %v3469_v36  ;;  %v3548_v35 = vld [vmem:[#allocation7 + $0x40] ss:$8 sps:$4 sm:$0xff]   ;;  %v3553_v36 = vld [vmem:[#allocation7 + $0x54] ss:$8 sps:$4 sm:$0xff]  }
 0x115   :  { %1461 = vmatpush1.bf16.msra.mxu0 %v3464_v37  ;;  %1633 = vmatpush1.bf16.msra.mxu1 %v3467_v38  ;;  %v3551_v37 = vld [vmem:[#allocation7 + $0x50] ss:$8 sps:$4 sm:$0xff]   ;;  %v3556_v38 = vld [vmem:[#allocation7 + $0x64] ss:$8 sps:$4 sm:$0xff]  }
 0x116   :  { %1462 = vmatprep.subr.bf16.mxu0 %v3472_v39  ;;  %1634 = vmatprep.subr.bf16.mxu1 %v3475_v40  ;;  %v3554_v39 = vld [vmem:[#allocation7 + $0x60] ss:$8 sps:$4 sm:$0xff]   ;;  %v3559_v40 = vld [vmem:[#allocation7 + $0x74] ss:$8 sps:$4 sm:$0xff]  }
 0x119   :  { %1463 = vmatpush1.bf16.msra.mxu0 %v3470_v41  ;;  %1635 = vmatpush1.bf16.msra.mxu1 %v3473_v42  ;;  %v3557_v41 = vld [vmem:[#allocation7 + $0x70] ss:$8 sps:$4 sm:$0xff]   ;;  %v3562_v42 = vld [vmem:[#allocation7 + $0x84] ss:$8 sps:$4 sm:$0xff]  }
 0x11a   :  { %1464 = vmatprep.subr.bf16.mxu0 %v3478_v43  ;;  %1636 = vmatprep.subr.bf16.mxu1 %v3481_v44  ;;  %v3560_v43 = vld [vmem:[#allocation7 + $0x80] ss:$8 sps:$4 sm:$0xff]   ;;  %v3565_v44 = vld [vmem:[#allocation7 + $0x94] ss:$8 sps:$4 sm:$0xff]  }
 0x11d   :  { %1465 = vmatpush1.bf16.msra.mxu0 %v3476_v45  ;;  %1637 = vmatpush1.bf16.msra.mxu1 %v3479_v46  ;;  %v3563_v45 = vld [vmem:[#allocation7 + $0x90] ss:$8 sps:$4 sm:$0xff]   ;;  %v3568_v46 = vld [vmem:[#allocation7 + $0xa4] ss:$8 sps:$4 sm:$0xff]  }
 0x11e   :  { %1466 = vmatprep.subr.bf16.mxu0 %v3484_v47  ;;  %1638 = vmatprep.subr.bf16.mxu1 %v3487_v48  ;;  %v3566_v47 = vld [vmem:[#allocation7 + $0xa0] ss:$8 sps:$4 sm:$0xff]   ;;  %v3571_v48 = vld [vmem:[#allocation7 + $0xb4] ss:$8 sps:$4 sm:$0xff]  }
 0x121   :  { %1467 = vmatpush1.bf16.msra.mxu0 %v3482_v49  ;;  %1639 = vmatpush1.bf16.msra.mxu1 %v3485_v50  ;;  %v3569_v49 = vld [vmem:[#allocation7 + $0xb0] ss:$8 sps:$4 sm:$0xff]   ;;  %v3574_v50 = vld [vmem:[#allocation7 + $0xc4] ss:$8 sps:$4 sm:$0xff]  }
 0x122   :  { %1468 = vmatprep.subr.bf16.mxu0 %v3490_v51  ;;  %1640 = vmatprep.subr.bf16.mxu1 %v3493_v52  ;;  %v3572_v51 = vld [vmem:[#allocation7 + $0xc0] ss:$8 sps:$4 sm:$0xff]   ;;  %v3577_v52 = vld [vmem:[#allocation7 + $0xd4] ss:$8 sps:$4 sm:$0xff]  }
 0x125   :  { %1469 = vmatpush1.bf16.msra.mxu0 %v3488_v53  ;;  %1641 = vmatpush1.bf16.msra.mxu1 %v3491_v54  ;;  %v3575_v53 = vld [vmem:[#allocation7 + $0xd0] ss:$8 sps:$4 sm:$0xff]   ;;  %v3580_v54 = vld [vmem:[#allocation7 + $0xe4] ss:$8 sps:$4 sm:$0xff]  }
 0x126   :  { %1470 = vmatprep.subr.bf16.mxu0 %v3496_v55  ;;  %1642 = vmatprep.subr.bf16.mxu1 %v3499_v56  ;;  %v3578_v55 = vld [vmem:[#allocation7 + $0xe0] ss:$8 sps:$4 sm:$0xff]   ;;  %v3583_v56 = vld [vmem:[#allocation7 + $0xf4] ss:$8 sps:$4 sm:$0xff]  }
 0x129   :  { %1471 = vmatpush1.bf16.msra.mxu0 %v3494_v57  ;;  %1643 = vmatpush1.bf16.msra.mxu1 %v3497_v58  ;;  %v3581_v57 = vld [vmem:[#allocation7 + $0xf0] ss:$8 sps:$4 sm:$0xff]   ;;  %v3586_v58 = vld [vmem:[#allocation7 + $0x104] ss:$8 sps:$4 sm:$0xff]  }
 0x12a   :  { %1472 = vmatprep.subr.bf16.mxu0 %v3502_v59  ;;  %1644 = vmatprep.subr.bf16.mxu1 %v3505_v60  ;;  %v3632_v59 = vld [vmem:[#allocation8 + $0x40] sm:$0xff]  }
 0x12b   :  { %v3633_v60 = vld [vmem:[#allocation8] sm:$0xff]  }
 0x12d   :  { %1473 = vmatpush1.bf16.msra.mxu0 %v3500_v61  ;;  %1645 = vmatpush1.bf16.msra.mxu1 %v3503_v62  ;;  %v3634_v61 = vld [vmem:[#allocation8 + $0x48] sm:$0xff]  }
 0x12e   :  { %1474 = vmatprep.subr.bf16.mxu0 %v3508_v63  ;;  %1646 = vmatprep.subr.bf16.mxu1 %v3511_v0  ;;  %v3635_v62 = vld [vmem:[#allocation8 + $0x8] sm:$0xff]   ;;  %v3636_v63 = vld [vmem:[#allocation8 + $0x50] sm:$0xff]  }
 0x12f   :  { %v3637_v0 = vld [vmem:[#allocation8 + $0x10] sm:$0xff]  }
 0x131   :  { %1475 = vmatpush1.bf16.msra.mxu0 %v3506_v1  ;;  %1647 = vmatpush1.bf16.msra.mxu1 %v3509_v2  ;;  %v3638_v1 = vld [vmem:[#allocation8 + $0x58] sm:$0xff]  }
 0x132   :  { %1476 = vmatprep.subr.bf16.mxu0 %v3514_v3  ;;  %1648 = vmatprep.subr.bf16.mxu1 %v3517_v4  ;;  %v3639_v2 = vld [vmem:[#allocation8 + $0x18] sm:$0xff]   ;;  %v3640_v3 = vld [vmem:[#allocation8 + $0x60] sm:$0xff]  }
 0x133   :  { %v3641_v4 = vld [vmem:[#allocation8 + $0x20] sm:$0xff]  }
 0x135   :  { %1477 = vmatpush1.bf16.msra.mxu0 %v3512_v5  ;;  %1649 = vmatpush1.bf16.msra.mxu1 %v3515_v6  ;;  %v3642_v5 = vld [vmem:[#allocation8 + $0x68] sm:$0xff]   ;;  %v360_v6 = vlaneseq }
 0x136   :  { %1478 = vmatprep.subr.bf16.mxu0 %v3520_v7  ;;  %1650 = vmatprep.subr.bf16.mxu1 %v3523_v8 }
 0x137   :  { %v4050_v7 = vshrl.u32 %v360_v6, 7  ;;  %v3625_v6 = vld [vmem:[#allocation7 + $0x1d4] ss:$8 sps:$4 sm:$0xff]  }
 0x139   :  { %1479 = vmatpush1.bf16.msra.mxu0 %v3518_v9  ;;  %1651 = vmatpush1.bf16.msra.mxu1 %v3521_v10  ;;  %v362_v8 = vsub.s32 0, %v4050_v7  ;;  %v370_v9 = vsub.s32 2, %v4050_v7  ;;  %v358_v10 = vld [vmem:[%s4132_s2] sm:$0xf] }
 0x13a   :  { %1480 = vmatprep.subr.bf16.mxu0 %v3526_v11  ;;  %1652 = vmatprep.subr.bf16.mxu1 %v3529_v12  ;;  %v366_v11 = vsub.s32 1, %v4050_v7  ;;  %v374_v12 = vsub.s32 3, %v4050_v7  ;;  %v3649_v7 = vld [vmem:[#allocation10 + $0x8] sm:$0xff]  }
 0x13c   :  { %v367_v15 = vrot.slane %v358_v10, %v366_v11  ;;  %v375_v16 = vrot.slane %v358_v10, %v374_v12  ;;  %v3626_v12 = vld [vmem:[#allocation7 + $0x1e0] ss:$8 sps:$4 sm:$0xff]  }
 0x13d   :  { %1481 = vmatpush1.bf16.msra.mxu0 %v3524_v13  ;;  %1653 = vmatpush1.bf16.msra.mxu1 %v3527_v14  ;;  %v363_v13 = vrot.slane %v358_v10, %v362_v8  ;;  %v371_v14 = vrot.slane %v358_v10, %v370_v9  ;;  %v3623_v9 = vld [vmem:[#allocation7 + $0x1d0] ss:$8 sps:$4 sm:$0xff]   ;;  %v3628_v10 = vld [vmem:[#allocation7 + $0x1e4] ss:$8 sps:$4 sm:$0xff]  }
 0x13e   :  { %1493 = vmatprep.subr.bf16.mxu0 %v3532_v17  ;;  %1665 = vmatprep.subr.bf16.mxu1 %v3535_v18 }
 0x140   :  { %1483 = vmatmul.mubr.bf16.vlgmr.msra.gmra.mrb[0].mxu0 %v159_v21  ;;  %1655 = vmatmul.mubr.bf16.vlgmr.msra.gmra.mrb[0].mxu1 %v159_v21 }
 0x141   :  { %1494 = vmatpush1.bf16.msra.mxu0 %v3530_v19  ;;  %1666 = vmatpush1.bf16.msra.mxu1 %v3533_v20 }
 0x142   :  { %1525 = vmatprep.mubr.bf16.mxu0 %v3873_v23  ;;  %1697 = vmatprep.mubr.bf16.mxu1 %v3873_v23 }
 0x143   :  { %2116 = vmatprep.subr.bf16.mxu0 %v3538_v22  ;;  %3074 = vmatprep.subr.bf16.mxu1 %v3632_v59  ;;  %v3605_v59 = vld [vmem:[#allocation7 + $0x170] ss:$8 sps:$4 sm:$0xff]  }
 0x14c   :  { %2955 = vmatmul.mubr.msk.bf16.vlgmr.msra.gmra.mrb[0].mxu0 %vm1360_vm0, %v161_v26  ;;  %2956 = vmatmul.mubr.msk.bf16.vlgmr.msra.gmra.mrb[0].mxu1 %vm1360_vm0, %v161_v26 }
 0x14d   :  { %2117 = vmatpush1.bf16.msra.mxu0 %v3536_v27  ;;  %3075 = vmatpush3.bf16.msra.mxu1 %v3633_v60  ;;  %v3610_v60 = vld [vmem:[#allocation7 + $0x184] ss:$8 sps:$4 sm:$0xff]  }
 0x14e   :  { %2118 = vmatprep.subr.bf16.mxu0 %v3541_v28  ;;  %3076 = vmatprep.subr.bf16.mxu1 %v3634_v61  ;;  %v3608_v61 = vld [vmem:[#allocation7 + $0x180] ss:$8 sps:$4 sm:$0xff]  }
 0x151   :  { %2119 = vmatpush1.bf16.msra.mxu0 %v3539_v29  ;;  %3077 = vmatpush3.bf16.msra.mxu1 %v3635_v62  ;;  %v3613_v62 = vld [vmem:[#allocation7 + $0x194] ss:$8 sps:$4 sm:$0xff]  }
 0x152   :  { %2120 = vmatprep.subr.bf16.mxu0 %v3544_v30  ;;  %3078 = vmatprep.subr.bf16.mxu1 %v3636_v63  ;;  %v3611_v63 = vld [vmem:[#allocation7 + $0x190] ss:$8 sps:$4 sm:$0xff]  }
 0x155   :  { %2121 = vmatpush1.bf16.msra.mxu0 %v3542_v31  ;;  %3079 = vmatpush3.bf16.msra.mxu1 %v3637_v0  ;;  %v3616_v0 = vld [vmem:[#allocation7 + $0x1a4] ss:$8 sps:$4 sm:$0xff]  }
 0x156   :  { %2122 = vmatprep.subr.bf16.mxu0 %v3547_v32  ;;  %3080 = vmatprep.subr.bf16.mxu1 %v3638_v1  ;;  %v3614_v1 = vld [vmem:[#allocation7 + $0x1a0] ss:$8 sps:$4 sm:$0xff]  }
 0x159   :  { %2123 = vmatpush1.bf16.msra.mxu0 %v3545_v33  ;;  %3081 = vmatpush3.bf16.msra.mxu1 %v3639_v2  ;;  %v3619_v2 = vld [vmem:[#allocation7 + $0x1b4] ss:$8 sps:$4 sm:$0xff]  }
 0x15a   :  { %2124 = vmatprep.subr.bf16.mxu0 %v3550_v34  ;;  %3082 = vmatprep.subr.bf16.mxu1 %v3640_v3  ;;  %v3617_v3 = vld [vmem:[#allocation7 + $0x1b0] ss:$8 sps:$4 sm:$0xff]  }
 0x15d   :  { %2125 = vmatpush1.bf16.msra.mxu0 %v3548_v35  ;;  %3083 = vmatpush3.bf16.msra.mxu1 %v3641_v4  ;;  %v3622_v4 = vld [vmem:[#allocation7 + $0x1c4] ss:$8 sps:$4 sm:$0xff]  }
 0x15e   :  { %2126 = vmatprep.subr.bf16.mxu0 %v3553_v36  ;;  %3084 = vmatprep.subr.bf16.mxu1 %v3642_v5  ;;  %v3620_v5 = vld [vmem:[#allocation7 + $0x1c0] ss:$8 sps:$4 sm:$0xff]  }
 0x161   :  { %2127 = vmatpush1.bf16.msra.mxu0 %v3551_v37 }
 0x162   :  { %2128 = vmatprep.subr.bf16.mxu0 %v3556_v38 }
 0x165   :  { %2129 = vmatpush1.bf16.msra.mxu0 %v3554_v39 }
 0x166   :  { %2130 = vmatprep.subr.bf16.mxu0 %v3559_v40 }
 0x169   :  { %2131 = vmatpush1.bf16.msra.mxu0 %v3557_v41 }
 0x16a   :  { %2132 = vmatprep.subr.bf16.mxu0 %v3562_v42 }
 0x16d   :  { %2133 = vmatpush1.bf16.msra.mxu0 %v3560_v43 }
 0x16e   :  { %2134 = vmatprep.subr.bf16.mxu0 %v3565_v44 }
 0x171   :  { %2135 = vmatpush1.bf16.msra.mxu0 %v3563_v45  ;;  %v3584_v45 = vld [vmem:[#allocation7 + $0x100] ss:$8 sps:$4 sm:$0xff]  }
 0x172   :  { %2136 = vmatprep.subr.bf16.mxu0 %v3568_v46  ;;  %v3589_v46 = vld [vmem:[#allocation7 + $0x114] ss:$8 sps:$4 sm:$0xff]  }
 0x175   :  { %2137 = vmatpush1.bf16.msra.mxu0 %v3566_v47  ;;  %v3587_v47 = vld [vmem:[#allocation7 + $0x110] ss:$8 sps:$4 sm:$0xff]  }
 0x176   :  { %2138 = vmatprep.subr.bf16.mxu0 %v3571_v48  ;;  %v3592_v48 = vld [vmem:[#allocation7 + $0x124] ss:$8 sps:$4 sm:$0xff]  }
 0x179   :  { %2139 = vmatpush1.bf16.msra.mxu0 %v3569_v49  ;;  %v3590_v49 = vld [vmem:[#allocation7 + $0x120] ss:$8 sps:$4 sm:$0xff]  }
 0x17a   :  { %2140 = vmatprep.subr.bf16.mxu0 %v3574_v50  ;;  %v3595_v50 = vld [vmem:[#allocation7 + $0x134] ss:$8 sps:$4 sm:$0xff]  }
 0x17d   :  { %2141 = vmatpush1.bf16.msra.mxu0 %v3572_v51  ;;  %v3593_v51 = vld [vmem:[#allocation7 + $0x130] ss:$8 sps:$4 sm:$0xff]  }
 0x17e   :  { %2142 = vmatprep.subr.bf16.mxu0 %v3577_v52  ;;  %v3598_v52 = vld [vmem:[#allocation7 + $0x144] ss:$8 sps:$4 sm:$0xff]  }
 0x181   :  { %2143 = vmatpush1.bf16.msra.mxu0 %v3575_v53  ;;  %v3596_v53 = vld [vmem:[#allocation7 + $0x140] ss:$8 sps:$4 sm:$0xff]  }
 0x182   :  { %2144 = vmatprep.subr.bf16.mxu0 %v3580_v54  ;;  %v3601_v54 = vld [vmem:[#allocation7 + $0x154] ss:$8 sps:$4 sm:$0xff]  }
 0x185   :  { %2145 = vmatpush1.bf16.msra.mxu0 %v3578_v55  ;;  %v3599_v55 = vld [vmem:[#allocation7 + $0x150] ss:$8 sps:$4 sm:$0xff]  }
 0x186   :  { %2146 = vmatprep.subr.bf16.mxu0 %v3583_v56  ;;  %v3604_v56 = vld [vmem:[#allocation7 + $0x164] ss:$8 sps:$4 sm:$0xff]  }
 0x189   :  { %2147 = vmatpush1.bf16.msra.mxu0 %v3581_v57  ;;  %v3602_v57 = vld [vmem:[#allocation7 + $0x160] ss:$8 sps:$4 sm:$0xff]  }
 0x18a   :  { %2159 = vmatprep.subr.bf16.mxu0 %v3586_v58  ;;  %v3607_v58 = vld [vmem:[#allocation7 + $0x174] ss:$8 sps:$4 sm:$0xff]  }
 0x21f   :  { %v1527_v17 = vpop.f32.mrb[0].mxu0  ;;  %v1699_v18 = vpop.f32.mrb[0].mxu1 }
 0x220   :  { %v3183_v19 = vadd.f32 %v1527_v17, %v363_v13  ;;  %v3187_v20 = vadd.f32 %v1699_v18, %v371_v14  ;;  %v1529_v21 = vpop.f32.mrb[1].mxu0  ;;  %v1701_v22 = vpop.f32.mrb[1].mxu1  ;;  %v3645_v17 = vld [vmem:[#allocation8 + $0x30] sm:$0xff]   ;;  %v3646_v18 = vld [vmem:[#allocation8 + $0x78] sm:$0xff]  }
 0x221   :  { %v3184_v23 = vadd.f32 %v1529_v21, %v367_v15  ;;  %v3188_v24 = vadd.f32 %v1701_v22, %v375_v16  ;;  %v1531_v25 = vpop.f32.mrb[2].mxu0  ;;  %v1703_v26 = vpop.f32.mrb[2].mxu1  ;;  %v1784_v21 = vld [vmem:[%s4134_s4] sm:$0x3] }
 0x222   :  { %v3185_v27 = vadd.f32 %v1531_v25, %v363_v13  ;;  %v3189_v28 = vadd.f32 %v1703_v26, %v371_v14  ;;  %v1533_v29 = vpop.f32.mrb[3].mxu0  ;;  %v1705_v30 = vpop.f32.mrb[3].mxu1  ;;  %v1708_v33 = vmax.f32 %v3183_v19, 0.0  ;;  %v1710_v34 = vmax.f32 %v3187_v20, 0.0  ;;  %v3631_v13 = vld [vmem:[#allocation7 + $0x1f4] ss:$8 sps:$4 sm:$0xff]  }
 0x223   :  { %v3186_v31 = vadd.f32 %v1533_v29, %v367_v15  ;;  %v3190_v32 = vadd.f32 %v1705_v30, %v375_v16  ;;  %v1709_v37 = vmax.f32 %v3184_v23, 0.0  ;;  %v1711_v38 = vmax.f32 %v3188_v24, 0.0  ;;  %v3629_v14 = vld [vmem:[#allocation7 + $0x1f0] ss:$8 sps:$4 sm:$0xff]   ;;  %v3643_v15 = vld [vmem:[#allocation8 + $0x28] sm:$0xff]  }
 0x224   :  { %v1712_v35 = vmax.f32 %v3185_v27, 0.0  ;;  %v1714_v36 = vmax.f32 %v3189_v28, 0.0  ;;  %3085 = vmatpush3.bf16.msra.mxu1 %v3643_v15  ;;  %v3644_v16 = vld [vmem:[#allocation8 + $0x70] sm:$0xff]   ;;  %v3647_v19 = vld [vmem:[#allocation8 + $0x38] sm:$0xff]   ;;  %v3874_v20 = vmov 0.0   ;;  %v1789_v22 = vrot.slane %v1784_v21, %v362_v8 }
 0x225   :  { %v1713_v39 = vmax.f32 %v3186_v31, 0.0  ;;  %v1715_v40 = vmax.f32 %v3190_v32, 0.0  ;;  %3086 = vmatprep.subr.bf16.mxu1 %v3644_v16  ;;  %v1793_v23 = vrot.slane %v1784_v21, %v366_v11  ;;  %v3650_v8 = vld [vmem:[#allocation10 + $0x10] sm:$0xff]   ;;  %v3651_v11 = vld [vmem:[#allocation10 + $0x18] sm:$0xff]   ;;  %v3668_v16 = vld [vmem:[#allocation13 + $0x20] sm:$0xff]  }
 0x226   :  { %v1716_v41 = vpack.c.bf16 %v1712_v35, %v1708_v33  ;;  %v4063_v42 = vpack.c.bf16 %v1714_v36, %v1710_v34  ;;  %v3667_v15 = vld [vmem:[#allocation13 + $0x18] sm:$0xff]   ;;  %v3047_v21 = vld [vmem:[%s4140_s10] ss:$0 sm:$0xff]  ;;  %s3826_s10 = scalar_lea.vmem %s2745_s3, 128 }
 0x227   :  { %v1717_v43 = vpack.c.bf16 %v1713_v39, %v1709_v37  ;;  %v1719_v44 = vpack.c.bf16 %v1715_v40, %v1711_v38  ;;  %v3648_v38 = vld [vmem:[#allocation10] sm:$0xff]   ;;  %v3653_v40 = vld [vmem:[#allocation10 + $0x28] sm:$0xff]   ;;  %p3827_p0 = scmp.ne.s32.totalorder %s2745_s3, %s3826_s10  ;;  %p3832_p2 = scmp.lt.s32.totalorder %s3826_s10, %s3826_s10 }
 0x228   :  { %3087 = vmatpush3.bf16.msra.mxu1 %v3645_v17  ;;  %v3652_v39 = vld [vmem:[#allocation10 + $0x20] sm:$0xff]   ;;  %v3669_v17 = vld [vmem:[#allocation13 + $0x28] sm:$0xff]  }
 0x229   :  { %2148 = vmatprep.mubr.bf16.mxu0 %v1717_v43  ;;  %3088 = vmatprep.subr.bf16.mxu1 %v3646_v18  ;;  %v3670_v18 = vld [vmem:[#allocation13 + $0x30] sm:$0xff]   ;;  %p3833_p3 = por %p3832_p2, %p3831_p1 }
 0x22a   :  { %2149 = vmatmul.mubr.bf16.vlgmr.msra.gmra.mrb[4].mxu0 %v1716_v41  ;;  %v3654_v41 = vld [vmem:[#allocation10 + $0x30] sm:$0xff]  }
 0x22b   :  { %2160 = vmatpush1.bf16.msra.mxu0 %v3584_v45  ;;  %2191 = vmatprep.mubr.bf16.mxu0 %v1719_v44  ;;  %v3021_v44 = vld [vmem:[%s4136_s6] ss:$0 sm:$0xff]  ;;  %p3834_p4 = pnand %p3833_p3, %p3827_p0 }
 0x22c   :  { %2161 = vmatprep.subr.bf16.mxu0 %v3589_v46  ;;  %3089 = vmatpush3.bf16.msra.mxu1 %v3647_v19  ;;  %v3671_v19 = vld [vmem:[#allocation13 + $0x38] sm:$0xff]  }
 0x22d   :  { %3123 = vmatprep.subr.bf16.mxu1 %v3874_v20 }
 0x22f   :  { %2162 = vmatpush1.bf16.msra.mxu0 %v3587_v47 }
 0x230   :  { %2163 = vmatprep.subr.bf16.mxu0 %v3592_v48 }
 0x233   :  { %2164 = vmatpush1.bf16.msra.mxu0 %v3590_v49 }
 0x234   :  { %2165 = vmatprep.subr.bf16.mxu0 %v3595_v50 }
 0x237   :  { %2166 = vmatpush1.bf16.msra.mxu0 %v3593_v51 }
 0x238   :  { %2167 = vmatprep.subr.bf16.mxu0 %v3598_v52 }
 0x23b   :  { %2168 = vmatpush1.bf16.msra.mxu0 %v3596_v53 }
 0x23c   :  { %2169 = vmatprep.subr.bf16.mxu0 %v3601_v54  ;;  %v3656_v54 = vld [vmem:[#allocation11] sm:$0xff]  }
 0x23f   :  { %2170 = vmatpush1.bf16.msra.mxu0 %v3599_v55 }
 0x240   :  { %2171 = vmatprep.subr.bf16.mxu0 %v3604_v56  ;;  %v3657_v56 = vld [vmem:[#allocation11 + $0x8] sm:$0xff]  }
 0x243   :  { %2172 = vmatpush1.bf16.msra.mxu0 %v3602_v57  ;;  %v3658_v57 = vld [vmem:[#allocation11 + $0x10] sm:$0xff]  }
 0x244   :  { %2173 = vmatprep.subr.bf16.mxu0 %v3607_v58  ;;  %v3659_v58 = vld [vmem:[#allocation11 + $0x18] sm:$0xff]  }
 0x247   :  { %2174 = vmatpush1.bf16.msra.mxu0 %v3605_v59  ;;  %v3660_v59 = vld [vmem:[#allocation11 + $0x20] sm:$0xff]  }
 0x248   :  { %2175 = vmatprep.subr.bf16.mxu0 %v3610_v60  ;;  %v3661_v60 = vld [vmem:[#allocation11 + $0x28] sm:$0xff]  }
 0x24b   :  { %2176 = vmatpush1.bf16.msra.mxu0 %v3608_v61  ;;  %v3662_v61 = vld [vmem:[#allocation11 + $0x30] sm:$0xff]  }
 0x24c   :  { %2177 = vmatprep.subr.bf16.mxu0 %v3613_v62  ;;  %v3663_v62 = vld [vmem:[#allocation11 + $0x38] sm:$0xff]  }
 0x24f   :  { %2178 = vmatpush1.bf16.msra.mxu0 %v3611_v63  ;;  %v3038_v63 = vld [vmem:[%s4138_s8] ss:$0 sm:$0xff] }
 0x250   :  { %2179 = vmatprep.subr.bf16.mxu0 %v3616_v0 }
 0x253   :  { %2180 = vmatpush1.bf16.msra.mxu0 %v3614_v1 }
 0x254   :  { %2181 = vmatprep.subr.bf16.mxu0 %v3619_v2 }
 0x257   :  { %2182 = vmatpush1.bf16.msra.mxu0 %v3617_v3 }
 0x258   :  { %2183 = vmatprep.subr.bf16.mxu0 %v3622_v4 }
 0x25b   :  { %2184 = vmatpush1.bf16.msra.mxu0 %v3620_v5 }
 0x25c   :  { %2185 = vmatprep.subr.bf16.mxu0 %v3625_v6 }
 0x25f   :  { %2186 = vmatpush1.bf16.msra.mxu0 %v3623_v9 }
 0x260   :  { %2187 = vmatprep.subr.bf16.mxu0 %v3628_v10  ;;  %v3664_v10 = vld [vmem:[#allocation13] sm:$0xff]  }
 0x263   :  { %2188 = vmatpush1.bf16.msra.mxu0 %v3626_v12 }
 0x264   :  { %2189 = vmatprep.subr.bf16.mxu0 %v3631_v13  ;;  %v3665_v13 = vld [vmem:[#allocation13 + $0x8] sm:$0xff]  }
 0x267   :  { %2190 = vmatpush1.bf16.msra.mxu0 %v3629_v14  ;;  %v3666_v14 = vld [vmem:[#allocation13 + $0x10] sm:$0xff]  }
 0x26a   :  { %2192 = vmatmul.mubr.bf16.vlgmr.msra.gmra.mrb[4].mxu0 %v4063_v42  ;;  %v3655_v42 = vld [vmem:[#allocation10 + $0x38] sm:$0xff]  }
 0x33d   :  { %v2193_v24 = vpop.f32.mrb[4].mxu0 }
 0x33e   :  { %v3191_v25 = vadd.f32 %v2193_v24, %v1789_v22  ;;  %v2195_v26 = vpop.f32.mrb[5].mxu0 }
 0x33f   :  { %v3192_v27 = vadd.f32 %v2195_v26, %v1793_v23  ;;  %v2197_v28 = vpop.f32.mrb[6].mxu0 }
 0x340   :  { %v3193_v29 = vadd.f32 %v2197_v28, %v1789_v22  ;;  %v2199_v30 = vpop.f32.mrb[7].mxu0  ;;  %v2202_v32 = vmax.f32 %v3191_v25, 0.0 }
 0x341   :  { %v3194_v31 = vadd.f32 %v2199_v30, %v1793_v23  ;;  %v2203_v34 = vmax.f32 %v3192_v27, 0.0 }
 0x342   :  { %v2204_v33 = vmax.f32 %v3193_v29, 0.0 }
 0x343   :  { %v2205_v35 = vmax.f32 %v3194_v31, 0.0 }
 0x344   :  { %v2206_v36 = vpack.c.bf16 %v2204_v33, %v2202_v32 }
 0x345   :  { %v2207_v37 = vpack.c.bf16 %v2205_v35, %v2203_v34 }
 0x347   :  { %2375 = vmatprep.mubr.bf16.mxu1 %v2207_v37 }
 0x348   :  { %2376 = vmatmul.mubr.bf16.vlgmr.msra.gmra.mrb[4].mxu1 %v2206_v36 }
 0x349   :  { %3124 = vmatpush3.bf16.msra.mxu1 %v3648_v38  ;;  %3139 = vmatprep.mubr.msk.bf16.mxu1 %vm3875_vm1, %v3874_v20 }
 0x34a   :  { %3125 = vmatprep.subr.bf16.mxu1 %v3874_v20 }
 0x34d   :  { %3126 = vmatpush3.bf16.msra.mxu1 %v3649_v7 }
 0x34e   :  { %3127 = vmatprep.subr.bf16.mxu1 %v3874_v20 }
 0x351   :  { %3128 = vmatpush3.bf16.msra.mxu1 %v3650_v8 }
 0x352   :  { %3129 = vmatprep.subr.bf16.mxu1 %v3874_v20 }
 0x355   :  { %3130 = vmatpush3.bf16.msra.mxu1 %v3651_v11 }
 0x356   :  { %3131 = vmatprep.subr.bf16.mxu1 %v3874_v20 }
 0x359   :  { %3132 = vmatpush3.bf16.msra.mxu1 %v3652_v39 }
 0x35a   :  { %3133 = vmatprep.subr.bf16.mxu1 %v3874_v20 }
 0x35d   :  { %3134 = vmatpush3.bf16.msra.mxu1 %v3653_v40 }
 0x35e   :  { %3135 = vmatprep.subr.bf16.mxu1 %v3874_v20 }
 0x361   :  { %3136 = vmatpush3.bf16.msra.mxu1 %v3654_v41 }
 0x362   :  { %3137 = vmatprep.subr.bf16.mxu1 %v3874_v20 }
 0x365   :  { %3138 = vmatpush3.bf16.msra.mxu1 %v3655_v42 }
 0x366   :  { %3143 = vmatprep.subr.bf16.mxu1 %v3874_v20 }
 0x41b   :  { %v3090_v43 = vpop.f32.mrb[4].mxu1 }
 0x41c   :  { %v3091_v45 = vpop.f32.mrb[5].mxu1 }
 0x41d   :  { %v3092_v46 = vadd.f32 %v3091_v45, %v3090_v43  ;;  %v3093_v47 = vpop.f32.mrb[6].mxu1 }
 0x41e   :  { %v3094_v48 = vpop.f32.mrb[7].mxu1 }
 0x41f   :  { %v2378_v49 = vadd.f32 %v3092_v46, %v3021_v44  ;;  %v3095_v50 = vadd.f32 %v3094_v48, %v3093_v47 }
 0x421   :  { %v2381_v51 = vadd.f32 %v3095_v50, %v3021_v44  ;;  %v2384_v52 = vmax.f32 %v2378_v49, 0.0 }
 0x423   :  { %v2385_v53 = vmax.f32 %v2381_v51, 0.0 }
 0x425   :  { %v2386_v55 = vpack.c.bf16 %v2385_v53, %v2384_v52 }
 0x427   :  { %3140 = vmatmul.mubr.bf16.vlgmr.msra.gmra.mrb[8].mxu1 %v2386_v55 }
 0x428   :  { %3144 = vmatpush3.bf16.msra.mxu1 %v3656_v54  ;;  %3159 = vmatprep.mubr.msk.bf16.mxu1 %vm3875_vm1, %v3874_v20 }
 0x429   :  { %3145 = vmatprep.subr.bf16.mxu1 %v3874_v20 }
 0x42c   :  { %3146 = vmatpush3.bf16.msra.mxu1 %v3657_v56 }
 0x42d   :  { %3147 = vmatprep.subr.bf16.mxu1 %v3874_v20 }
 0x430   :  { %3148 = vmatpush3.bf16.msra.mxu1 %v3658_v57 }
 0x431   :  { %3149 = vmatprep.subr.bf16.mxu1 %v3874_v20 }
 0x434   :  { %3150 = vmatpush3.bf16.msra.mxu1 %v3659_v58 }
 0x435   :  { %3151 = vmatprep.subr.bf16.mxu1 %v3874_v20 }
 0x438   :  { %3152 = vmatpush3.bf16.msra.mxu1 %v3660_v59 }
 0x439   :  { %3153 = vmatprep.subr.bf16.mxu1 %v3874_v20 }
 0x43c   :  { %3154 = vmatpush3.bf16.msra.mxu1 %v3661_v60 }
 0x43d   :  { %3155 = vmatprep.subr.bf16.mxu1 %v3874_v20 }
 0x440   :  { %3156 = vmatpush3.bf16.msra.mxu1 %v3662_v61 }
 0x441   :  { %3157 = vmatprep.subr.bf16.mxu1 %v3874_v20 }
 0x444   :  { %3158 = vmatpush3.bf16.msra.mxu1 %v3663_v62 }
 0x445   :  { %3163 = vmatprep.subr.bf16.mxu1 %v3874_v20 }
 0x4fa   :  { %v2492_v0 = vpop.f32.mrb[8].mxu1 }
 0x4fb   :  { %v2493_v1 = vadd.f32 %v3038_v63, %v2492_v0  ;;  %v3141_v2 = vpop.f32.mrb[9].mxu1 }
 0x4fc   :  { %v2495_v3 = vpop.f32.mrb[10].mxu1 }
 0x4fd   :  { %v2496_v4 = vadd.f32 %v3038_v63, %v2495_v3  ;;  %v3142_v5 = vpop.f32.mrb[11].mxu1  ;;  %v2499_v6 = vmax.f32 %v2493_v1, 0.0 }
 0x4ff   :  { %v2500_v9 = vmax.f32 %v2496_v4, 0.0 }
 0x501   :  { %v2501_v12 = vpack.c.bf16 %v2500_v9, %v2499_v6 }
 0x503   :  { %3160 = vmatmul.mubr.bf16.vlgmr.msra.gmra.mrb[12].mxu1 %v2501_v12 }
 0x504   :  { %3164 = vmatpush3.bf16.msra.mxu1 %v3664_v10  ;;  %3179 = vmatprep.mubr.msk.bf16.mxu1 %vm3875_vm1, %v3874_v20 }
 0x505   :  { %3165 = vmatprep.subr.bf16.mxu1 %v3874_v20 }
 0x508   :  { %3166 = vmatpush3.bf16.msra.mxu1 %v3665_v13 }
 0x509   :  { %3167 = vmatprep.subr.bf16.mxu1 %v3874_v20 }
 0x50c   :  { %3168 = vmatpush3.bf16.msra.mxu1 %v3666_v14 }
 0x50d   :  { %3169 = vmatprep.subr.bf16.mxu1 %v3874_v20 }
 0x510   :  { %3170 = vmatpush3.bf16.msra.mxu1 %v3667_v15 }
 0x511   :  { %3171 = vmatprep.subr.bf16.mxu1 %v3874_v20 }
 0x514   :  { %3172 = vmatpush3.bf16.msra.mxu1 %v3668_v16 }
 0x515   :  { %3173 = vmatprep.subr.bf16.mxu1 %v3874_v20 }
 0x518   :  { %3174 = vmatpush3.bf16.msra.mxu1 %v3669_v17 }
 0x519   :  { %3175 = vmatprep.subr.bf16.mxu1 %v3874_v20 }
 0x51c   :  { %3176 = vmatpush3.bf16.msra.mxu1 %v3670_v18 }
 0x51d   :  { %3177 = vmatprep.subr.bf16.mxu1 %v3874_v20  ;;  %v3056_v20 = vld [vmem:[%s4142_s12] ss:$0 sm:$0xff] }
 0x520   :  { %3178 = vmatpush3.bf16.msra.mxu1 %v3671_v19 }
 0x5d6   :  { %v2607_v22 = vpop.f32.mrb[12].mxu1 }
 0x5d7   :  { %v2608_v23 = vadd.f32 %v3047_v21, %v2607_v22  ;;  %v3161_v24 = vpop.f32.mrb[13].mxu1 }
 0x5d8   :  { %v2610_v25 = vpop.f32.mrb[14].mxu1 }
 0x5d9   :  { %v2611_v26 = vadd.f32 %v3047_v21, %v2610_v25  ;;  %v3162_v27 = vpop.f32.mrb[15].mxu1  ;;  %v2614_v28 = vmax.f32 %v2608_v23, 0.0 }
 0x5db   :  { %v2615_v29 = vmax.f32 %v2611_v26, 0.0 }
 0x5dd   :  { %v2616_v30 = vpack.c.bf16 %v2615_v29, %v2614_v28 }
 0x5df   :  { %3180 = vmatmul.mubr.bf16.vlgmr.msra.gmra.mrb[16].mxu1 %v2616_v30 }
 0x6b2   :  { %v2722_v31 = vpop.f32.mrb[16].mxu1 }
 0x6b3   :  { %v3181_v32 = vpop.f32.mrb[17].mxu1  ;;  %v2723_v34 = vadd.f32 %v3056_v20, %v2722_v31 }
 0x6b4   :  { %v2725_v33 = vpop.f32.mrb[18].mxu1 }
 0x6b5   :  { %v2726_v35 = vadd.f32 %v3056_v20, %v2725_v33  ;;  %v3182_v36 = vpop.f32.mrb[19].mxu1 }
 0x6b7   :  { %v3072_v37 = vpack.c.bf16 %v2726_v35, %v2723_v34 }
 0x6b9   :  { %3073 = vst [vmem:[#allocation14] sm:$0xff] %v3072_v37  }
 0x6ba   :  { %3837 = shalt.err (!%p3834_p4)
}
 0x6bb   :  { %s3838_s17 = scalar_lea.hbm %s4143_s13, 128 }
 0x6bc   :  { %p3839_p5 = scmp.ne.s32.totalorder %s4143_s13, %s3838_s17  ;;  %p3842_p6 = scmp.lt.u32.totalorder %s3838_s17, %s4143_s13 }
 0x6be   :  { %p3844_p7 = pnand %p3842_p6, %p3839_p5 }
 0x6c0   :  { %3847 = shalt.err (!%p3844_p7)
}
 0x6c1   :  { %2750 = dma.vmem_to_hbm [thread:$0]  %s2745_s3, 128, %s4143_s13, [#allocation4], %s3862_s1, %s3862_s1, %s3863_s26  }
 0x6c2   :  { %3856 = dma.done.wait [#allocation4], 128  }
 0x6c3   :  { %3857 = vsyncadd [#allocation4], 4294967168 }
 0x6c4   :  { %2754 = vsyncpa [#allocation3], 1 }
 0x6c5   :  { %2755 = vsyncpa [#allocation6], 1 }
 0x6c6   :  { %2756 = vsyncpa [#allocation9], 1 }
 0x6c7   :  { %2757 = vsyncpa [#allocation12], 1 }
 0x6c8   :  { %2758 = vsyncpa [#allocation4], 1 }

// kernel: tpu_custom_call.1
= control target key start
LH: loop header
LB: loop body
LE: loop exit
PB: predicated region body
PF: predicated region fallthrough
CT: control target
= control target key end

     0   :  { %18 = vsyncpa [#allocation3], 0  ;;  %s4130_s0 = inlined_call_operand.hbm [shape: f32[16,784], index: 0, kind: input, shape index: {}]   ;;  %s4131_s1 = inlined_call_operand.hbm [shape: bf16[784,512], index: 1, kind: input, shape index: {}]   ;;  %s4132_s2 = inlined_call_operand.vmem [shape: f32[1,512], index: 2, kind: input, shape index: {}]   ;;  %s4133_s3 = inlined_call_operand.hbm [shape: bf16[512,256], index: 3, kind: input, shape index: {}]   ;;  %s4134_s4 = inlined_call_operand.vmem [shape: f32[1,256], index: 4, kind: input, shape index: {}]   ;;  %s4135_s5 = inlined_call_operand.hbm [shape: bf16[256,128], index: 5, kind: input, shape index: {}]   ;;  %s4136_s6 = inlined_call_operand.vmem [shape: f32[1,128], index: 6, kind: input, shape index: {}]   ;;  %s4137_s7 = inlined_call_operand.hbm [shape: bf16[128,128], index: 7, kind: input, shape index: {}]   ;;  %s4138_s8 = inlined_call_operand.vmem [shape: f32[1,128], index: 8, kind: input, shape index: {}]   ;;  %s4139_s9 = inlined_call_operand.hbm [shape: bf16[128,128], index: 9, kind: input, shape index: {}]   ;;  %s4140_s10 = inlined_call_operand.vmem [shape: f32[1,128], index: 10, kind: input, shape index: {}]   ;;  %s4141_s11 = inlined_call_operand.hbm [shape: bf16[128,128], index: 11, kind: input, shape index: {}]   ;;  %s4142_s12 = inlined_call_operand.vmem [shape: f32[1,128], index: 12, kind: input, shape index: {}]   ;;  %s4143_s13 = inlined_call_operand.hbm [shape: bf16[16,128], index: 13, kind: output, shape index: {}]  }
   0x1   :  { %19 = vsyncpa [#allocation6], 0 }
   0x2   :  { %20 = vsyncpa [#allocation9], 0 }
   0x3   :  { %21 = vsyncpa [#allocation12], 0 }
   0x4   :  { %22 = vsyncpa [#allocation4], 0  ;;  %s3858_s25 = smov [#allocation5]   ;;  %s3672_s29 = scalar_lea.hbm %s4131_s1, 25088 }
   0x5   :  { %s40_s26 = sshll.u32 %s3858_s25, 4  ;;  %p3673_p0 = scmp.ne.s32.totalorder %s4131_s1, %s3672_s29  ;;  %s41_s26 = int_to_ptr.vmem [resolvable:$true] %s40_s26 }
   0x6   :  { %p3676_p1 = scmp.lt.u32.totalorder %s3672_s29, %s4131_s1 }
   0x8   :  { %p3678_p2 = pnand %p3676_p1, %p3673_p0 }
   0xa   :  { %3681 = shalt.err (!%p3678_p2)
}
   0xb   :  { %s3682_s17 = scalar_lea.vmem %s41_s26, 25088  ;;  %p3687_p4 = scmp.lt.s32.totalorder %s41_s26, %s41_s26 }
   0xc   :  { %p3683_p3 = scmp.ne.s32.totalorder %s41_s26, %s3682_s17  ;;  %p3688_p5 = scmp.lt.s32.totalorder %s3682_s17, %s3682_s17 }
   0xe   :  { %p3689_p6 = por %p3688_p5, %p3687_p4 }
  0x10   :  { %p3690_p7 = pnand %p3689_p6, %p3683_p3 }
  0x12   :  { %3693 = shalt.err (!%p3690_p7)
}
  0x13   :  { %s3859_s18 = smov 256   ;;  %s3860_s19 = smov 16  }
  0x14   :  { %46 = dma.hbm_to_vmem [thread:$0]  %s4131_s1, 25088, %s41_s26, [#allocation6], %s3859_s18, %s3859_s18, %s3860_s19  }
  0x15   :  { %s3861_s22 = smov [#allocation8]   ;;  %s3694_s27 = scalar_lea.hbm %s4135_s5, 2048 }
  0x16   :  { %s68_s23 = sshll.u32 %s3861_s22, 4  ;;  %p3695_p8 = scmp.ne.s32.totalorder %s4135_s5, %s3694_s27  ;;  %s69_s23 = int_to_ptr.vmem [resolvable:$true] %s68_s23 }
  0x17   :  { %p3698_p9 = scmp.lt.u32.totalorder %s3694_s27, %s4135_s5 }
  0x19   :  { %p3700_p10 = pnand %p3698_p9, %p3695_p8 }
  0x1b   :  { %3703 = shalt.err (!%p3700_p10)
}
  0x1c   :  { %s3704_s15 = scalar_lea.vmem %s69_s23, 2048  ;;  %p3709_p12 = scmp.lt.s32.totalorder %s69_s23, %s69_s23 }
  0x1d   :  { %p3705_p11 = scmp.ne.s32.totalorder %s69_s23, %s3704_s15  ;;  %p3710_p13 = scmp.lt.s32.totalorder %s3704_s15, %s3704_s15 }
  0x1f   :  { %p3711_p0 = por %p3710_p13, %p3709_p12 }
  0x21   :  { %p3712_p1 = pnand %p3711_p0, %p3705_p11 }
  0x23   :  { %3715 = shalt.err (!%p3712_p1)
}
  0x24   :  { %s3862_s1 = smov 64   ;;  %s3863_s26 = smov 4  }
  0x25   :  { %74 = dma.hbm_to_vmem [thread:$0]  %s4135_s5, 2048, %s69_s23, [#allocation9], %s3862_s1, %s3862_s1, %s3863_s26  }
  0x26   :  { %s3864_s18 = smov [#allocation11]   ;;  %s3865_s20 = smov [#allocation2]  }
  0x27   :  { %s96_s19 = sshll.u32 %s3864_s18, 4  ;;  %s28_s21 = sshll.u32 %s3865_s20, 4  ;;  %s97_s19 = int_to_ptr.vmem [resolvable:$true] %s96_s19  ;;  %s3974_s21 = int_to_ptr.vmem [resolvable:$true] %s28_s21 }
  0x28   :  { %s3716_s25 = scalar_lea.hbm %s4139_s9, 1024 }
  0x29   :  { %p3717_p2 = scmp.ne.s32.totalorder %s4139_s9, %s3716_s25  ;;  %p3720_p3 = scmp.lt.u32.totalorder %s3716_s25, %s4139_s9 }
  0x2b   :  { %p3722_p4 = pnand %p3720_p3, %p3717_p2 }
  0x2d   :  { %3725 = shalt.err (!%p3722_p4)
}
  0x2e   :  { %s3726_s5 = scalar_lea.vmem %s97_s19, 1024  ;;  %p3731_p6 = scmp.lt.s32.totalorder %s97_s19, %s97_s19 }
  0x2f   :  { %p3727_p5 = scmp.ne.s32.totalorder %s97_s19, %s3726_s5  ;;  %p3732_p7 = scmp.lt.s32.totalorder %s3726_s5, %s3726_s5 }
  0x31   :  { %p3733_p8 = por %p3732_p7, %p3731_p6 }
  0x33   :  { %p3734_p9 = pnand %p3733_p8, %p3727_p5 }
  0x35   :  { %3737 = shalt.err (!%p3734_p9)
}
  0x36   :  { %102 = dma.hbm_to_vmem [thread:$0]  %s4139_s9, 1024, %s97_s19, [#allocation12], %s3862_s1, %s3862_s1, %s3863_s26  }
  0x37   :  { %s3738_s17 = scalar_lea.hbm %s4130_s0, 1792 }
  0x38   :  { %p3739_p10 = scmp.ne.s32.totalorder %s4130_s0, %s3738_s17  ;;  %p3742_p11 = scmp.lt.u32.totalorder %s3738_s17, %s4130_s0 }
  0x3a   :  { %p3744_p12 = pnand %p3742_p11, %p3739_p10 }
  0x3c   :  { %3747 = shalt.err (!%p3744_p12)
}
  0x3d   :  { %s3748_s25 = scalar_lea.vmem %s3974_s21, 1792  ;;  %p3753_p0 = scmp.lt.s32.totalorder %s3974_s21, %s3974_s21 }
  0x3e   :  { %p3749_p13 = scmp.ne.s32.totalorder %s3974_s21, %s3748_s25  ;;  %p3754_p1 = scmp.lt.s32.totalorder %s3748_s25, %s3748_s25 }
  0x40   :  { %p3755_p2 = por %p3754_p1, %p3753_p0 }
  0x42   :  { %p3756_p3 = pnand %p3755_p2, %p3749_p13 }
  0x44   :  { %3759 = shalt.err (!%p3756_p3)
}
  0x45   :  { %s3866_s9 = smov 896   ;;  %s3867_s19 = smov 56  }
  0x46   :  { %34 = dma.hbm_to_vmem [thread:$0]  %s4130_s0, 1792, %s3974_s21, [#allocation3], %s3866_s9, %s3866_s9, %s3867_s19  }
  0x47   :  { %s3868_s29 = smov [#allocation7]   ;;  %s3760_s14 = scalar_lea.hbm %s4133_s3, 8192 }
  0x48   :  { %s54_s30 = sshll.u32 %s3868_s29, 4  ;;  %p3761_p4 = scmp.ne.s32.totalorder %s4133_s3, %s3760_s14  ;;  %s55_s30 = int_to_ptr.vmem [resolvable:$true] %s54_s30 }
  0x49   :  { %p3764_p5 = scmp.lt.u32.totalorder %s3760_s14, %s4133_s3 }
  0x4b   :  { %p3766_p6 = pnand %p3764_p5, %p3761_p4 }
  0x4d   :  { %3769 = shalt.err (!%p3766_p6)
}
  0x4e   :  { %s3770_s20 = scalar_lea.vmem %s55_s30, 8192  ;;  %p3775_p8 = scmp.lt.s32.totalorder %s55_s30, %s55_s30 }
  0x4f   :  { %p3771_p7 = scmp.ne.s32.totalorder %s55_s30, %s3770_s20  ;;  %p3776_p9 = scmp.lt.s32.totalorder %s3770_s20, %s3770_s20 }
  0x51   :  { %p3777_p10 = por %p3776_p9, %p3775_p8 }
  0x53   :  { %p3778_p11 = pnand %p3777_p10, %p3771_p7 }
  0x55   :  { %3781 = shalt.err (!%p3778_p11)
}
  0x56   :  { %s3869_s0 = smov 128   ;;  %s3870_s21 = smov 8  }
  0x57   :  { %60 = dma.hbm_to_vmem [thread:$0]  %s4133_s3, 8192, %s55_s30, [#allocation6], %s3869_s0, %s3869_s0, %s3870_s21  }
  0x58   :  { %s3871_s25 = smov [#allocation10]   ;;  %s3872_s19 = smov [#allocation13]  }
  0x59   :  { %s82_s9 = sshll.u32 %s3871_s25, 4  ;;  %s110_s27 = sshll.u32 %s3872_s19, 4  ;;  %s83_s9 = int_to_ptr.vmem [resolvable:$true] %s82_s9  ;;  %s111_s27 = int_to_ptr.vmem [resolvable:$true] %s110_s27 }
  0x5a   :  { %s3782_s5 = scalar_lea.hbm %s4137_s7, 1024 }
  0x5b   :  { %p3783_p12 = scmp.ne.s32.totalorder %s4137_s7, %s3782_s5  ;;  %p3786_p13 = scmp.lt.u32.totalorder %s3782_s5, %s4137_s7 }
  0x5d   :  { %p3788_p0 = pnand %p3786_p13, %p3783_p12 }
  0x5f   :  { %3791 = shalt.err (!%p3788_p0)
}
  0x60   :  { %s3792_s3 = scalar_lea.vmem %s83_s9, 1024  ;;  %p3797_p2 = scmp.lt.s32.totalorder %s83_s9, %s83_s9 }
  0x61   :  { %p3793_p1 = scmp.ne.s32.totalorder %s83_s9, %s3792_s3  ;;  %p3798_p3 = scmp.lt.s32.totalorder %s3792_s3, %s3792_s3 }
  0x63   :  { %p3799_p4 = por %p3798_p3, %p3797_p2 }
  0x65   :  { %p3800_p5 = pnand %p3799_p4, %p3793_p1 }
  0x67   :  { %3803 = shalt.err (!%p3800_p5)
}
  0x68   :  { %88 = dma.hbm_to_vmem [thread:$0]  %s4137_s7, 1024, %s83_s9, [#allocation9], %s3862_s1, %s3862_s1, %s3863_s26  }
  0x69   :  { %s3804_s0 = scalar_lea.hbm %s4141_s11, 1024 }
  0x6a   :  { %p3805_p6 = scmp.ne.s32.totalorder %s4141_s11, %s3804_s0  ;;  %p3808_p7 = scmp.lt.u32.totalorder %s3804_s0, %s4141_s11 }
  0x6c   :  { %p3810_p8 = pnand %p3808_p7, %p3805_p6 }
  0x6e   :  { %3813 = shalt.err (!%p3810_p8)
}
  0x6f   :  { %s3814_s19 = scalar_lea.vmem %s111_s27, 1024  ;;  %p3819_p10 = scmp.lt.s32.totalorder %s111_s27, %s111_s27 }
  0x70   :  { %p3815_p9 = scmp.ne.s32.totalorder %s111_s27, %s3814_s19  ;;  %p3820_p11 = scmp.lt.s32.totalorder %s3814_s19, %s3814_s19 }
  0x72   :  { %p3821_p12 = por %p3820_p11, %p3819_p10 }
  0x74   :  { %p3822_p13 = pnand %p3821_p12, %p3815_p9 }
  0x76   :  { %3825 = shalt.err (!%p3822_p13)
}
  0x77   :  { %116 = dma.hbm_to_vmem [thread:$0]  %s4141_s11, 1024, %s111_s27, [#allocation12], %s3862_s1, %s3862_s1, %s3863_s26  }
  0x78   :  { %3848 = dma.done.wait [#allocation3], 1792  }
  0x79   :  { %3849 = vsyncadd [#allocation3], 4294965504 }
  0x7a   :  { %3850 = dma.done.wait [#allocation6], 33280  }
  0x7b   :  { %3851 = vsyncadd [#allocation6], 4294934016 }
  0x7c   :  { %3852 = dma.done.wait [#allocation9], 3072  }
  0x7d   :  { %3853 = vsyncadd [#allocation9], 4294964224 }
  0x7e   :  { %3854 = dma.done.wait [#allocation12], 2048  }
  0x7f   :  { %3855 = vsyncadd [#allocation12], 4294965248  ;;  %v3242_v0 = vld [vmem:[#allocation5 + $0x4] ss:$16 sps:$4 sm:$0xff]   ;;  %v3244_v1 = vld [vmem:[#allocation5 + $0xc] ss:$16 sps:$4 sm:$0xff]  }
  0x80   :  { %1364 = vmatprep.subr.bf16.mxu0 %v3242_v0  ;;  %v3246_v2 = vld [vmem:[#allocation5] ss:$16 sps:$4 sm:$0xff]   ;;  %v3247_v3 = vld [vmem:[#allocation5 + $0x8] ss:$16 sps:$4 sm:$0xff]   ;;  %1536 = vmatprep.subr.bf16.mxu1 %v3244_v1  ;;  %v3248_v4 = vld [vmem:[#allocation5 + $0x24] ss:$16 sps:$4 sm:$0xff]  }
  0x81   :  { %1365 = vmatpush1.bf16.msra.mxu0 %v3246_v2  ;;  %1537 = vmatpush1.bf16.msra.mxu1 %v3247_v3  ;;  %v3250_v5 = vld [vmem:[#allocation5 + $0x2c] ss:$16 sps:$4 sm:$0xff]   ;;  %v3252_v6 = vld [vmem:[#allocation5 + $0x20] ss:$16 sps:$4 sm:$0xff]   ;;  %v3253_v7 = vld [vmem:[#allocation5 + $0x28] ss:$16 sps:$4 sm:$0xff]  }
  0x82   :  { %1366 = vmatprep.subr.bf16.mxu0 %v3248_v4  ;;  %1538 = vmatprep.subr.bf16.mxu1 %v3250_v5  ;;  %v3254_v8 = vld [vmem:[#allocation5 + $0x44] ss:$16 sps:$4 sm:$0xff]   ;;  %v3256_v9 = vld [vmem:[#allocation5 + $0x4c] ss:$16 sps:$4 sm:$0xff]   ;;  %v3258_v10 = vld [vmem:[#allocation5 + $0x40] ss:$16 sps:$4 sm:$0xff]  }
  0x83   :  { %v3259_v11 = vld [vmem:[#allocation5 + $0x48] ss:$16 sps:$4 sm:$0xff]   ;;  %v3260_v12 = vld [vmem:[#allocation5 + $0x64] ss:$16 sps:$4 sm:$0xff]   ;;  %v3262_v13 = vld [vmem:[#allocation5 + $0x6c] ss:$16 sps:$4 sm:$0xff]  }
  0x84   :  { %v3264_v14 = vld [vmem:[#allocation5 + $0x60] ss:$16 sps:$4 sm:$0xff]   ;;  %v3265_v15 = vld [vmem:[#allocation5 + $0x68] ss:$16 sps:$4 sm:$0xff]   ;;  %v3266_v16 = vld [vmem:[#allocation5 + $0x84] ss:$16 sps:$4 sm:$0xff]  }
  0x85   :  { %1367 = vmatpush1.bf16.msra.mxu0 %v3252_v6  ;;  %1539 = vmatpush1.bf16.msra.mxu1 %v3253_v7  ;;  %v3268_v17 = vld [vmem:[#allocation5 + $0x8c] ss:$16 sps:$4 sm:$0xff]   ;;  %v3270_v18 = vld [vmem:[#allocation5 + $0x80] ss:$16 sps:$4 sm:$0xff]   ;;  %v3271_v19 = vld [vmem:[#allocation5 + $0x88] ss:$16 sps:$4 sm:$0xff]  }
  0x86   :  { %1368 = vmatprep.subr.bf16.mxu0 %v3254_v8  ;;  %1540 = vmatprep.subr.bf16.mxu1 %v3256_v9  ;;  %v3272_v20 = vld [vmem:[#allocation5 + $0xa4] ss:$16 sps:$4 sm:$0xff]   ;;  %v3274_v21 = vld [vmem:[#allocation5 + $0xac] ss:$16 sps:$4 sm:$0xff]   ;;  %v3276_v22 = vld [vmem:[#allocation5 + $0xa0] ss:$16 sps:$4 sm:$0xff]  }
  0x87   :  { %v3277_v23 = vld [vmem:[#allocation5 + $0xa8] ss:$16 sps:$4 sm:$0xff]   ;;  %v3278_v24 = vld [vmem:[#allocation5 + $0xc4] ss:$16 sps:$4 sm:$0xff]   ;;  %v3280_v25 = vld [vmem:[#allocation5 + $0xcc] ss:$16 sps:$4 sm:$0xff]  }
  0x88   :  { %v3282_v26 = vld [vmem:[#allocation5 + $0xc0] ss:$16 sps:$4 sm:$0xff]   ;;  %v3283_v27 = vld [vmem:[#allocation5 + $0xc8] ss:$16 sps:$4 sm:$0xff]   ;;  %v3284_v28 = vld [vmem:[#allocation5 + $0xe4] ss:$16 sps:$4 sm:$0xff]  }
  0x89   :  { %1369 = vmatpush1.bf16.msra.mxu0 %v3258_v10  ;;  %1541 = vmatpush1.bf16.msra.mxu1 %v3259_v11  ;;  %v3286_v29 = vld [vmem:[#allocation5 + $0xec] ss:$16 sps:$4 sm:$0xff]   ;;  %v3288_v30 = vld [vmem:[#allocation5 + $0xe0] ss:$16 sps:$4 sm:$0xff]   ;;  %v3289_v31 = vld [vmem:[#allocation5 + $0xe8] ss:$16 sps:$4 sm:$0xff]  }
  0x8a   :  { %1370 = vmatprep.subr.bf16.mxu0 %v3260_v12  ;;  %1542 = vmatprep.subr.bf16.mxu1 %v3262_v13  ;;  %v3290_v32 = vld [vmem:[#allocation5 + $0x104] ss:$16 sps:$4 sm:$0xff]   ;;  %v3292_v33 = vld [vmem:[#allocation5 + $0x10c] ss:$16 sps:$4 sm:$0xff]   ;;  %v3294_v34 = vld [vmem:[#allocation5 + $0x100] ss:$16 sps:$4 sm:$0xff]  }
  0x8b   :  { %v3295_v35 = vld [vmem:[#allocation5 + $0x108] ss:$16 sps:$4 sm:$0xff]   ;;  %v3296_v36 = vld [vmem:[#allocation5 + $0x124] ss:$16 sps:$4 sm:$0xff]   ;;  %v3298_v37 = vld [vmem:[#allocation5 + $0x12c] ss:$16 sps:$4 sm:$0xff]  }
  0x8c   :  { %v3300_v38 = vld [vmem:[#allocation5 + $0x120] ss:$16 sps:$4 sm:$0xff]   ;;  %v3301_v39 = vld [vmem:[#allocation5 + $0x128] ss:$16 sps:$4 sm:$0xff]   ;;  %v3302_v40 = vld [vmem:[#allocation5 + $0x144] ss:$16 sps:$4 sm:$0xff]  }
  0x8d   :  { %1371 = vmatpush1.bf16.msra.mxu0 %v3264_v14  ;;  %1543 = vmatpush1.bf16.msra.mxu1 %v3265_v15  ;;  %v3304_v41 = vld [vmem:[#allocation5 + $0x14c] ss:$16 sps:$4 sm:$0xff]   ;;  %v3306_v42 = vld [vmem:[#allocation5 + $0x140] ss:$16 sps:$4 sm:$0xff]   ;;  %v3307_v43 = vld [vmem:[#allocation5 + $0x148] ss:$16 sps:$4 sm:$0xff]  }
  0x8e   :  { %1372 = vmatprep.subr.bf16.mxu0 %v3266_v16  ;;  %1544 = vmatprep.subr.bf16.mxu1 %v3268_v17  ;;  %v3308_v44 = vld [vmem:[#allocation5 + $0x164] ss:$16 sps:$4 sm:$0xff]   ;;  %v3310_v45 = vld [vmem:[#allocation5 + $0x16c] ss:$16 sps:$4 sm:$0xff]   ;;  %v3312_v48 = vld [vmem:[#allocation5 + $0x160] ss:$16 sps:$4 sm:$0xff]  }
  0x8f   :  { %v142_v46 = vld [vmem:[#allocation2 + $0x8] sm:$0xff]  ;;  %v149_v47 = vld [vmem:[#allocation2 + $0x40] sm:$0xff]  ;;  %v148_v5 = vld [vmem:[#allocation2 + $0x38] sm:$0xff]  ;;  %vm1360_vm0 = vcmask 130048   ;;  %vm3875_vm1 = vmmov 0   ;;  %s3876_s16 = smov [#allocation14]  }
  0x90   :  { %v3313_v49 = vld [vmem:[#allocation5 + $0x168] ss:$16 sps:$4 sm:$0xff]   ;;  %v156_v50 = vpack.c.bf16 %v149_v47, %v142_v46  ;;  %v3314_v51 = vld [vmem:[#allocation5 + $0x184] ss:$16 sps:$4 sm:$0xff]   ;;  %v3316_v52 = vld [vmem:[#allocation5 + $0x18c] ss:$16 sps:$4 sm:$0xff]  }
  0x91   :  { %1373 = vmatpush1.bf16.msra.mxu0 %v3270_v18  ;;  %1545 = vmatpush1.bf16.msra.mxu1 %v3271_v19  ;;  %v3318_v53 = vld [vmem:[#allocation5 + $0x180] ss:$16 sps:$4 sm:$0xff]   ;;  %v3319_v54 = vld [vmem:[#allocation5 + $0x188] ss:$16 sps:$4 sm:$0xff]   ;;  %v3320_v55 = vld [vmem:[#allocation5 + $0x1a4] ss:$16 sps:$4 sm:$0xff]  }
  0x92   :  { %1374 = vmatprep.subr.bf16.mxu0 %v3272_v20  ;;  %1546 = vmatprep.subr.bf16.mxu1 %v3274_v21  ;;  %v3322_v56 = vld [vmem:[#allocation5 + $0x1ac] ss:$16 sps:$4 sm:$0xff]   ;;  %v3324_v57 = vld [vmem:[#allocation5 + $0x1a0] ss:$16 sps:$4 sm:$0xff]   ;;  %v3325_v58 = vld [vmem:[#allocation5 + $0x1a8] ss:$16 sps:$4 sm:$0xff]  }
  0x93   :  { %1396 = vmatprep.mubr.bf16.mxu0 %v156_v50  ;;  %1568 = vmatprep.mubr.bf16.mxu1 %v156_v50  ;;  %v3326_v59 = vld [vmem:[#allocation5 + $0x1c4] ss:$16 sps:$4 sm:$0xff]   ;;  %v3328_v60 = vld [vmem:[#allocation5 + $0x1cc] ss:$16 sps:$4 sm:$0xff]   ;;  %v3330_v61 = vld [vmem:[#allocation5 + $0x1c0] ss:$16 sps:$4 sm:$0xff]  }
  0x94   :  { %v3331_v62 = vld [vmem:[#allocation5 + $0x1c8] ss:$16 sps:$4 sm:$0xff]   ;;  %v3332_v63 = vld [vmem:[#allocation5 + $0x1e4] ss:$16 sps:$4 sm:$0xff]   ;;  %v3334_v0 = vld [vmem:[#allocation5 + $0x1ec] ss:$16 sps:$4 sm:$0xff]  }
  0x95   :  { %1375 = vmatpush1.bf16.msra.mxu0 %v3276_v22  ;;  %1547 = vmatpush1.bf16.msra.mxu1 %v3277_v23  ;;  %v3336_v1 = vld [vmem:[#allocation5 + $0x1e0] ss:$16 sps:$4 sm:$0xff]   ;;  %v3337_v2 = vld [vmem:[#allocation5 + $0x1e8] ss:$16 sps:$4 sm:$0xff]   ;;  %v3340_v3 = vld [vmem:[#allocation5 + $0x204] ss:$16 sps:$4 sm:$0xff]  }
  0x96   :  { %1376 = vmatprep.subr.bf16.mxu0 %v3278_v24  ;;  %1548 = vmatprep.subr.bf16.mxu1 %v3280_v25  ;;  %v141_v4 = vld [vmem:[#allocation2] sm:$0xff]  ;;  %v3343_v6 = vld [vmem:[#allocation5 + $0x20c] ss:$16 sps:$4 sm:$0xff]   ;;  %v3341_v8 = vld [vmem:[#allocation5 + $0x208] ss:$16 sps:$4 sm:$0xff]   ;;  %s2744_s3 = sshll.u32 %s3876_s16, 4  ;;  %s2745_s3 = int_to_ptr.vmem [resolvable:$true] %s2744_s3 }
  0x97   :  { %v3338_v7 = vld [vmem:[#allocation5 + $0x200] ss:$16 sps:$4 sm:$0xff]   ;;  %v155_v9 = vpack.c.bf16 %v148_v5, %v141_v4  ;;  %v3346_v10 = vld [vmem:[#allocation5 + $0x224] ss:$16 sps:$4 sm:$0xff]   ;;  %v3349_v11 = vld [vmem:[#allocation5 + $0x22c] ss:$16 sps:$4 sm:$0xff]   ;;  %p3831_p1 = scmp.lt.s32.totalorder %s2745_s3, %s2745_s3 }
  0x98   :  { %v3344_v12 = vld [vmem:[#allocation5 + $0x220] ss:$16 sps:$4 sm:$0xff]   ;;  %v3347_v13 = vld [vmem:[#allocation5 + $0x228] ss:$16 sps:$4 sm:$0xff]   ;;  %v3352_v14 = vld [vmem:[#allocation5 + $0x244] ss:$16 sps:$4 sm:$0xff]  }
  0x99   :  { %1377 = vmatpush1.bf16.msra.mxu0 %v3282_v26  ;;  %1549 = vmatpush1.bf16.msra.mxu1 %v3283_v27  ;;  %v3355_v15 = vld [vmem:[#allocation5 + $0x24c] ss:$16 sps:$4 sm:$0xff]   ;;  %v3350_v16 = vld [vmem:[#allocation5 + $0x240] ss:$16 sps:$4 sm:$0xff]   ;;  %v3353_v17 = vld [vmem:[#allocation5 + $0x248] ss:$16 sps:$4 sm:$0xff]  }
  0x9a   :  { %1378 = vmatprep.subr.bf16.mxu0 %v3284_v28  ;;  %1550 = vmatprep.subr.bf16.mxu1 %v3286_v29  ;;  %v3358_v18 = vld [vmem:[#allocation5 + $0x264] ss:$16 sps:$4 sm:$0xff]   ;;  %v3361_v19 = vld [vmem:[#allocation5 + $0x26c] ss:$16 sps:$4 sm:$0xff]   ;;  %v3356_v20 = vld [vmem:[#allocation5 + $0x260] ss:$16 sps:$4 sm:$0xff]  }
  0x9b   :  { %v3359_v21 = vld [vmem:[#allocation5 + $0x268] ss:$16 sps:$4 sm:$0xff]   ;;  %v3364_v22 = vld [vmem:[#allocation5 + $0x284] ss:$16 sps:$4 sm:$0xff]   ;;  %v3367_v23 = vld [vmem:[#allocation5 + $0x28c] ss:$16 sps:$4 sm:$0xff]  }
  0x9c   :  { %v3362_v24 = vld [vmem:[#allocation5 + $0x280] ss:$16 sps:$4 sm:$0xff]   ;;  %v3365_v25 = vld [vmem:[#allocation5 + $0x288] ss:$16 sps:$4 sm:$0xff]   ;;  %v3370_v26 = vld [vmem:[#allocation5 + $0x2a4] ss:$16 sps:$4 sm:$0xff]  }
  0x9d   :  { %1379 = vmatpush1.bf16.msra.mxu0 %v3288_v30  ;;  %1551 = vmatpush1.bf16.msra.mxu1 %v3289_v31  ;;  %v3373_v27 = vld [vmem:[#allocation5 + $0x2ac] ss:$16 sps:$4 sm:$0xff]   ;;  %v3368_v28 = vld [vmem:[#allocation5 + $0x2a0] ss:$16 sps:$4 sm:$0xff]   ;;  %v3371_v29 = vld [vmem:[#allocation5 + $0x2a8] ss:$16 sps:$4 sm:$0xff]  }
  0x9e   :  { %1380 = vmatprep.subr.bf16.mxu0 %v3290_v32  ;;  %1552 = vmatprep.subr.bf16.mxu1 %v3292_v33  ;;  %v3376_v30 = vld [vmem:[#allocation5 + $0x2c4] ss:$16 sps:$4 sm:$0xff]   ;;  %v3379_v31 = vld [vmem:[#allocation5 + $0x2cc] ss:$16 sps:$4 sm:$0xff]   ;;  %v3392_v47 = vld [vmem:[#allocation5 + $0x320] ss:$16 sps:$4 sm:$0xff]  }
  0x9f   :  { %v144_v32 = vld [vmem:[#allocation2 + $0x18] sm:$0xff]  ;;  %v151_v33 = vld [vmem:[#allocation2 + $0x50] sm:$0xff] }
  0xa0   :  { %v3397_v46 = vld [vmem:[#allocation5 + $0x32c] ss:$16 sps:$4 sm:$0xff]   ;;  %v3425_v4 = vld [vmem:[#allocation5 + $0x3c8] ss:$16 sps:$4 sm:$0xff]   ;;  %v3430_v5 = vld [vmem:[#allocation5 + $0x3e4] ss:$16 sps:$4 sm:$0xff]  }
  0xa1   :  { %1381 = vmatpush1.bf16.msra.mxu0 %v3294_v34  ;;  %1553 = vmatpush1.bf16.msra.mxu1 %v3295_v35  ;;  %v3374_v34 = vld [vmem:[#allocation5 + $0x2c0] ss:$16 sps:$4 sm:$0xff]   ;;  %v3377_v35 = vld [vmem:[#allocation5 + $0x2c8] ss:$16 sps:$4 sm:$0xff]   ;;  %v3403_v50 = vld [vmem:[#allocation5 + $0x34c] ss:$16 sps:$4 sm:$0xff]  }
  0xa2   :  { %1382 = vmatprep.subr.bf16.mxu0 %v3296_v36  ;;  %1554 = vmatprep.subr.bf16.mxu1 %v3298_v37  ;;  %v158_v36 = vpack.c.bf16 %v151_v33, %v144_v32  ;;  %v3382_v37 = vld [vmem:[#allocation5 + $0x2e4] ss:$16 sps:$4 sm:$0xff]   ;;  %v3463_v32 = vld [vmem:[#allocation5 + $0x48c] ss:$16 sps:$4 sm:$0xff]   ;;  %v3458_v33 = vld [vmem:[#allocation5 + $0x480] ss:$16 sps:$4 sm:$0xff]  }
  0xa5   :  { %1383 = vmatpush1.bf16.msra.mxu0 %v3300_v38  ;;  %1555 = vmatpush1.bf16.msra.mxu1 %v3301_v39  ;;  %v3385_v38 = vld [vmem:[#allocation5 + $0x2ec] ss:$16 sps:$4 sm:$0xff]   ;;  %v3380_v39 = vld [vmem:[#allocation5 + $0x2e0] ss:$16 sps:$4 sm:$0xff]  }
  0xa6   :  { %1384 = vmatprep.subr.bf16.mxu0 %v3302_v40  ;;  %1556 = vmatprep.subr.bf16.mxu1 %v3304_v41  ;;  %v3383_v40 = vld [vmem:[#allocation5 + $0x2e8] ss:$16 sps:$4 sm:$0xff]   ;;  %v3388_v41 = vld [vmem:[#allocation5 + $0x304] ss:$16 sps:$4 sm:$0xff]  }
  0xa9   :  { %1385 = vmatpush1.bf16.msra.mxu0 %v3306_v42  ;;  %1557 = vmatpush1.bf16.msra.mxu1 %v3307_v43  ;;  %v3391_v42 = vld [vmem:[#allocation5 + $0x30c] ss:$16 sps:$4 sm:$0xff]   ;;  %v3386_v43 = vld [vmem:[#allocation5 + $0x300] ss:$16 sps:$4 sm:$0xff]  }
  0xaa   :  { %1386 = vmatprep.subr.bf16.mxu0 %v3308_v44  ;;  %1558 = vmatprep.subr.bf16.mxu1 %v3310_v45  ;;  %v3389_v44 = vld [vmem:[#allocation5 + $0x308] ss:$16 sps:$4 sm:$0xff]   ;;  %v3394_v45 = vld [vmem:[#allocation5 + $0x324] ss:$16 sps:$4 sm:$0xff]  }
  0xad   :  { %1387 = vmatpush1.bf16.msra.mxu0 %v3312_v48  ;;  %1559 = vmatpush1.bf16.msra.mxu1 %v3313_v49  ;;  %v3395_v48 = vld [vmem:[#allocation5 + $0x328] ss:$16 sps:$4 sm:$0xff]   ;;  %v3400_v49 = vld [vmem:[#allocation5 + $0x344] ss:$16 sps:$4 sm:$0xff]  }
  0xae   :  { %1388 = vmatprep.subr.bf16.mxu0 %v3314_v51  ;;  %1560 = vmatprep.subr.bf16.mxu1 %v3316_v52  ;;  %v3398_v51 = vld [vmem:[#allocation5 + $0x340] ss:$16 sps:$4 sm:$0xff]   ;;  %v3401_v52 = vld [vmem:[#allocation5 + $0x348] ss:$16 sps:$4 sm:$0xff]  }
  0xb1   :  { %1389 = vmatpush1.bf16.msra.mxu0 %v3318_v53  ;;  %1561 = vmatpush1.bf16.msra.mxu1 %v3319_v54  ;;  %v3406_v53 = vld [vmem:[#allocation5 + $0x364] ss:$16 sps:$4 sm:$0xff]   ;;  %v3409_v54 = vld [vmem:[#allocation5 + $0x36c] ss:$16 sps:$4 sm:$0xff]  }
  0xb2   :  { %1390 = vmatprep.subr.bf16.mxu0 %v3320_v55  ;;  %1562 = vmatprep.subr.bf16.mxu1 %v3322_v56  ;;  %v3404_v55 = vld [vmem:[#allocation5 + $0x360] ss:$16 sps:$4 sm:$0xff]   ;;  %v3407_v56 = vld [vmem:[#allocation5 + $0x368] ss:$16 sps:$4 sm:$0xff]  }
  0xb5   :  { %1391 = vmatpush1.bf16.msra.mxu0 %v3324_v57  ;;  %1563 = vmatpush1.bf16.msra.mxu1 %v3325_v58  ;;  %v3412_v57 = vld [vmem:[#allocation5 + $0x384] ss:$16 sps:$4 sm:$0xff]   ;;  %v3415_v58 = vld [vmem:[#allocation5 + $0x38c] ss:$16 sps:$4 sm:$0xff]  }
  0xb6   :  { %1392 = vmatprep.subr.bf16.mxu0 %v3326_v59  ;;  %1564 = vmatprep.subr.bf16.mxu1 %v3328_v60  ;;  %v3410_v59 = vld [vmem:[#allocation5 + $0x380] ss:$16 sps:$4 sm:$0xff]   ;;  %v3413_v60 = vld [vmem:[#allocation5 + $0x388] ss:$16 sps:$4 sm:$0xff]  }
  0xb9   :  { %1393 = vmatpush1.bf16.msra.mxu0 %v3330_v61  ;;  %1565 = vmatpush1.bf16.msra.mxu1 %v3331_v62  ;;  %v3418_v61 = vld [vmem:[#allocation5 + $0x3a4] ss:$16 sps:$4 sm:$0xff]   ;;  %v3421_v62 = vld [vmem:[#allocation5 + $0x3ac] ss:$16 sps:$4 sm:$0xff]  }
  0xba   :  { %1394 = vmatprep.subr.bf16.mxu0 %v3332_v63  ;;  %1566 = vmatprep.subr.bf16.mxu1 %v3334_v0  ;;  %v3416_v63 = vld [vmem:[#allocation5 + $0x3a0] ss:$16 sps:$4 sm:$0xff]   ;;  %v3419_v0 = vld [vmem:[#allocation5 + $0x3a8] ss:$16 sps:$4 sm:$0xff]  }
  0xbd   :  { %1395 = vmatpush1.bf16.msra.mxu0 %v3336_v1  ;;  %1567 = vmatpush1.bf16.msra.mxu1 %v3337_v2  ;;  %v3424_v1 = vld [vmem:[#allocation5 + $0x3c4] ss:$16 sps:$4 sm:$0xff]   ;;  %v3427_v2 = vld [vmem:[#allocation5 + $0x3cc] ss:$16 sps:$4 sm:$0xff]  }
  0xbe   :  { %1407 = vmatprep.subr.bf16.mxu0 %v3340_v3  ;;  %1579 = vmatprep.subr.bf16.mxu1 %v3343_v6  ;;  %v3422_v3 = vld [vmem:[#allocation5 + $0x3c0] ss:$16 sps:$4 sm:$0xff]   ;;  %v3433_v6 = vld [vmem:[#allocation5 + $0x3ec] ss:$16 sps:$4 sm:$0xff]  }
  0xc0   :  { %1397 = vmatmul.mubr.bf16.vlgmr.msra.gmra.mrb[0].mxu0 %v155_v9  ;;  %1569 = vmatmul.mubr.bf16.vlgmr.msra.gmra.mrb[0].mxu1 %v155_v9  ;;  %v3436_v9 = vld [vmem:[#allocation5 + $0x404] ss:$16 sps:$4 sm:$0xff]  }
  0xc1   :  { %1408 = vmatpush1.bf16.msra.mxu0 %v3338_v7  ;;  %1580 = vmatpush1.bf16.msra.mxu1 %v3341_v8  ;;  %v3428_v7 = vld [vmem:[#allocation5 + $0x3e0] ss:$16 sps:$4 sm:$0xff]   ;;  %v3431_v8 = vld [vmem:[#allocation5 + $0x3e8] ss:$16 sps:$4 sm:$0xff]  }
  0xc2   :  { %1409 = vmatprep.subr.bf16.mxu0 %v3346_v10  ;;  %1581 = vmatprep.subr.bf16.mxu1 %v3349_v11  ;;  %v143_v10 = vld [vmem:[#allocation2 + $0x10] sm:$0xff]  ;;  %v150_v11 = vld [vmem:[#allocation2 + $0x48] sm:$0xff] }
  0xc3   :  { %1439 = vmatprep.mubr.bf16.mxu0 %v158_v36  ;;  %1611 = vmatprep.mubr.bf16.mxu1 %v158_v36  ;;  %v3469_v36 = vld [vmem:[#allocation5 + $0x4ac] ss:$16 sps:$4 sm:$0xff]  }
  0xc5   :  { %1410 = vmatpush1.bf16.msra.mxu0 %v3344_v12  ;;  %1582 = vmatpush1.bf16.msra.mxu1 %v3347_v13  ;;  %v3439_v12 = vld [vmem:[#allocation5 + $0x40c] ss:$16 sps:$4 sm:$0xff]   ;;  %v3434_v13 = vld [vmem:[#allocation5 + $0x400] ss:$16 sps:$4 sm:$0xff]  }
  0xc6   :  { %1411 = vmatprep.subr.bf16.mxu0 %v3352_v14  ;;  %1583 = vmatprep.subr.bf16.mxu1 %v3355_v15  ;;  %v3437_v14 = vld [vmem:[#allocation5 + $0x408] ss:$16 sps:$4 sm:$0xff]   ;;  %v157_v15 = vpack.c.bf16 %v150_v11, %v143_v10  ;;  %v3526_v11 = vld [vmem:[#allocation5 + $0x5e4] ss:$16 sps:$4 sm:$0xff]  }
  0xc7   :  { %v3521_v10 = vld [vmem:[#allocation5 + $0x5c8] ss:$16 sps:$4 sm:$0xff]  }
  0xc9   :  { %1412 = vmatpush1.bf16.msra.mxu0 %v3350_v16  ;;  %1584 = vmatpush1.bf16.msra.mxu1 %v3353_v17  ;;  %v3442_v16 = vld [vmem:[#allocation5 + $0x424] ss:$16 sps:$4 sm:$0xff]   ;;  %v3445_v17 = vld [vmem:[#allocation5 + $0x42c] ss:$16 sps:$4 sm:$0xff]  }
  0xca   :  { %1413 = vmatprep.subr.bf16.mxu0 %v3358_v18  ;;  %1585 = vmatprep.subr.bf16.mxu1 %v3361_v19  ;;  %v146_v18 = vld [vmem:[#allocation2 + $0x28] sm:$0xff]  ;;  %v3440_v19 = vld [vmem:[#allocation5 + $0x420] ss:$16 sps:$4 sm:$0xff]  }
  0xcd   :  { %1414 = vmatpush1.bf16.msra.mxu0 %v3356_v20  ;;  %1586 = vmatpush1.bf16.msra.mxu1 %v3359_v21  ;;  %v3443_v20 = vld [vmem:[#allocation5 + $0x428] ss:$16 sps:$4 sm:$0xff]   ;;  %v153_v21 = vld [vmem:[#allocation2 + $0x60] sm:$0xff] }
  0xce   :  { %1415 = vmatprep.subr.bf16.mxu0 %v3364_v22  ;;  %1587 = vmatprep.subr.bf16.mxu1 %v3367_v23  ;;  %v3448_v22 = vld [vmem:[#allocation5 + $0x444] ss:$16 sps:$4 sm:$0xff]   ;;  %v160_v23 = vpack.c.bf16 %v153_v21, %v146_v18  ;;  %v3535_v18 = vld [vmem:[#allocation5 + $0x60c] ss:$16 sps:$4 sm:$0xff]  }
  0xd1   :  { %1416 = vmatpush1.bf16.msra.mxu0 %v3362_v24  ;;  %1588 = vmatpush1.bf16.msra.mxu1 %v3365_v25  ;;  %v3451_v24 = vld [vmem:[#allocation5 + $0x44c] ss:$16 sps:$4 sm:$0xff]   ;;  %v3446_v25 = vld [vmem:[#allocation5 + $0x440] ss:$16 sps:$4 sm:$0xff]  }
  0xd2   :  { %1417 = vmatprep.subr.bf16.mxu0 %v3370_v26  ;;  %1589 = vmatprep.subr.bf16.mxu1 %v3373_v27  ;;  %v3449_v26 = vld [vmem:[#allocation5 + $0x448] ss:$16 sps:$4 sm:$0xff]   ;;  %v3454_v27 = vld [vmem:[#allocation5 + $0x464] ss:$16 sps:$4 sm:$0xff]  }
  0xd5   :  { %1418 = vmatpush1.bf16.msra.mxu0 %v3368_v28  ;;  %1590 = vmatpush1.bf16.msra.mxu1 %v3371_v29  ;;  %v3457_v28 = vld [vmem:[#allocation5 + $0x46c] ss:$16 sps:$4 sm:$0xff]   ;;  %v3452_v29 = vld [vmem:[#allocation5 + $0x460] ss:$16 sps:$4 sm:$0xff]  }
  0xd6   :  { %1419 = vmatprep.subr.bf16.mxu0 %v3376_v30  ;;  %1591 = vmatprep.subr.bf16.mxu1 %v3379_v31  ;;  %v3455_v30 = vld [vmem:[#allocation5 + $0x468] ss:$16 sps:$4 sm:$0xff]   ;;  %v3460_v31 = vld [vmem:[#allocation5 + $0x484] ss:$16 sps:$4 sm:$0xff]  }
  0xd9   :  { %1420 = vmatpush1.bf16.msra.mxu0 %v3374_v34  ;;  %1592 = vmatpush1.bf16.msra.mxu1 %v3377_v35  ;;  %v3461_v34 = vld [vmem:[#allocation5 + $0x488] ss:$16 sps:$4 sm:$0xff]   ;;  %v3466_v35 = vld [vmem:[#allocation5 + $0x4a4] ss:$16 sps:$4 sm:$0xff]  }
  0xda   :  { %1421 = vmatprep.subr.bf16.mxu0 %v3382_v37  ;;  %1593 = vmatprep.subr.bf16.mxu1 %v3385_v38  ;;  %v3464_v37 = vld [vmem:[#allocation5 + $0x4a0] ss:$16 sps:$4 sm:$0xff]   ;;  %v3467_v38 = vld [vmem:[#allocation5 + $0x4a8] ss:$16 sps:$4 sm:$0xff]  }
  0xdd   :  { %1422 = vmatpush1.bf16.msra.mxu0 %v3380_v39  ;;  %1594 = vmatpush1.bf16.msra.mxu1 %v3383_v40  ;;  %v3472_v39 = vld [vmem:[#allocation5 + $0x4c4] ss:$16 sps:$4 sm:$0xff]   ;;  %v3475_v40 = vld [vmem:[#allocation5 + $0x4cc] ss:$16 sps:$4 sm:$0xff]  }
  0xde   :  { %1423 = vmatprep.subr.bf16.mxu0 %v3388_v41  ;;  %1595 = vmatprep.subr.bf16.mxu1 %v3391_v42  ;;  %v3470_v41 = vld [vmem:[#allocation5 + $0x4c0] ss:$16 sps:$4 sm:$0xff]   ;;  %v3473_v42 = vld [vmem:[#allocation5 + $0x4c8] ss:$16 sps:$4 sm:$0xff]  }
  0xe1   :  { %1424 = vmatpush1.bf16.msra.mxu0 %v3386_v43  ;;  %1596 = vmatpush1.bf16.msra.mxu1 %v3389_v44  ;;  %v3478_v43 = vld [vmem:[#allocation5 + $0x4e4] ss:$16 sps:$4 sm:$0xff]   ;;  %v3481_v44 = vld [vmem:[#allocation5 + $0x4ec] ss:$16 sps:$4 sm:$0xff]  }
  0xe2   :  { %1425 = vmatprep.subr.bf16.mxu0 %v3394_v45  ;;  %1597 = vmatprep.subr.bf16.mxu1 %v3397_v46  ;;  %v3476_v45 = vld [vmem:[#allocation5 + $0x4e0] ss:$16 sps:$4 sm:$0xff]   ;;  %v3479_v46 = vld [vmem:[#allocation5 + $0x4e8] ss:$16 sps:$4 sm:$0xff]  }
  0xe5   :  { %1426 = vmatpush1.bf16.msra.mxu0 %v3392_v47  ;;  %1598 = vmatpush1.bf16.msra.mxu1 %v3395_v48  ;;  %v3484_v47 = vld [vmem:[#allocation5 + $0x504] ss:$16 sps:$4 sm:$0xff]   ;;  %v3487_v48 = vld [vmem:[#allocation5 + $0x50c] ss:$16 sps:$4 sm:$0xff]  }
  0xe6   :  { %1427 = vmatprep.subr.bf16.mxu0 %v3400_v49  ;;  %1599 = vmatprep.subr.bf16.mxu1 %v3403_v50  ;;  %v3482_v49 = vld [vmem:[#allocation5 + $0x500] ss:$16 sps:$4 sm:$0xff]   ;;  %v3485_v50 = vld [vmem:[#allocation5 + $0x508] ss:$16 sps:$4 sm:$0xff]  }
  0xe9   :  { %1428 = vmatpush1.bf16.msra.mxu0 %v3398_v51  ;;  %1600 = vmatpush1.bf16.msra.mxu1 %v3401_v52  ;;  %v3490_v51 = vld [vmem:[#allocation5 + $0x524] ss:$16 sps:$4 sm:$0xff]   ;;  %v3493_v52 = vld [vmem:[#allocation5 + $0x52c] ss:$16 sps:$4 sm:$0xff]  }
  0xea   :  { %1429 = vmatprep.subr.bf16.mxu0 %v3406_v53  ;;  %1601 = vmatprep.subr.bf16.mxu1 %v3409_v54  ;;  %v3488_v53 = vld [vmem:[#allocation5 + $0x520] ss:$16 sps:$4 sm:$0xff]   ;;  %v3491_v54 = vld [vmem:[#allocation5 + $0x528] ss:$16 sps:$4 sm:$0xff]  }
  0xed   :  { %1430 = vmatpush1.bf16.msra.mxu0 %v3404_v55  ;;  %1602 = vmatpush1.bf16.msra.mxu1 %v3407_v56  ;;  %v3496_v55 = vld [vmem:[#allocation5 + $0x544] ss:$16 sps:$4 sm:$0xff]   ;;  %v3499_v56 = vld [vmem:[#allocation5 + $0x54c] ss:$16 sps:$4 sm:$0xff]  }
  0xee   :  { %1431 = vmatprep.subr.bf16.mxu0 %v3412_v57  ;;  %1603 = vmatprep.subr.bf16.mxu1 %v3415_v58  ;;  %v3494_v57 = vld [vmem:[#allocation5 + $0x540] ss:$16 sps:$4 sm:$0xff]   ;;  %v3497_v58 = vld [vmem:[#allocation5 + $0x548] ss:$16 sps:$4 sm:$0xff]  }
  0xf1   :  { %1432 = vmatpush1.bf16.msra.mxu0 %v3410_v59  ;;  %1604 = vmatpush1.bf16.msra.mxu1 %v3413_v60  ;;  %v3502_v59 = vld [vmem:[#allocation5 + $0x564] ss:$16 sps:$4 sm:$0xff]   ;;  %v3505_v60 = vld [vmem:[#allocation5 + $0x56c] ss:$16 sps:$4 sm:$0xff]  }
  0xf2   :  { %1433 = vmatprep.subr.bf16.mxu0 %v3418_v61  ;;  %1605 = vmatprep.subr.bf16.mxu1 %v3421_v62  ;;  %v3500_v61 = vld [vmem:[#allocation5 + $0x560] ss:$16 sps:$4 sm:$0xff]   ;;  %v3503_v62 = vld [vmem:[#allocation5 + $0x568] ss:$16 sps:$4 sm:$0xff]  }
  0xf5   :  { %1434 = vmatpush1.bf16.msra.mxu0 %v3416_v63  ;;  %1606 = vmatpush1.bf16.msra.mxu1 %v3419_v0  ;;  %v3508_v63 = vld [vmem:[#allocation5 + $0x584] ss:$16 sps:$4 sm:$0xff]   ;;  %v3511_v0 = vld [vmem:[#allocation5 + $0x58c] ss:$16 sps:$4 sm:$0xff]  }
  0xf6   :  { %1435 = vmatprep.subr.bf16.mxu0 %v3424_v1  ;;  %1607 = vmatprep.subr.bf16.mxu1 %v3427_v2  ;;  %v3506_v1 = vld [vmem:[#allocation5 + $0x580] ss:$16 sps:$4 sm:$0xff]   ;;  %v3509_v2 = vld [vmem:[#allocation5 + $0x588] ss:$16 sps:$4 sm:$0xff]  }
  0xf9   :  { %1436 = vmatpush1.bf16.msra.mxu0 %v3422_v3  ;;  %1608 = vmatpush1.bf16.msra.mxu1 %v3425_v4  ;;  %v3514_v3 = vld [vmem:[#allocation5 + $0x5a4] ss:$16 sps:$4 sm:$0xff]   ;;  %v3517_v4 = vld [vmem:[#allocation5 + $0x5ac] ss:$16 sps:$4 sm:$0xff]  }
  0xfa   :  { %1437 = vmatprep.subr.bf16.mxu0 %v3430_v5  ;;  %1609 = vmatprep.subr.bf16.mxu1 %v3433_v6  ;;  %v3512_v5 = vld [vmem:[#allocation5 + $0x5a0] ss:$16 sps:$4 sm:$0xff]   ;;  %v3515_v6 = vld [vmem:[#allocation5 + $0x5a8] ss:$16 sps:$4 sm:$0xff]  }
  0xfd   :  { %1438 = vmatpush1.bf16.msra.mxu0 %v3428_v7  ;;  %1610 = vmatpush1.bf16.msra.mxu1 %v3431_v8  ;;  %v3520_v7 = vld [vmem:[#allocation5 + $0x5c4] ss:$16 sps:$4 sm:$0xff]   ;;  %v3523_v8 = vld [vmem:[#allocation5 + $0x5cc] ss:$16 sps:$4 sm:$0xff]  }
  0xfe   :  { %1450 = vmatprep.subr.bf16.mxu0 %v3436_v9  ;;  %1622 = vmatprep.subr.bf16.mxu1 %v3439_v12  ;;  %v3518_v9 = vld [vmem:[#allocation5 + $0x5c0] ss:$16 sps:$4 sm:$0xff]   ;;  %v3529_v12 = vld [vmem:[#allocation5 + $0x5ec] ss:$16 sps:$4 sm:$0xff]  }
 0x100   :  { %1440 = vmatmul.mubr.bf16.vlgmr.msra.gmra.mrb[0].mxu0 %v157_v15  ;;  %1612 = vmatmul.mubr.bf16.vlgmr.msra.gmra.mrb[0].mxu1 %v157_v15  ;;  %v145_v15 = vld [vmem:[#allocation2 + $0x20] sm:$0xff] }
 0x101   :  { %1451 = vmatpush1.bf16.msra.mxu0 %v3434_v13  ;;  %1623 = vmatpush1.bf16.msra.mxu1 %v3437_v14  ;;  %v3524_v13 = vld [vmem:[#allocation5 + $0x5e0] ss:$16 sps:$4 sm:$0xff]   ;;  %v3527_v14 = vld [vmem:[#allocation5 + $0x5e8] ss:$16 sps:$4 sm:$0xff]  }
 0x102   :  { %1452 = vmatprep.subr.bf16.mxu0 %v3442_v16  ;;  %1624 = vmatprep.subr.bf16.mxu1 %v3445_v17  ;;  %v152_v16 = vld [vmem:[#allocation2 + $0x58] sm:$0xff]  ;;  %v3532_v17 = vld [vmem:[#allocation5 + $0x604] ss:$16 sps:$4 sm:$0xff]  }
 0x103   :  { %1482 = vmatprep.mubr.bf16.mxu0 %v160_v23  ;;  %1654 = vmatprep.mubr.bf16.mxu1 %v160_v23  ;;  %v159_v21 = vpack.c.bf16 %v152_v16, %v145_v15  ;;  %v3873_v23 = vmov 0  }
 0x105   :  { %1453 = vmatpush1.bf16.msra.mxu0 %v3440_v19  ;;  %1625 = vmatpush1.bf16.msra.mxu1 %v3443_v20  ;;  %v3530_v19 = vld [vmem:[#allocation5 + $0x600] ss:$16 sps:$4 sm:$0xff]   ;;  %v3533_v20 = vld [vmem:[#allocation5 + $0x608] ss:$16 sps:$4 sm:$0xff]  }
 0x106   :  { %1454 = vmatprep.subr.bf16.mxu0 %v3448_v22  ;;  %1626 = vmatprep.subr.bf16.mxu1 %v3451_v24  ;;  %v3538_v22 = vld [vmem:[#allocation7 + $0x4] ss:$8 sps:$4 sm:$0xff]  }
 0x107   :  { %v147_v24 = vld [vmem:[#allocation2 + $0x30] sm:$0xff] }
 0x109   :  { %1455 = vmatpush1.bf16.msra.mxu0 %v3446_v25  ;;  %1627 = vmatpush1.bf16.msra.mxu1 %v3449_v26  ;;  %v154_v25 = vld [vmem:[#allocation2 + $0x68] sm:$0xff] }
 0x10a   :  { %1456 = vmatprep.subr.bf16.mxu0 %v3454_v27  ;;  %1628 = vmatprep.subr.bf16.mxu1 %v3457_v28  ;;  %v161_v26 = vpack.c.bf16 %v154_v25, %v147_v24  ;;  %v3536_v27 = vld [vmem:[#allocation7] ss:$8 sps:$4 sm:$0xff]   ;;  %v3541_v28 = vld [vmem:[#allocation7 + $0x14] ss:$8 sps:$4 sm:$0xff]  }
 0x10d   :  { %1457 = vmatpush1.bf16.msra.mxu0 %v3452_v29  ;;  %1629 = vmatpush1.bf16.msra.mxu1 %v3455_v30  ;;  %v3539_v29 = vld [vmem:[#allocation7 + $0x10] ss:$8 sps:$4 sm:$0xff]   ;;  %v3544_v30 = vld [vmem:[#allocation7 + $0x24] ss:$8 sps:$4 sm:$0xff]  }
 0x10e   :  { %1458 = vmatprep.subr.bf16.mxu0 %v3460_v31  ;;  %1630 = vmatprep.subr.bf16.mxu1 %v3463_v32  ;;  %v3542_v31 = vld [vmem:[#allocation7 + $0x20] ss:$8 sps:$4 sm:$0xff]   ;;  %v3547_v32 = vld [vmem:[#allocation7 + $0x34] ss:$8 sps:$4 sm:$0xff]  }
 0x111   :  { %1459 = vmatpush1.bf16.msra.mxu0 %v3458_v33  ;;  %1631 = vmatpush1.bf16.msra.mxu1 %v3461_v34  ;;  %v3545_v33 = vld [vmem:[#allocation7 + $0x30] ss:$8 sps:$4 sm:$0xff]   ;;  %v3550_v34 = vld [vmem:[#allocation7 + $0x44] ss:$8 sps:$4 sm:$0xff]  }
 0x112   :  { %1460 = vmatprep.subr.bf16.mxu0 %v3466_v35  ;;  %1632 = vmatprep.subr.bf16.mxu1 %v3469_v36  ;;  %v3548_v35 = vld [vmem:[#allocation7 + $0x40] ss:$8 sps:$4 sm:$0xff]   ;;  %v3553_v36 = vld [vmem:[#allocation7 + $0x54] ss:$8 sps:$4 sm:$0xff]  }
 0x115   :  { %1461 = vmatpush1.bf16.msra.mxu0 %v3464_v37  ;;  %1633 = vmatpush1.bf16.msra.mxu1 %v3467_v38  ;;  %v3551_v37 = vld [vmem:[#allocation7 + $0x50] ss:$8 sps:$4 sm:$0xff]   ;;  %v3556_v38 = vld [vmem:[#allocation7 + $0x64] ss:$8 sps:$4 sm:$0xff]  }
 0x116   :  { %1462 = vmatprep.subr.bf16.mxu0 %v3472_v39  ;;  %1634 = vmatprep.subr.bf16.mxu1 %v3475_v40  ;;  %v3554_v39 = vld [vmem:[#allocation7 + $0x60] ss:$8 sps:$4 sm:$0xff]   ;;  %v3559_v40 = vld [vmem:[#allocation7 + $0x74] ss:$8 sps:$4 sm:$0xff]  }
 0x119   :  { %1463 = vmatpush1.bf16.msra.mxu0 %v3470_v41  ;;  %1635 = vmatpush1.bf16.msra.mxu1 %v3473_v42  ;;  %v3557_v41 = vld [vmem:[#allocation7 + $0x70] ss:$8 sps:$4 sm:$0xff]   ;;  %v3562_v42 = vld [vmem:[#allocation7 + $0x84] ss:$8 sps:$4 sm:$0xff]  }
 0x11a   :  { %1464 = vmatprep.subr.bf16.mxu0 %v3478_v43  ;;  %1636 = vmatprep.subr.bf16.mxu1 %v3481_v44  ;;  %v3560_v43 = vld [vmem:[#allocation7 + $0x80] ss:$8 sps:$4 sm:$0xff]   ;;  %v3565_v44 = vld [vmem:[#allocation7 + $0x94] ss:$8 sps:$4 sm:$0xff]  }
 0x11d   :  { %1465 = vmatpush1.bf16.msra.mxu0 %v3476_v45  ;;  %1637 = vmatpush1.bf16.msra.mxu1 %v3479_v46  ;;  %v3563_v45 = vld [vmem:[#allocation7 + $0x90] ss:$8 sps:$4 sm:$0xff]   ;;  %v3568_v46 = vld [vmem:[#allocation7 + $0xa4] ss:$8 sps:$4 sm:$0xff]  }
 0x11e   :  { %1466 = vmatprep.subr.bf16.mxu0 %v3484_v47  ;;  %1638 = vmatprep.subr.bf16.mxu1 %v3487_v48  ;;  %v3566_v47 = vld [vmem:[#allocation7 + $0xa0] ss:$8 sps:$4 sm:$0xff]   ;;  %v3571_v48 = vld [vmem:[#allocation7 + $0xb4] ss:$8 sps:$4 sm:$0xff]  }
 0x121   :  { %1467 = vmatpush1.bf16.msra.mxu0 %v3482_v49  ;;  %1639 = vmatpush1.bf16.msra.mxu1 %v3485_v50  ;;  %v3569_v49 = vld [vmem:[#allocation7 + $0xb0] ss:$8 sps:$4 sm:$0xff]   ;;  %v3574_v50 = vld [vmem:[#allocation7 + $0xc4] ss:$8 sps:$4 sm:$0xff]  }
 0x122   :  { %1468 = vmatprep.subr.bf16.mxu0 %v3490_v51  ;;  %1640 = vmatprep.subr.bf16.mxu1 %v3493_v52  ;;  %v3572_v51 = vld [vmem:[#allocation7 + $0xc0] ss:$8 sps:$4 sm:$0xff]   ;;  %v3577_v52 = vld [vmem:[#allocation7 + $0xd4] ss:$8 sps:$4 sm:$0xff]  }
 0x125   :  { %1469 = vmatpush1.bf16.msra.mxu0 %v3488_v53  ;;  %1641 = vmatpush1.bf16.msra.mxu1 %v3491_v54  ;;  %v3575_v53 = vld [vmem:[#allocation7 + $0xd0] ss:$8 sps:$4 sm:$0xff]   ;;  %v3580_v54 = vld [vmem:[#allocation7 + $0xe4] ss:$8 sps:$4 sm:$0xff]  }
 0x126   :  { %1470 = vmatprep.subr.bf16.mxu0 %v3496_v55  ;;  %1642 = vmatprep.subr.bf16.mxu1 %v3499_v56  ;;  %v3578_v55 = vld [vmem:[#allocation7 + $0xe0] ss:$8 sps:$4 sm:$0xff]   ;;  %v3583_v56 = vld [vmem:[#allocation7 + $0xf4] ss:$8 sps:$4 sm:$0xff]  }
 0x129   :  { %1471 = vmatpush1.bf16.msra.mxu0 %v3494_v57  ;;  %1643 = vmatpush1.bf16.msra.mxu1 %v3497_v58  ;;  %v3581_v57 = vld [vmem:[#allocation7 + $0xf0] ss:$8 sps:$4 sm:$0xff]   ;;  %v3586_v58 = vld [vmem:[#allocation7 + $0x104] ss:$8 sps:$4 sm:$0xff]  }
 0x12a   :  { %1472 = vmatprep.subr.bf16.mxu0 %v3502_v59  ;;  %1644 = vmatprep.subr.bf16.mxu1 %v3505_v60  ;;  %v3632_v59 = vld [vmem:[#allocation8 + $0x40] sm:$0xff]  }
 0x12b   :  { %v3633_v60 = vld [vmem:[#allocation8] sm:$0xff]  }
 0x12d   :  { %1473 = vmatpush1.bf16.msra.mxu0 %v3500_v61  ;;  %1645 = vmatpush1.bf16.msra.mxu1 %v3503_v62  ;;  %v3634_v61 = vld [vmem:[#allocation8 + $0x48] sm:$0xff]  }
 0x12e   :  { %1474 = vmatprep.subr.bf16.mxu0 %v3508_v63  ;;  %1646 = vmatprep.subr.bf16.mxu1 %v3511_v0  ;;  %v3635_v62 = vld [vmem:[#allocation8 + $0x8] sm:$0xff]   ;;  %v3636_v63 = vld [vmem:[#allocation8 + $0x50] sm:$0xff]  }
 0x12f   :  { %v3637_v0 = vld [vmem:[#allocation8 + $0x10] sm:$0xff]  }
 0x131   :  { %1475 = vmatpush1.bf16.msra.mxu0 %v3506_v1  ;;  %1647 = vmatpush1.bf16.msra.mxu1 %v3509_v2  ;;  %v3638_v1 = vld [vmem:[#allocation8 + $0x58] sm:$0xff]  }
 0x132   :  { %1476 = vmatprep.subr.bf16.mxu0 %v3514_v3  ;;  %1648 = vmatprep.subr.bf16.mxu1 %v3517_v4  ;;  %v3639_v2 = vld [vmem:[#allocation8 + $0x18] sm:$0xff]   ;;  %v3640_v3 = vld [vmem:[#allocation8 + $0x60] sm:$0xff]  }
 0x133   :  { %v3641_v4 = vld [vmem:[#allocation8 + $0x20] sm:$0xff]  }
 0x135   :  { %1477 = vmatpush1.bf16.msra.mxu0 %v3512_v5  ;;  %1649 = vmatpush1.bf16.msra.mxu1 %v3515_v6  ;;  %v3642_v5 = vld [vmem:[#allocation8 + $0x68] sm:$0xff]   ;;  %v360_v6 = vlaneseq }
 0x136   :  { %1478 = vmatprep.subr.bf16.mxu0 %v3520_v7  ;;  %1650 = vmatprep.subr.bf16.mxu1 %v3523_v8 }
 0x137   :  { %v4050_v7 = vshrl.u32 %v360_v6, 7  ;;  %v3625_v6 = vld [vmem:[#allocation7 + $0x1d4] ss:$8 sps:$4 sm:$0xff]  }
 0x139   :  { %1479 = vmatpush1.bf16.msra.mxu0 %v3518_v9  ;;  %1651 = vmatpush1.bf16.msra.mxu1 %v3521_v10  ;;  %v362_v8 = vsub.s32 0, %v4050_v7  ;;  %v370_v9 = vsub.s32 2, %v4050_v7  ;;  %v358_v10 = vld [vmem:[%s4132_s2] sm:$0xf] }
 0x13a   :  { %1480 = vmatprep.subr.bf16.mxu0 %v3526_v11  ;;  %1652 = vmatprep.subr.bf16.mxu1 %v3529_v12  ;;  %v366_v11 = vsub.s32 1, %v4050_v7  ;;  %v374_v12 = vsub.s32 3, %v4050_v7  ;;  %v3649_v7 = vld [vmem:[#allocation10 + $0x8] sm:$0xff]  }
 0x13c   :  { %v367_v15 = vrot.slane %v358_v10, %v366_v11  ;;  %v375_v16 = vrot.slane %v358_v10, %v374_v12  ;;  %v3626_v12 = vld [vmem:[#allocation7 + $0x1e0] ss:$8 sps:$4 sm:$0xff]  }
 0x13d   :  { %1481 = vmatpush1.bf16.msra.mxu0 %v3524_v13  ;;  %1653 = vmatpush1.bf16.msra.mxu1 %v3527_v14  ;;  %v363_v13 = vrot.slane %v358_v10, %v362_v8  ;;  %v371_v14 = vrot.slane %v358_v10, %v370_v9  ;;  %v3623_v9 = vld [vmem:[#allocation7 + $0x1d0] ss:$8 sps:$4 sm:$0xff]   ;;  %v3628_v10 = vld [vmem:[#allocation7 + $0x1e4] ss:$8 sps:$4 sm:$0xff]  }
 0x13e   :  { %1493 = vmatprep.subr.bf16.mxu0 %v3532_v17  ;;  %1665 = vmatprep.subr.bf16.mxu1 %v3535_v18 }
 0x140   :  { %1483 = vmatmul.mubr.bf16.vlgmr.msra.gmra.mrb[0].mxu0 %v159_v21  ;;  %1655 = vmatmul.mubr.bf16.vlgmr.msra.gmra.mrb[0].mxu1 %v159_v21 }
 0x141   :  { %1494 = vmatpush1.bf16.msra.mxu0 %v3530_v19  ;;  %1666 = vmatpush1.bf16.msra.mxu1 %v3533_v20 }
 0x142   :  { %1525 = vmatprep.mubr.bf16.mxu0 %v3873_v23  ;;  %1697 = vmatprep.mubr.bf16.mxu1 %v3873_v23 }
 0x143   :  { %2116 = vmatprep.subr.bf16.mxu0 %v3538_v22  ;;  %3074 = vmatprep.subr.bf16.mxu1 %v3632_v59  ;;  %v3605_v59 = vld [vmem:[#allocation7 + $0x170] ss:$8 sps:$4 sm:$0xff]  }
 0x14c   :  { %2955 = vmatmul.mubr.msk.bf16.vlgmr.msra.gmra.mrb[0].mxu0 %vm1360_vm0, %v161_v26  ;;  %2956 = vmatmul.mubr.msk.bf16.vlgmr.msra.gmra.mrb[0].mxu1 %vm1360_vm0, %v161_v26 }
 0x14d   :  { %2117 = vmatpush1.bf16.msra.mxu0 %v3536_v27  ;;  %3075 = vmatpush3.bf16.msra.mxu1 %v3633_v60  ;;  %v3610_v60 = vld [vmem:[#allocation7 + $0x184] ss:$8 sps:$4 sm:$0xff]  }
 0x14e   :  { %2118 = vmatprep.subr.bf16.mxu0 %v3541_v28  ;;  %3076 = vmatprep.subr.bf16.mxu1 %v3634_v61  ;;  %v3608_v61 = vld [vmem:[#allocation7 + $0x180] ss:$8 sps:$4 sm:$0xff]  }
 0x151   :  { %2119 = vmatpush1.bf16.msra.mxu0 %v3539_v29  ;;  %3077 = vmatpush3.bf16.msra.mxu1 %v3635_v62  ;;  %v3613_v62 = vld [vmem:[#allocation7 + $0x194] ss:$8 sps:$4 sm:$0xff]  }
 0x152   :  { %2120 = vmatprep.subr.bf16.mxu0 %v3544_v30  ;;  %3078 = vmatprep.subr.bf16.mxu1 %v3636_v63  ;;  %v3611_v63 = vld [vmem:[#allocation7 + $0x190] ss:$8 sps:$4 sm:$0xff]  }
 0x155   :  { %2121 = vmatpush1.bf16.msra.mxu0 %v3542_v31  ;;  %3079 = vmatpush3.bf16.msra.mxu1 %v3637_v0  ;;  %v3616_v0 = vld [vmem:[#allocation7 + $0x1a4] ss:$8 sps:$4 sm:$0xff]  }
 0x156   :  { %2122 = vmatprep.subr.bf16.mxu0 %v3547_v32  ;;  %3080 = vmatprep.subr.bf16.mxu1 %v3638_v1  ;;  %v3614_v1 = vld [vmem:[#allocation7 + $0x1a0] ss:$8 sps:$4 sm:$0xff]  }
 0x159   :  { %2123 = vmatpush1.bf16.msra.mxu0 %v3545_v33  ;;  %3081 = vmatpush3.bf16.msra.mxu1 %v3639_v2  ;;  %v3619_v2 = vld [vmem:[#allocation7 + $0x1b4] ss:$8 sps:$4 sm:$0xff]  }
 0x15a   :  { %2124 = vmatprep.subr.bf16.mxu0 %v3550_v34  ;;  %3082 = vmatprep.subr.bf16.mxu1 %v3640_v3  ;;  %v3617_v3 = vld [vmem:[#allocation7 + $0x1b0] ss:$8 sps:$4 sm:$0xff]  }
 0x15d   :  { %2125 = vmatpush1.bf16.msra.mxu0 %v3548_v35  ;;  %3083 = vmatpush3.bf16.msra.mxu1 %v3641_v4  ;;  %v3622_v4 = vld [vmem:[#allocation7 + $0x1c4] ss:$8 sps:$4 sm:$0xff]  }
 0x15e   :  { %2126 = vmatprep.subr.bf16.mxu0 %v3553_v36  ;;  %3084 = vmatprep.subr.bf16.mxu1 %v3642_v5  ;;  %v3620_v5 = vld [vmem:[#allocation7 + $0x1c0] ss:$8 sps:$4 sm:$0xff]  }
 0x161   :  { %2127 = vmatpush1.bf16.msra.mxu0 %v3551_v37 }
 0x162   :  { %2128 = vmatprep.subr.bf16.mxu0 %v3556_v38 }
 0x165   :  { %2129 = vmatpush1.bf16.msra.mxu0 %v3554_v39 }
 0x166   :  { %2130 = vmatprep.subr.bf16.mxu0 %v3559_v40 }
 0x169   :  { %2131 = vmatpush1.bf16.msra.mxu0 %v3557_v41 }
 0x16a   :  { %2132 = vmatprep.subr.bf16.mxu0 %v3562_v42 }
 0x16d   :  { %2133 = vmatpush1.bf16.msra.mxu0 %v3560_v43 }
 0x16e   :  { %2134 = vmatprep.subr.bf16.mxu0 %v3565_v44 }
 0x171   :  { %2135 = vmatpush1.bf16.msra.mxu0 %v3563_v45  ;;  %v3584_v45 = vld [vmem:[#allocation7 + $0x100] ss:$8 sps:$4 sm:$0xff]  }
 0x172   :  { %2136 = vmatprep.subr.bf16.mxu0 %v3568_v46  ;;  %v3589_v46 = vld [vmem:[#allocation7 + $0x114] ss:$8 sps:$4 sm:$0xff]  }
 0x175   :  { %2137 = vmatpush1.bf16.msra.mxu0 %v3566_v47  ;;  %v3587_v47 = vld [vmem:[#allocation7 + $0x110] ss:$8 sps:$4 sm:$0xff]  }
 0x176   :  { %2138 = vmatprep.subr.bf16.mxu0 %v3571_v48  ;;  %v3592_v48 = vld [vmem:[#allocation7 + $0x124] ss:$8 sps:$4 sm:$0xff]  }
 0x179   :  { %2139 = vmatpush1.bf16.msra.mxu0 %v3569_v49  ;;  %v3590_v49 = vld [vmem:[#allocation7 + $0x120] ss:$8 sps:$4 sm:$0xff]  }
 0x17a   :  { %2140 = vmatprep.subr.bf16.mxu0 %v3574_v50  ;;  %v3595_v50 = vld [vmem:[#allocation7 + $0x134] ss:$8 sps:$4 sm:$0xff]  }
 0x17d   :  { %2141 = vmatpush1.bf16.msra.mxu0 %v3572_v51  ;;  %v3593_v51 = vld [vmem:[#allocation7 + $0x130] ss:$8 sps:$4 sm:$0xff]  }
 0x17e   :  { %2142 = vmatprep.subr.bf16.mxu0 %v3577_v52  ;;  %v3598_v52 = vld [vmem:[#allocation7 + $0x144] ss:$8 sps:$4 sm:$0xff]  }
 0x181   :  { %2143 = vmatpush1.bf16.msra.mxu0 %v3575_v53  ;;  %v3596_v53 = vld [vmem:[#allocation7 + $0x140] ss:$8 sps:$4 sm:$0xff]  }
 0x182   :  { %2144 = vmatprep.subr.bf16.mxu0 %v3580_v54  ;;  %v3601_v54 = vld [vmem:[#allocation7 + $0x154] ss:$8 sps:$4 sm:$0xff]  }
 0x185   :  { %2145 = vmatpush1.bf16.msra.mxu0 %v3578_v55  ;;  %v3599_v55 = vld [vmem:[#allocation7 + $0x150] ss:$8 sps:$4 sm:$0xff]  }
 0x186   :  { %2146 = vmatprep.subr.bf16.mxu0 %v3583_v56  ;;  %v3604_v56 = vld [vmem:[#allocation7 + $0x164] ss:$8 sps:$4 sm:$0xff]  }
 0x189   :  { %2147 = vmatpush1.bf16.msra.mxu0 %v3581_v57  ;;  %v3602_v57 = vld [vmem:[#allocation7 + $0x160] ss:$8 sps:$4 sm:$0xff]  }
 0x18a   :  { %2159 = vmatprep.subr.bf16.mxu0 %v3586_v58  ;;  %v3607_v58 = vld [vmem:[#allocation7 + $0x174] ss:$8 sps:$4 sm:$0xff]  }
 0x21f   :  { %v1527_v17 = vpop.f32.mrb[0].mxu0  ;;  %v1699_v18 = vpop.f32.mrb[0].mxu1 }
 0x220   :  { %v3183_v19 = vadd.f32 %v1527_v17, %v363_v13  ;;  %v3187_v20 = vadd.f32 %v1699_v18, %v371_v14  ;;  %v1529_v21 = vpop.f32.mrb[1].mxu0  ;;  %v1701_v22 = vpop.f32.mrb[1].mxu1  ;;  %v3645_v17 = vld [vmem:[#allocation8 + $0x30] sm:$0xff]   ;;  %v3646_v18 = vld [vmem:[#allocation8 + $0x78] sm:$0xff]  }
 0x221   :  { %v3184_v23 = vadd.f32 %v1529_v21, %v367_v15  ;;  %v3188_v24 = vadd.f32 %v1701_v22, %v375_v16  ;;  %v1531_v25 = vpop.f32.mrb[2].mxu0  ;;  %v1703_v26 = vpop.f32.mrb[2].mxu1  ;;  %v1784_v21 = vld [vmem:[%s4134_s4] sm:$0x3] }
 0x222   :  { %v3185_v27 = vadd.f32 %v1531_v25, %v363_v13  ;;  %v3189_v28 = vadd.f32 %v1703_v26, %v371_v14  ;;  %v1533_v29 = vpop.f32.mrb[3].mxu0  ;;  %v1705_v30 = vpop.f32.mrb[3].mxu1  ;;  %v1708_v33 = vmax.f32 %v3183_v19, 0.0  ;;  %v1710_v34 = vmax.f32 %v3187_v20, 0.0  ;;  %v3631_v13 = vld [vmem:[#allocation7 + $0x1f4] ss:$8 sps:$4 sm:$0xff]  }
 0x223   :  { %v3186_v31 = vadd.f32 %v1533_v29, %v367_v15  ;;  %v3190_v32 = vadd.f32 %v1705_v30, %v375_v16  ;;  %v1709_v37 = vmax.f32 %v3184_v23, 0.0  ;;  %v1711_v38 = vmax.f32 %v3188_v24, 0.0  ;;  %v3629_v14 = vld [vmem:[#allocation7 + $0x1f0] ss:$8 sps:$4 sm:$0xff]   ;;  %v3643_v15 = vld [vmem:[#allocation8 + $0x28] sm:$0xff]  }
 0x224   :  { %v1712_v35 = vmax.f32 %v3185_v27, 0.0  ;;  %v1714_v36 = vmax.f32 %v3189_v28, 0.0  ;;  %3085 = vmatpush3.bf16.msra.mxu1 %v3643_v15  ;;  %v3644_v16 = vld [vmem:[#allocation8 + $0x70] sm:$0xff]   ;;  %v3647_v19 = vld [vmem:[#allocation8 + $0x38] sm:$0xff]   ;;  %v3874_v20 = vmov 0.0   ;;  %v1789_v22 = vrot.slane %v1784_v21, %v362_v8 }
 0x225   :  { %v1713_v39 = vmax.f32 %v3186_v31, 0.0  ;;  %v1715_v40 = vmax.f32 %v3190_v32, 0.0  ;;  %3086 = vmatprep.subr.bf16.mxu1 %v3644_v16  ;;  %v1793_v23 = vrot.slane %v1784_v21, %v366_v11  ;;  %v3650_v8 = vld [vmem:[#allocation10 + $0x10] sm:$0xff]   ;;  %v3651_v11 = vld [vmem:[#allocation10 + $0x18] sm:$0xff]   ;;  %v3668_v16 = vld [vmem:[#allocation13 + $0x20] sm:$0xff]  }
 0x226   :  { %v1716_v41 = vpack.c.bf16 %v1712_v35, %v1708_v33  ;;  %v4063_v42 = vpack.c.bf16 %v1714_v36, %v1710_v34  ;;  %v3667_v15 = vld [vmem:[#allocation13 + $0x18] sm:$0xff]   ;;  %v3047_v21 = vld [vmem:[%s4140_s10] ss:$0 sm:$0xff]  ;;  %s3826_s10 = scalar_lea.vmem %s2745_s3, 128 }
 0x227   :  { %v1717_v43 = vpack.c.bf16 %v1713_v39, %v1709_v37  ;;  %v1719_v44 = vpack.c.bf16 %v1715_v40, %v1711_v38  ;;  %v3648_v38 = vld [vmem:[#allocation10] sm:$0xff]   ;;  %v3653_v40 = vld [vmem:[#allocation10 + $0x28] sm:$0xff]   ;;  %p3827_p0 = scmp.ne.s32.totalorder %s2745_s3, %s3826_s10  ;;  %p3832_p2 = scmp.lt.s32.totalorder %s3826_s10, %s3826_s10 }
 0x228   :  { %3087 = vmatpush3.bf16.msra.mxu1 %v3645_v17  ;;  %v3652_v39 = vld [vmem:[#allocation10 + $0x20] sm:$0xff]   ;;  %v3669_v17 = vld [vmem:[#allocation13 + $0x28] sm:$0xff]  }
 0x229   :  { %2148 = vmatprep.mubr.bf16.mxu0 %v1717_v43  ;;  %3088 = vmatprep.subr.bf16.mxu1 %v3646_v18  ;;  %v3670_v18 = vld [vmem:[#allocation13 + $0x30] sm:$0xff]   ;;  %p3833_p3 = por %p3832_p2, %p3831_p1 }
 0x22a   :  { %2149 = vmatmul.mubr.bf16.vlgmr.msra.gmra.mrb[4].mxu0 %v1716_v41  ;;  %v3654_v41 = vld [vmem:[#allocation10 + $0x30] sm:$0xff]  }
 0x22b   :  { %2160 = vmatpush1.bf16.msra.mxu0 %v3584_v45  ;;  %2191 = vmatprep.mubr.bf16.mxu0 %v1719_v44  ;;  %v3021_v44 = vld [vmem:[%s4136_s6] ss:$0 sm:$0xff]  ;;  %p3834_p4 = pnand %p3833_p3, %p3827_p0 }
 0x22c   :  { %2161 = vmatprep.subr.bf16.mxu0 %v3589_v46  ;;  %3089 = vmatpush3.bf16.msra.mxu1 %v3647_v19  ;;  %v3671_v19 = vld [vmem:[#allocation13 + $0x38] sm:$0xff]  }
 0x22d   :  { %3123 = vmatprep.subr.bf16.mxu1 %v3874_v20 }
 0x22f   :  { %2162 = vmatpush1.bf16.msra.mxu0 %v3587_v47 }
 0x230   :  { %2163 = vmatprep.subr.bf16.mxu0 %v3592_v48 }
 0x233   :  { %2164 = vmatpush1.bf16.msra.mxu0 %v3590_v49 }
 0x234   :  { %2165 = vmatprep.subr.bf16.mxu0 %v3595_v50 }
 0x237   :  { %2166 = vmatpush1.bf16.msra.mxu0 %v3593_v51 }
 0x238   :  { %2167 = vmatprep.subr.bf16.mxu0 %v3598_v52 }
 0x23b   :  { %2168 = vmatpush1.bf16.msra.mxu0 %v3596_v53 }
 0x23c   :  { %2169 = vmatprep.subr.bf16.mxu0 %v3601_v54  ;;  %v3656_v54 = vld [vmem:[#allocation11] sm:$0xff]  }
 0x23f   :  { %2170 = vmatpush1.bf16.msra.mxu0 %v3599_v55 }
 0x240   :  { %2171 = vmatprep.subr.bf16.mxu0 %v3604_v56  ;;  %v3657_v56 = vld [vmem:[#allocation11 + $0x8] sm:$0xff]  }
 0x243   :  { %2172 = vmatpush1.bf16.msra.mxu0 %v3602_v57  ;;  %v3658_v57 = vld [vmem:[#allocation11 + $0x10] sm:$0xff]  }
 0x244   :  { %2173 = vmatprep.subr.bf16.mxu0 %v3607_v58  ;;  %v3659_v58 = vld [vmem:[#allocation11 + $0x18] sm:$0xff]  }
 0x247   :  { %2174 = vmatpush1.bf16.msra.mxu0 %v3605_v59  ;;  %v3660_v59 = vld [vmem:[#allocation11 + $0x20] sm:$0xff]  }
 0x248   :  { %2175 = vmatprep.subr.bf16.mxu0 %v3610_v60  ;;  %v3661_v60 = vld [vmem:[#allocation11 + $0x28] sm:$0xff]  }
 0x24b   :  { %2176 = vmatpush1.bf16.msra.mxu0 %v3608_v61  ;;  %v3662_v61 = vld [vmem:[#allocation11 + $0x30] sm:$0xff]  }
 0x24c   :  { %2177 = vmatprep.subr.bf16.mxu0 %v3613_v62  ;;  %v3663_v62 = vld [vmem:[#allocation11 + $0x38] sm:$0xff]  }
 0x24f   :  { %2178 = vmatpush1.bf16.msra.mxu0 %v3611_v63  ;;  %v3038_v63 = vld [vmem:[%s4138_s8] ss:$0 sm:$0xff] }
 0x250   :  { %2179 = vmatprep.subr.bf16.mxu0 %v3616_v0 }
 0x253   :  { %2180 = vmatpush1.bf16.msra.mxu0 %v3614_v1 }
 0x254   :  { %2181 = vmatprep.subr.bf16.mxu0 %v3619_v2 }
 0x257   :  { %2182 = vmatpush1.bf16.msra.mxu0 %v3617_v3 }
 0x258   :  { %2183 = vmatprep.subr.bf16.mxu0 %v3622_v4 }
 0x25b   :  { %2184 = vmatpush1.bf16.msra.mxu0 %v3620_v5 }
 0x25c   :  { %2185 = vmatprep.subr.bf16.mxu0 %v3625_v6 }
 0x25f   :  { %2186 = vmatpush1.bf16.msra.mxu0 %v3623_v9 }
 0x260   :  { %2187 = vmatprep.subr.bf16.mxu0 %v3628_v10  ;;  %v3664_v10 = vld [vmem:[#allocation13] sm:$0xff]  }
 0x263   :  { %2188 = vmatpush1.bf16.msra.mxu0 %v3626_v12 }
 0x264   :  { %2189 = vmatprep.subr.bf16.mxu0 %v3631_v13  ;;  %v3665_v13 = vld [vmem:[#allocation13 + $0x8] sm:$0xff]  }
 0x267   :  { %2190 = vmatpush1.bf16.msra.mxu0 %v3629_v14  ;;  %v3666_v14 = vld [vmem:[#allocation13 + $0x10] sm:$0xff]  }
 0x26a   :  { %2192 = vmatmul.mubr.bf16.vlgmr.msra.gmra.mrb[4].mxu0 %v4063_v42  ;;  %v3655_v42 = vld [vmem:[#allocation10 + $0x38] sm:$0xff]  }
 0x33d   :  { %v2193_v24 = vpop.f32.mrb[4].mxu0 }
 0x33e   :  { %v3191_v25 = vadd.f32 %v2193_v24, %v1789_v22  ;;  %v2195_v26 = vpop.f32.mrb[5].mxu0 }
 0x33f   :  { %v3192_v27 = vadd.f32 %v2195_v26, %v1793_v23  ;;  %v2197_v28 = vpop.f32.mrb[6].mxu0 }
 0x340   :  { %v3193_v29 = vadd.f32 %v2197_v28, %v1789_v22  ;;  %v2199_v30 = vpop.f32.mrb[7].mxu0  ;;  %v2202_v32 = vmax.f32 %v3191_v25, 0.0 }
 0x341   :  { %v3194_v31 = vadd.f32 %v2199_v30, %v1793_v23  ;;  %v2203_v34 = vmax.f32 %v3192_v27, 0.0 }
 0x342   :  { %v2204_v33 = vmax.f32 %v3193_v29, 0.0 }
 0x343   :  { %v2205_v35 = vmax.f32 %v3194_v31, 0.0 }
 0x344   :  { %v2206_v36 = vpack.c.bf16 %v2204_v33, %v2202_v32 }
 0x345   :  { %v2207_v37 = vpack.c.bf16 %v2205_v35, %v2203_v34 }
 0x347   :  { %2375 = vmatprep.mubr.bf16.mxu1 %v2207_v37 }
 0x348   :  { %2376 = vmatmul.mubr.bf16.vlgmr.msra.gmra.mrb[4].mxu1 %v2206_v36 }
 0x349   :  { %3124 = vmatpush3.bf16.msra.mxu1 %v3648_v38  ;;  %3139 = vmatprep.mubr.msk.bf16.mxu1 %vm3875_vm1, %v3874_v20 }
 0x34a   :  { %3125 = vmatprep.subr.bf16.mxu1 %v3874_v20 }
 0x34d   :  { %3126 = vmatpush3.bf16.msra.mxu1 %v3649_v7 }
 0x34e   :  { %3127 = vmatprep.subr.bf16.mxu1 %v3874_v20 }
 0x351   :  { %3128 = vmatpush3.bf16.msra.mxu1 %v3650_v8 }
 0x352   :  { %3129 = vmatprep.subr.bf16.mxu1 %v3874_v20 }
 0x355   :  { %3130 = vmatpush3.bf16.msra.mxu1 %v3651_v11 }
 0x356   :  { %3131 = vmatprep.subr.bf16.mxu1 %v3874_v20 }
 0x359   :  { %3132 = vmatpush3.bf16.msra.mxu1 %v3652_v39 }
 0x35a   :  { %3133 = vmatprep.subr.bf16.mxu1 %v3874_v20 }
 0x35d   :  { %3134 = vmatpush3.bf16.msra.mxu1 %v3653_v40 }
 0x35e   :  { %3135 = vmatprep.subr.bf16.mxu1 %v3874_v20 }
 0x361   :  { %3136 = vmatpush3.bf16.msra.mxu1 %v3654_v41 }
 0x362   :  { %3137 = vmatprep.subr.bf16.mxu1 %v3874_v20 }
 0x365   :  { %3138 = vmatpush3.bf16.msra.mxu1 %v3655_v42 }
 0x366   :  { %3143 = vmatprep.subr.bf16.mxu1 %v3874_v20 }
 0x41b   :  { %v3090_v43 = vpop.f32.mrb[4].mxu1 }
 0x41c   :  { %v3091_v45 = vpop.f32.mrb[5].mxu1 }
 0x41d   :  { %v3092_v46 = vadd.f32 %v3091_v45, %v3090_v43  ;;  %v3093_v47 = vpop.f32.mrb[6].mxu1 }
 0x41e   :  { %v3094_v48 = vpop.f32.mrb[7].mxu1 }
 0x41f   :  { %v2378_v49 = vadd.f32 %v3092_v46, %v3021_v44  ;;  %v3095_v50 = vadd.f32 %v3094_v48, %v3093_v47 }
 0x421   :  { %v2381_v51 = vadd.f32 %v3095_v50, %v3021_v44  ;;  %v2384_v52 = vmax.f32 %v2378_v49, 0.0 }
 0x423   :  { %v2385_v53 = vmax.f32 %v2381_v51, 0.0 }
 0x425   :  { %v2386_v55 = vpack.c.bf16 %v2385_v53, %v2384_v52 }
 0x427   :  { %3140 = vmatmul.mubr.bf16.vlgmr.msra.gmra.mrb[8].mxu1 %v2386_v55 }
 0x428   :  { %3144 = vmatpush3.bf16.msra.mxu1 %v3656_v54  ;;  %3159 = vmatprep.mubr.msk.bf16.mxu1 %vm3875_vm1, %v3874_v20 }
 0x429   :  { %3145 = vmatprep.subr.bf16.mxu1 %v3874_v20 }
 0x42c   :  { %3146 = vmatpush3.bf16.msra.mxu1 %v3657_v56 }
 0x42d   :  { %3147 = vmatprep.subr.bf16.mxu1 %v3874_v20 }
 0x430   :  { %3148 = vmatpush3.bf16.msra.mxu1 %v3658_v57 }
 0x431   :  { %3149 = vmatprep.subr.bf16.mxu1 %v3874_v20 }
 0x434   :  { %3150 = vmatpush3.bf16.msra.mxu1 %v3659_v58 }
 0x435   :  { %3151 = vmatprep.subr.bf16.mxu1 %v3874_v20 }
 0x438   :  { %3152 = vmatpush3.bf16.msra.mxu1 %v3660_v59 }
 0x439   :  { %3153 = vmatprep.subr.bf16.mxu1 %v3874_v20 }
 0x43c   :  { %3154 = vmatpush3.bf16.msra.mxu1 %v3661_v60 }
 0x43d   :  { %3155 = vmatprep.subr.bf16.mxu1 %v3874_v20 }
 0x440   :  { %3156 = vmatpush3.bf16.msra.mxu1 %v3662_v61 }
 0x441   :  { %3157 = vmatprep.subr.bf16.mxu1 %v3874_v20 }
 0x444   :  { %3158 = vmatpush3.bf16.msra.mxu1 %v3663_v62 }
 0x445   :  { %3163 = vmatprep.subr.bf16.mxu1 %v3874_v20 }
 0x4fa   :  { %v2492_v0 = vpop.f32.mrb[8].mxu1 }
 0x4fb   :  { %v2493_v1 = vadd.f32 %v3038_v63, %v2492_v0  ;;  %v3141_v2 = vpop.f32.mrb[9].mxu1 }
 0x4fc   :  { %v2495_v3 = vpop.f32.mrb[10].mxu1 }
 0x4fd   :  { %v2496_v4 = vadd.f32 %v3038_v63, %v2495_v3  ;;  %v3142_v5 = vpop.f32.mrb[11].mxu1  ;;  %v2499_v6 = vmax.f32 %v2493_v1, 0.0 }
 0x4ff   :  { %v2500_v9 = vmax.f32 %v2496_v4, 0.0 }
 0x501   :  { %v2501_v12 = vpack.c.bf16 %v2500_v9, %v2499_v6 }
 0x503   :  { %3160 = vmatmul.mubr.bf16.vlgmr.msra.gmra.mrb[12].mxu1 %v2501_v12 }
 0x504   :  { %3164 = vmatpush3.bf16.msra.mxu1 %v3664_v10  ;;  %3179 = vmatprep.mubr.msk.bf16.mxu1 %vm3875_vm1, %v3874_v20 }
 0x505   :  { %3165 = vmatprep.subr.bf16.mxu1 %v3874_v20 }
 0x508   :  { %3166 = vmatpush3.bf16.msra.mxu1 %v3665_v13 }
 0x509   :  { %3167 = vmatprep.subr.bf16.mxu1 %v3874_v20 }
 0x50c   :  { %3168 = vmatpush3.bf16.msra.mxu1 %v3666_v14 }
 0x50d   :  { %3169 = vmatprep.subr.bf16.mxu1 %v3874_v20 }
 0x510   :  { %3170 = vmatpush3.bf16.msra.mxu1 %v3667_v15 }
 0x511   :  { %3171 = vmatprep.subr.bf16.mxu1 %v3874_v20 }
 0x514   :  { %3172 = vmatpush3.bf16.msra.mxu1 %v3668_v16 }
 0x515   :  { %3173 = vmatprep.subr.bf16.mxu1 %v3874_v20 }
 0x518   :  { %3174 = vmatpush3.bf16.msra.mxu1 %v3669_v17 }
 0x519   :  { %3175 = vmatprep.subr.bf16.mxu1 %v3874_v20 }
 0x51c   :  { %3176 = vmatpush3.bf16.msra.mxu1 %v3670_v18 }
 0x51d   :  { %3177 = vmatprep.subr.bf16.mxu1 %v3874_v20  ;;  %v3056_v20 = vld [vmem:[%s4142_s12] ss:$0 sm:$0xff] }
 0x520   :  { %3178 = vmatpush3.bf16.msra.mxu1 %v3671_v19 }
 0x5d6   :  { %v2607_v22 = vpop.f32.mrb[12].mxu1 }
 0x5d7   :  { %v2608_v23 = vadd.f32 %v3047_v21, %v2607_v22  ;;  %v3161_v24 = vpop.f32.mrb[13].mxu1 }
 0x5d8   :  { %v2610_v25 = vpop.f32.mrb[14].mxu1 }
 0x5d9   :  { %v2611_v26 = vadd.f32 %v3047_v21, %v2610_v25  ;;  %v3162_v27 = vpop.f32.mrb[15].mxu1  ;;  %v2614_v28 = vmax.f32 %v2608_v23, 0.0 }
 0x5db   :  { %v2615_v29 = vmax.f32 %v2611_v26, 0.0 }
 0x5dd   :  { %v2616_v30 = vpack.c.bf16 %v2615_v29, %v2614_v28 }
 0x5df   :  { %3180 = vmatmul.mubr.bf16.vlgmr.msra.gmra.mrb[16].mxu1 %v2616_v30 }
 0x6b2   :  { %v2722_v31 = vpop.f32.mrb[16].mxu1 }
 0x6b3   :  { %v3181_v32 = vpop.f32.mrb[17].mxu1  ;;  %v2723_v34 = vadd.f32 %v3056_v20, %v2722_v31 }
 0x6b4   :  { %v2725_v33 = vpop.f32.mrb[18].mxu1 }
 0x6b5   :  { %v2726_v35 = vadd.f32 %v3056_v20, %v2725_v33  ;;  %v3182_v36 = vpop.f32.mrb[19].mxu1 }
 0x6b7   :  { %v3072_v37 = vpack.c.bf16 %v2726_v35, %v2723_v34 }
 0x6b9   :  { %3073 = vst [vmem:[#allocation14] sm:$0xff] %v3072_v37  }
 0x6ba   :  { %3837 = shalt.err (!%p3834_p4)
}
 0x6bb   :  { %s3838_s17 = scalar_lea.hbm %s4143_s13, 128 }
 0x6bc   :  { %p3839_p5 = scmp.ne.s32.totalorder %s4143_s13, %s3838_s17  ;;  %p3842_p6 = scmp.lt.u32.totalorder %s3838_s17, %s4143_s13 }
 0x6be   :  { %p3844_p7 = pnand %p3842_p6, %p3839_p5 }
 0x6c0   :  { %3847 = shalt.err (!%p3844_p7)
}
 0x6c1   :  { %2750 = dma.vmem_to_hbm [thread:$0]  %s2745_s3, 128, %s4143_s13, [#allocation4], %s3862_s1, %s3862_s1, %s3863_s26  }
 0x6c2   :  { %3856 = dma.done.wait [#allocation4], 128  }
 0x6c3   :  { %3857 = vsyncadd [#allocation4], 4294967168 }
 0x6c4   :  { %2754 = vsyncpa [#allocation3], 1 }
 0x6c5   :  { %2755 = vsyncpa [#allocation6], 1 }
 0x6c6   :  { %2756 = vsyncpa [#allocation9], 1 }
 0x6c7   :  { %2757 = vsyncpa [#allocation12], 1 }
 0x6c8   :  { %2758 = vsyncpa [#allocation4], 1 }

</bundles_post_ra>
